<compile_context>
chip_gen: v7x
topology: tpu7x:2x2x1
jax: 0.10.0
libtpu: 0.0.40
codegen_flags: <defaults>
</compile_context>

<pallas_src>
import jax
import jax.numpy as jnp
from jax import lax
from jax.experimental import pallas as pl
from jax.experimental.pallas import tpu as pltpu


# ---------------------------------------------------------------------------
# helpers
# ---------------------------------------------------------------------------

def _pick_tile_h(Ho: int, Wo: int, target_m: int = 1024) -> int:
    """Largest divisor of Ho such that tile_h * Wo <= target_m (at least 1)."""
    best = 1
    cap = max(target_m, Wo)
    for t in range(1, Ho + 1):
        if Ho % t == 0 and t * Wo <= cap:
            best = t
    return best


def _apply_activation(y, activ: str):
    if activ == "relu":
        return jnp.maximum(y, 0.0)
    if activ == "tanh":
        return jnp.tanh(y)
    if activ == "sigmoid":
        return jax.nn.sigmoid(y)
    if activ == "identity":
        return y
    raise NotImplementedError(activ)


# ---------------------------------------------------------------------------
# kernel
# ---------------------------------------------------------------------------

def _make_conv_kernel(*, kh, kw, stride, tile_h, Wo, Cin, Cout, activ):
    if activ not in ("relu", "tanh", "sigmoid", "identity"):
        raise NotImplementedError(activ)

    tile_m = tile_h * Wo
    hspan = (tile_h - 1) * stride + 1       # input rows touched per output-row tile/tap
    wspan = (Wo - 1) * stride + 1           # input cols touched per tap

    def kernel(x_ref, w_ref, shift_ref, o_ref):
        # x_ref:     (1, Hp, Wp, Cin)   full padded image of this batch element (VMEM-resident)
        # w_ref:     (kh*kw, Cin, Cout) BN-scale-folded weights, one (Cin,Cout) slab per tap
        # shift_ref: (1, Cout)          folded BN shift (f32)
        # o_ref:     (1, tile_h, Wo, Cout)
        r = pl.program_id(1)
        row0 = pl.multiple_of(r * (tile_h * stride), tile_h * stride)

        acc = None
        for dh in range(kh):
            for dw in range(kw):
                piece = x_ref[0, pl.ds(row0 + dh, hspan), pl.ds(dw, wspan), :]
                if stride > 1:
                    # select every stride-th row/col of the loaded span
                    piece = piece[::stride, ::stride, :]
                pm = piece.reshape(tile_m, Cin)
                contrib = jnp.dot(pm, w_ref[dh * kw + dw],
                                  preferred_element_type=jnp.float32)
                acc = contrib if acc is None else acc + contrib

        y = acc + shift_ref[...]                      # folded BN shift, f32
        y = _apply_activation(y, activ)
        o_ref[0] = y.reshape(tile_h, Wo, Cout).astype(o_ref.dtype)

    return kernel


# ---------------------------------------------------------------------------
# one-time parameter preparation (call at init, NOT per forward)
# ---------------------------------------------------------------------------

def prepare_conv_bn_params(weight, conv_bias=None, gamma=None, beta=None,
                           running_mean=None, running_var=None, *, eps=1e-5,
                           use_bn=True, compute_dtype=jnp.bfloat16):
    """Re-layout + BN folding.

    weight: [Cout, Cin, kh, kw] (PyTorch OIHW layout).
    Returns:
      w_taps: [kh*kw, Cin, Cout]  (BN scale folded in f32, then cast to compute_dtype)
      shift : [1, Cout] float32
    such that  activ(BN(conv(x) + bias)) == activ(sum_t patch_t @ w_taps[t] + shift).
    """
    Cout, Cin, kh, kw = weight.shape
    w = jnp.transpose(weight, (2, 3, 1, 0)).astype(jnp.float32)      # [kh, kw, Cin, Cout]
    b = (conv_bias if conv_bias is not None
         else jnp.zeros((Cout,), jnp.float32)).astype(jnp.float32)
    if use_bn:
        scale = gamma.astype(jnp.float32) / jnp.sqrt(
            running_var.astype(jnp.float32) + eps)
        shift = beta.astype(jnp.float32) + scale * (b - running_mean.astype(jnp.float32))
    else:
        scale = jnp.ones((Cout,), jnp.float32)
        shift = b
    w = w * scale[None, None, None, :]              # fold scale in f32 BEFORE bf16 cast
    w_taps = w.reshape(kh * kw, Cin, Cout).astype(compute_dtype)
    return w_taps, shift.reshape(1, Cout)


# ---------------------------------------------------------------------------
# forward passes
# ---------------------------------------------------------------------------

def conv2d_bn_activ_nhwc(x_nhwc, w_taps, shift, *, kernel_size, stride=1, padding=0,
                         activ="relu", target_tile_m=1024,
                         compute_dtype=jnp.bfloat16, out_dtype=None):
    """Fused Conv2d+BN+activation, NHWC in / NHWC out (no layout transposes)."""
    B, H, W, Cin = x_nhwc.shape
    T, Cin_w, Cout = w_taps.shape
    kh = kw = kernel_size
    assert T == kh * kw and Cin_w == Cin
    Ho = (H + 2 * padding - kh) // stride + 1
    Wo = (W + 2 * padding - kw) // stride + 1
    out_dtype = x_nhwc.dtype if out_dtype is None else out_dtype

    # One cheap pass over the input: bf16 cast fused with spatial zero-pad.
    x_p = jnp.pad(x_nhwc.astype(compute_dtype),
                  ((0, 0), (padding, padding), (padding, padding), (0, 0)))
    Hp, Wp = H + 2 * padding, W + 2 * padding

    tile_h = _pick_tile_h(Ho, Wo, target_m=target_tile_m)
    grid = (B, Ho // tile_h)

    kernel = _make_conv_kernel(kh=kh, kw=kw, stride=stride, tile_h=tile_h,
                               Wo=Wo, Cin=Cin, Cout=Cout, activ=activ)

    bpe_in = jnp.dtype(compute_dtype).itemsize
    bpe_out = jnp.dtype(out_dtype).itemsize
    vmem_need = (2 * Hp * Wp * Cin * bpe_in          # double-buffered image block
                 + 2 * tile_h * Wo * Cout * bpe_out  # double-buffered output tile
                 + kh * kw * Cin * Cout * bpe_in     # resident weights
                 + 4 * Cout * 4)
    vmem_limit = int(min(max(4 * vmem_need, 32 * 1024 * 1024), 96 * 1024 * 1024))
    # TODO(synk): on v7x (64 MiB VMEM) lower target_tile_m for very large images
    #             instead of raising this limit.

    flops = 2 * B * Ho * Wo * kh * kw * Cin * Cout
    transc = B * Ho * Wo * Cout if activ in ("tanh", "sigmoid") else 0
    bytes_acc = (x_p.size * bpe_in + w_taps.size * bpe_in
                 + B * Ho * Wo * Cout * bpe_out + shift.size * 4)

    return pl.pallas_call(
        kernel,
        out_shape=jax.ShapeDtypeStruct((B, Ho, Wo, Cout), out_dtype),
        grid=grid,
        in_specs=[
            pl.BlockSpec((1, Hp, Wp, Cin), lambda b, r: (b, 0, 0, 0)),
            pl.BlockSpec((kh * kw, Cin, Cout), lambda b, r: (0, 0, 0)),
            pl.BlockSpec((1, Cout), lambda b, r: (0, 0)),
        ],
        out_specs=pl.BlockSpec((1, tile_h, Wo, Cout), lambda b, r: (b, r, 0, 0)),
        compiler_params=pltpu.CompilerParams(
            dimension_semantics=("parallel", "parallel"),
            vmem_limit_bytes=vmem_limit),
        cost_estimate=pl.CostEstimate(flops=flops, transcendentals=transc,
                                      bytes_accessed=bytes_acc),
    )(x_p, w_taps, shift)


def conv2d_bn_activ(x_nchw, w_taps, shift, *, kernel_size, stride=1, padding=0,
                    activ="relu", **kwargs):
    """Drop-in NCHW forward matching the PyTorch module.

    Prefer conv2d_bn_activ_nhwc inside a full network to avoid the two layout
    transposes (each is a full HBM read+write of the activation).
    """
    x_nhwc = jnp.transpose(x_nchw, (0, 2, 3, 1))
    y = conv2d_bn_activ_nhwc(x_nhwc, w_taps, shift, kernel_size=kernel_size,
                             stride=stride, padding=padding, activ=activ, **kwargs)
    return jnp.transpose(y, (0, 3, 1, 2))


# ---------------------------------------------------------------------------
# demo / correctness check
# ---------------------------------------------------------------------------

if __name__ == "__main__":
    # Shapes consistent with the module: Conv2dBNActiv(4, 8, 3, stride=1, padding=1)
    B, Cin, H, W = 2, 4, 16, 16
    Cout, ksize, stride, padding = 8, 3, 1, 1
    eps = 1e-5

    key = jax.random.PRNGKey(0)
    kx, kw_, kg, kb, km, kv = jax.random.split(key, 6)

    x = jax.random.normal(kx, (B, Cin, H, W), dtype=jnp.float32)
    fan_in = Cin * ksize * ksize
    bound = 1.0 / (fan_in ** 0.5)
    weight = jax.random.uniform(kw_, (Cout, Cin, ksize, ksize),
                                minval=-bound, maxval=bound, dtype=jnp.float32)
    gamma = jax.random.uniform(kg, (Cout,), minval=0.5, maxval=1.5, dtype=jnp.float32)
    beta = jax.random.uniform(kb, (Cout,), minval=-0.5, maxval=0.5, dtype=jnp.float32)
    running_mean = jax.random.normal(km, (Cout,), dtype=jnp.float32) * 0.1
    running_var = jax.random.uniform(kv, (Cout,), minval=0.5, maxval=1.5, dtype=jnp.float32)

    # Module defaults: bias=False, use_bn=True, activ='relu'.
    w_taps, shift = prepare_conv_bn_params(
        weight, None, gamma, beta, running_mean, running_var, eps=eps, use_bn=True)

    out = conv2d_bn_activ(x, w_taps, shift, kernel_size=ksize,
                          stride=stride, padding=padding, activ="relu")
    jax.block_until_ready(out)

    # Reference: f32 conv -> inference BN -> ReLU.
    ref_conv = lax.conv_general_dilated(
        x, weight, window_strides=(stride, stride),
        padding=((padding, padding), (padding, padding)),
        dimension_numbers=("NCHW", "OIHW", "NCHW"))
    scale_ref = gamma / jnp.sqrt(running_var + eps)
    shift_ref = beta - scale_ref * running_mean
    ref = jnp.maximum(
        ref_conv * scale_ref[None, :, None, None] + shift_ref[None, :, None, None], 0.0)

    assert out.shape == (B, Cout, H, W)
    # bf16 MXU inputs (f32 accumulation) vs f32 reference -> bf16-appropriate tolerance.
    assert jnp.allclose(out, ref, atol=5e-2, rtol=5e-2), \
        float(jnp.max(jnp.abs(out - ref)))

    print("KERNEL_OK")
</pallas_src>

<mosaic_0001>
module attributes {stable_mosaic.version = 11 : i64} {
  func.func @kernel(%arg0: i32, %arg1: i32, %arg2: memref<1x18x18x4xbf16, #tpu.memory_space<vmem>>, %arg3: memref<9x4x8xbf16, #tpu.memory_space<vmem>>, %arg4: memref<1x8xf32, #tpu.memory_space<vmem>>, %arg5: memref<1x16x16x8xf32, #tpu.memory_space<vmem>>) attributes {dimension_semantics = [#tpu.dimension_semantics<parallel>, #tpu.dimension_semantics<parallel>], iteration_bounds = array<i64: 2, 1>, scalar_prefetch = 0 : i64, scratch_operands = 0 : i64, tpu.core_type = #tpu.core_type<tc>, window_params = [{transform_indices = @transform_0, window_bounds = array<i64: 1, 18, 18, 4>}, {pipeline_mode = #tpu.pipeline_mode<synchronous>, transform_indices = @transform_1, window_bounds = array<i64: 9, 4, 8>}, {pipeline_mode = #tpu.pipeline_mode<synchronous>, transform_indices = @transform_2, window_bounds = array<i64: 1, 8>}, {transform_indices = @transform_3, window_bounds = array<i64: 1, 16, 16, 8>}]} {
    %c16_i32 = arith.constant 16 : i32
    %0 = arith.muli %arg1, %c16_i32 : i32
    %1 = tpu.assume_multiple %0, 16 : i32
    %c0_i32 = arith.constant 0 : i32
    %2 = arith.addi %1, %c0_i32 : i32
    %c0 = arith.constant 0 : index
    %3 = arith.index_cast %2 : i32 to index
    %c0_0 = arith.constant 0 : index
    %c0_1 = arith.constant 0 : index
    %4 = vector.load %arg2[%c0, %3, %c0_0, %c0_1] : memref<1x18x18x4xbf16, #tpu.memory_space<vmem>>, vector<1x16x16x4xbf16>
    %5 = vector.shape_cast %4 : vector<1x16x16x4xbf16> to vector<16x16x4xbf16>
    %6 = vector.shape_cast %5 : vector<16x16x4xbf16> to vector<256x4xbf16>
    %c0_2 = arith.constant 0 : index
    %c0_3 = arith.constant 0 : index
    %c0_4 = arith.constant 0 : index
    %7 = vector.load %arg3[%c0_2, %c0_3, %c0_4] : memref<9x4x8xbf16, #tpu.memory_space<vmem>>, vector<1x4x8xbf16>
    %8 = vector.shape_cast %7 : vector<1x4x8xbf16> to vector<4x8xbf16>
    %cst = arith.constant dense<0.000000e+00> : vector<256x8xf32>
    %9 = tpu.matmul %6, %8, %cst {dimension_numbers = #tpu.dot_dimension_numbers<[1], [0], [0], [1], [0, 0, 1, 1], [], []>} : vector<256x4xbf16>, vector<4x8xbf16>, vector<256x8xf32> -> vector<256x8xf32>
    %c0_i32_5 = arith.constant 0 : i32
    %10 = arith.addi %1, %c0_i32_5 : i32
    %c0_6 = arith.constant 0 : index
    %11 = arith.index_cast %10 : i32 to index
    %c1 = arith.constant 1 : index
    %c0_7 = arith.constant 0 : index
    %12 = vector.load %arg2[%c0_6, %11, %c1, %c0_7] : memref<1x18x18x4xbf16, #tpu.memory_space<vmem>>, vector<1x16x16x4xbf16>
    %13 = vector.shape_cast %12 : vector<1x16x16x4xbf16> to vector<16x16x4xbf16>
    %14 = vector.shape_cast %13 : vector<16x16x4xbf16> to vector<256x4xbf16>
    %c1_8 = arith.constant 1 : index
    %c0_9 = arith.constant 0 : index
    %c0_10 = arith.constant 0 : index
    %15 = vector.load %arg3[%c1_8, %c0_9, %c0_10] : memref<9x4x8xbf16, #tpu.memory_space<vmem>>, vector<1x4x8xbf16>
    %16 = vector.shape_cast %15 : vector<1x4x8xbf16> to vector<4x8xbf16>
    %cst_11 = arith.constant dense<0.000000e+00> : vector<256x8xf32>
    %17 = tpu.matmul %14, %16, %cst_11 {dimension_numbers = #tpu.dot_dimension_numbers<[1], [0], [0], [1], [0, 0, 1, 1], [], []>} : vector<256x4xbf16>, vector<4x8xbf16>, vector<256x8xf32> -> vector<256x8xf32>
    %18 = arith.addf %9, %17 : vector<256x8xf32>
    %c0_i32_12 = arith.constant 0 : i32
    %19 = arith.addi %1, %c0_i32_12 : i32
    %c0_13 = arith.constant 0 : index
    %20 = arith.index_cast %19 : i32 to index
    %c2 = arith.constant 2 : index
    %c0_14 = arith.constant 0 : index
    %21 = vector.load %arg2[%c0_13, %20, %c2, %c0_14] : memref<1x18x18x4xbf16, #tpu.memory_space<vmem>>, vector<1x16x16x4xbf16>
    %22 = vector.shape_cast %21 : vector<1x16x16x4xbf16> to vector<16x16x4xbf16>
    %23 = vector.shape_cast %22 : vector<16x16x4xbf16> to vector<256x4xbf16>
    %c2_15 = arith.constant 2 : index
    %c0_16 = arith.constant 0 : index
    %c0_17 = arith.constant 0 : index
    %24 = vector.load %arg3[%c2_15, %c0_16, %c0_17] : memref<9x4x8xbf16, #tpu.memory_space<vmem>>, vector<1x4x8xbf16>
    %25 = vector.shape_cast %24 : vector<1x4x8xbf16> to vector<4x8xbf16>
    %cst_18 = arith.constant dense<0.000000e+00> : vector<256x8xf32>
    %26 = tpu.matmul %23, %25, %cst_18 {dimension_numbers = #tpu.dot_dimension_numbers<[1], [0], [0], [1], [0, 0, 1, 1], [], []>} : vector<256x4xbf16>, vector<4x8xbf16>, vector<256x8xf32> -> vector<256x8xf32>
    %27 = arith.addf %18, %26 : vector<256x8xf32>
    %c1_i32 = arith.constant 1 : i32
    %28 = arith.addi %1, %c1_i32 : i32
    %c0_19 = arith.constant 0 : index
    %29 = arith.index_cast %28 : i32 to index
    %c0_20 = arith.constant 0 : index
    %c0_21 = arith.constant 0 : index
    %30 = vector.load %arg2[%c0_19, %29, %c0_20, %c0_21] : memref<1x18x18x4xbf16, #tpu.memory_space<vmem>>, vector<1x16x16x4xbf16>
    %31 = vector.shape_cast %30 : vector<1x16x16x4xbf16> to vector<16x16x4xbf16>
    %32 = vector.shape_cast %31 : vector<16x16x4xbf16> to vector<256x4xbf16>
    %c3 = arith.constant 3 : index
    %c0_22 = arith.constant 0 : index
    %c0_23 = arith.constant 0 : index
    %33 = vector.load %arg3[%c3, %c0_22, %c0_23] : memref<9x4x8xbf16, #tpu.memory_space<vmem>>, vector<1x4x8xbf16>
    %34 = vector.shape_cast %33 : vector<1x4x8xbf16> to vector<4x8xbf16>
    %cst_24 = arith.constant dense<0.000000e+00> : vector<256x8xf32>
    %35 = tpu.matmul %32, %34, %cst_24 {dimension_numbers = #tpu.dot_dimension_numbers<[1], [0], [0], [1], [0, 0, 1, 1], [], []>} : vector<256x4xbf16>, vector<4x8xbf16>, vector<256x8xf32> -> vector<256x8xf32>
    %36 = arith.addf %27, %35 : vector<256x8xf32>
    %c1_i32_25 = arith.constant 1 : i32
    %37 = arith.addi %1, %c1_i32_25 : i32
    %c0_26 = arith.constant 0 : index
    %38 = arith.index_cast %37 : i32 to index
    %c1_27 = arith.constant 1 : index
    %c0_28 = arith.constant 0 : index
    %39 = vector.load %arg2[%c0_26, %38, %c1_27, %c0_28] : memref<1x18x18x4xbf16, #tpu.memory_space<vmem>>, vector<1x16x16x4xbf16>
    %40 = vector.shape_cast %39 : vector<1x16x16x4xbf16> to vector<16x16x4xbf16>
    %41 = vector.shape_cast %40 : vector<16x16x4xbf16> to vector<256x4xbf16>
    %c4 = arith.constant 4 : index
    %c0_29 = arith.constant 0 : index
    %c0_30 = arith.constant 0 : index
    %42 = vector.load %arg3[%c4, %c0_29, %c0_30] : memref<9x4x8xbf16, #tpu.memory_space<vmem>>, vector<1x4x8xbf16>
    %43 = vector.shape_cast %42 : vector<1x4x8xbf16> to vector<4x8xbf16>
    %cst_31 = arith.constant dense<0.000000e+00> : vector<256x8xf32>
    %44 = tpu.matmul %41, %43, %cst_31 {dimension_numbers = #tpu.dot_dimension_numbers<[1], [0], [0], [1], [0, 0, 1, 1], [], []>} : vector<256x4xbf16>, vector<4x8xbf16>, vector<256x8xf32> -> vector<256x8xf32>
    %45 = arith.addf %36, %44 : vector<256x8xf32>
    %c1_i32_32 = arith.constant 1 : i32
    %46 = arith.addi %1, %c1_i32_32 : i32
    %c0_33 = arith.constant 0 : index
    %47 = arith.index_cast %46 : i32 to index
    %c2_34 = arith.constant 2 : index
    %c0_35 = arith.constant 0 : index
    %48 = vector.load %arg2[%c0_33, %47, %c2_34, %c0_35] : memref<1x18x18x4xbf16, #tpu.memory_space<vmem>>, vector<1x16x16x4xbf16>
    %49 = vector.shape_cast %48 : vector<1x16x16x4xbf16> to vector<16x16x4xbf16>
    %50 = vector.shape_cast %49 : vector<16x16x4xbf16> to vector<256x4xbf16>
    %c5 = arith.constant 5 : index
    %c0_36 = arith.constant 0 : index
    %c0_37 = arith.constant 0 : index
    %51 = vector.load %arg3[%c5, %c0_36, %c0_37] : memref<9x4x8xbf16, #tpu.memory_space<vmem>>, vector<1x4x8xbf16>
    %52 = vector.shape_cast %51 : vector<1x4x8xbf16> to vector<4x8xbf16>
    %cst_38 = arith.constant dense<0.000000e+00> : vector<256x8xf32>
    %53 = tpu.matmul %50, %52, %cst_38 {dimension_numbers = #tpu.dot_dimension_numbers<[1], [0], [0], [1], [0, 0, 1, 1], [], []>} : vector<256x4xbf16>, vector<4x8xbf16>, vector<256x8xf32> -> vector<256x8xf32>
    %54 = arith.addf %45, %53 : vector<256x8xf32>
    %c2_i32 = arith.constant 2 : i32
    %55 = arith.addi %1, %c2_i32 : i32
    %c0_39 = arith.constant 0 : index
    %56 = arith.index_cast %55 : i32 to index
    %c0_40 = arith.constant 0 : index
    %c0_41 = arith.constant 0 : index
    %57 = vector.load %arg2[%c0_39, %56, %c0_40, %c0_41] : memref<1x18x18x4xbf16, #tpu.memory_space<vmem>>, vector<1x16x16x4xbf16>
    %58 = vector.shape_cast %57 : vector<1x16x16x4xbf16> to vector<16x16x4xbf16>
    %59 = vector.shape_cast %58 : vector<16x16x4xbf16> to vector<256x4xbf16>
    %c6 = arith.constant 6 : index
    %c0_42 = arith.constant 0 : index
    %c0_43 = arith.constant 0 : index
    %60 = vector.load %arg3[%c6, %c0_42, %c0_43] : memref<9x4x8xbf16, #tpu.memory_space<vmem>>, vector<1x4x8xbf16>
    %61 = vector.shape_cast %60 : vector<1x4x8xbf16> to vector<4x8xbf16>
    %cst_44 = arith.constant dense<0.000000e+00> : vector<256x8xf32>
    %62 = tpu.matmul %59, %61, %cst_44 {dimension_numbers = #tpu.dot_dimension_numbers<[1], [0], [0], [1], [0, 0, 1, 1], [], []>} : vector<256x4xbf16>, vector<4x8xbf16>, vector<256x8xf32> -> vector<256x8xf32>
    %63 = arith.addf %54, %62 : vector<256x8xf32>
    %c2_i32_45 = arith.constant 2 : i32
    %64 = arith.addi %1, %c2_i32_45 : i32
    %c0_46 = arith.constant 0 : index
    %65 = arith.index_cast %64 : i32 to index
    %c1_47 = arith.constant 1 : index
    %c0_48 = arith.constant 0 : index
    %66 = vector.load %arg2[%c0_46, %65, %c1_47, %c0_48] : memref<1x18x18x4xbf16, #tpu.memory_space<vmem>>, vector<1x16x16x4xbf16>
    %67 = vector.shape_cast %66 : vector<1x16x16x4xbf16> to vector<16x16x4xbf16>
    %68 = vector.shape_cast %67 : vector<16x16x4xbf16> to vector<256x4xbf16>
    %c7 = arith.constant 7 : index
    %c0_49 = arith.constant 0 : index
    %c0_50 = arith.constant 0 : index
    %69 = vector.load %arg3[%c7, %c0_49, %c0_50] : memref<9x4x8xbf16, #tpu.memory_space<vmem>>, vector<1x4x8xbf16>
    %70 = vector.shape_cast %69 : vector<1x4x8xbf16> to vector<4x8xbf16>
    %cst_51 = arith.constant dense<0.000000e+00> : vector<256x8xf32>
    %71 = tpu.matmul %68, %70, %cst_51 {dimension_numbers = #tpu.dot_dimension_numbers<[1], [0], [0], [1], [0, 0, 1, 1], [], []>} : vector<256x4xbf16>, vector<4x8xbf16>, vector<256x8xf32> -> vector<256x8xf32>
    %72 = arith.addf %63, %71 : vector<256x8xf32>
    %c2_i32_52 = arith.constant 2 : i32
    %73 = arith.addi %1, %c2_i32_52 : i32
    %c0_53 = arith.constant 0 : index
    %74 = arith.index_cast %73 : i32 to index
    %c2_54 = arith.constant 2 : index
    %c0_55 = arith.constant 0 : index
    %75 = vector.load %arg2[%c0_53, %74, %c2_54, %c0_55] : memref<1x18x18x4xbf16, #tpu.memory_space<vmem>>, vector<1x16x16x4xbf16>
    %76 = vector.shape_cast %75 : vector<1x16x16x4xbf16> to vector<16x16x4xbf16>
    %77 = vector.shape_cast %76 : vector<16x16x4xbf16> to vector<256x4xbf16>
    %c8 = arith.constant 8 : index
    %c0_56 = arith.constant 0 : index
    %c0_57 = arith.constant 0 : index
    %78 = vector.load %arg3[%c8, %c0_56, %c0_57] : memref<9x4x8xbf16, #tpu.memory_space<vmem>>, vector<1x4x8xbf16>
    %79 = vector.shape_cast %78 : vector<1x4x8xbf16> to vector<4x8xbf16>
    %cst_58 = arith.constant dense<0.000000e+00> : vector<256x8xf32>
    %80 = tpu.matmul %77, %79, %cst_58 {dimension_numbers = #tpu.dot_dimension_numbers<[1], [0], [0], [1], [0, 0, 1, 1], [], []>} : vector<256x4xbf16>, vector<4x8xbf16>, vector<256x8xf32> -> vector<256x8xf32>
    %81 = arith.addf %72, %80 : vector<256x8xf32>
    %c0_59 = arith.constant 0 : index
    %c0_60 = arith.constant 0 : index
    %82 = vector.load %arg4[%c0_59, %c0_60] : memref<1x8xf32, #tpu.memory_space<vmem>>, vector<1x8xf32>
    %83 = vector.broadcast %82 : vector<1x8xf32> to vector<256x8xf32>
    %84 = arith.addf %81, %83 : vector<256x8xf32>
    %cst_61 = arith.constant 0.000000e+00 : f32
    %85 = vector.broadcast %cst_61 : f32 to vector<256x8xf32>
    %86 = arith.maximumf %84, %85 : vector<256x8xf32>
    %87 = vector.shape_cast %86 : vector<256x8xf32> to vector<16x16x8xf32>
    %c0_62 = arith.constant 0 : index
    %c0_63 = arith.constant 0 : index
    %c0_64 = arith.constant 0 : index
    %c0_65 = arith.constant 0 : index
    %88 = vector.load %arg5[%c0_62, %c0_63, %c0_64, %c0_65] : memref<1x16x16x8xf32, #tpu.memory_space<vmem>>, vector<1x16x16x8xf32>
    %89 = vector.shape_cast %88 : vector<1x16x16x8xf32> to vector<16x16x8xf32>
    %90 = vector.shape_cast %87 : vector<16x16x8xf32> to vector<1x16x16x8xf32>
    tpu.vector_store %arg5[%c0_62, %c0_63, %c0_64, %c0_65], %90 {strides = array<i32>} : memref<1x16x16x8xf32, #tpu.memory_space<vmem>>, vector<1x16x16x8xf32>,
    return
  }
  func.func @transform_0(%arg0: i32, %arg1: i32) -> (i32, i32, i32, i32) {
    %c0_i32 = arith.constant 0 : i32
    %c0_i32_0 = arith.constant 0 : i32
    %c0_i32_1 = arith.constant 0 : i32
    %c0_i32_2 = arith.constant 0 : i32
    return %arg0, %c0_i32, %c0_i32_0, %c0_i32_1 : i32, i32, i32, i32
  }
  func.func @transform_1(%arg0: i32, %arg1: i32) -> (i32, i32, i32) {
    %c0_i32 = arith.constant 0 : i32
    %c0_i32_0 = arith.constant 0 : i32
    %c0_i32_1 = arith.constant 0 : i32
    %c0_i32_2 = arith.constant 0 : i32
    return %c0_i32, %c0_i32_0, %c0_i32_1 : i32, i32, i32
  }
  func.func @transform_2(%arg0: i32, %arg1: i32) -> (i32, i32) {
    %c0_i32 = arith.constant 0 : i32
    %c0_i32_0 = arith.constant 0 : i32
    %c0_i32_1 = arith.constant 0 : i32
    return %c0_i32, %c0_i32_0 : i32, i32
  }
  func.func @transform_3(%arg0: i32, %arg1: i32) -> (i32, i32, i32, i32) {
    %c0_i32 = arith.constant 0 : i32
    %c0_i32_0 = arith.constant 0 : i32
    %c0_i32_1 = arith.constant 0 : i32
    return %arg0, %arg1, %c0_i32, %c0_i32_0 : i32, i32, i32, i32
  }
}

</mosaic_0001>

<bundles_post_ra>
// kernel: tpu_custom_call.1
= control target key start
LH: loop header
LB: loop body
LE: loop exit
PB: predicated region body
PF: predicated region fallthrough
CT: control target
= control target key end

     0   :  { %s6416_s12 = smov 0   ;;  %s6418_s13 = smov 0   ;;  %s8265_s0 = inlined_call_operand.vmem [shape: bf16[2,18,18,4], index: 0, kind: input, shape index: {}]   ;;  %s8266_s1 = inlined_call_operand.vmem [shape: bf16[9,4,8], index: 1, kind: input, shape index: {}]   ;;  %s8267_s2 = inlined_call_operand.vmem [shape: f32[1,8], index: 2, kind: input, shape index: {}]   ;;  %s8268_s3 = inlined_call_operand.vmem [shape: f32[2,16,16,8], index: 3, kind: output, shape index: {}]  }
   0x1   :  { %s6420_s14 = smov 0  }
   0x2 LB: > { %s25_s15 = sadd.s32 1, %s6390_s13  ;;  %p4971_p0 = scmp.ge.s32.totalorder %s6394_s14, 1  ;;  %s6394_s14 = sphi %s6420_s14, %s13_s14   ;;  %s6390_s13 = sphi %s6418_s13, %s8337_s13   ;;  %s6386_s12 = sphi %s6416_s12, %s8336_s12  }
   0x3   : > { %p27_p1 = scmp.ge.s32.totalorder %s25_s15, 2  ;;  %p151_p2 = scmp.lt.s32.totalorder %s6394_s14, 3 }
   0x5   : > { %s8339_s15 = smov (%p27_p1, %s25_s15), 0  ;;  %p152_p3 = pnand %p4971_p0, %p151_p2 }
   0x7   : > { %155 = sbr.rel (%p152_p3) target bundleno = 588 (0x24c), region = 32 }
   0xe   : > { %v4975_v0 = vld [vmem:[%s8266_s1 + $0x2] sm:$0x3]  ;;  %vm736_vm0 = vcmask 1041408   ;;  %v5202_v1 = vld [vmem:[%s8266_s1 + $0x8] sm:$0x3]  ;;  %p180_p4 = scmp.lt.s32.totalorder %s6386_s12, 1 }
   0xf   : > { %6232 = vmatprep.subr.msk.bf16.mxu1 %vm736_vm0, %v4975_v0  ;;  %6236 = vmatprep.subr.msk.bf16.mxu0 %vm736_vm0, %v5202_v1  ;;  %v738_v2 = vsel %vm736_vm0, %v4975_v0, 0  ;;  %v6444_v3 = vsel %vm736_vm0, %v5202_v1, 0  ;;  %v233_v4 = vld [vmem:[%s8266_s1] sm:$0x3]  ;;  %v5267_v5 = vld [vmem:[%s8266_s1 + $0xa] sm:$0x3] }
  0x10   : > { %8282 = vst [vmem:[#allocation2_spill] sm:$0xff] %v6444_v3  ;;  %5669 = vmatpush3.bf16.msra.mxu1 %v738_v2  ;;  %5805 = vmatpush3.bf16.msra.mxu0 %v6444_v3  ;;  %s8341_s12 = smov (!%p180_p4, %s6386_s12), 1  ;;  %vm250_vm1 = vsmask.f32 3328  ;;  %vm251_vm2 = vsmask.f32 7440 }
  0x11   : > { %6233 = vmatprep.subr.msk.bf16.mxu1 %vm736_vm0, %v233_v4  ;;  %6238 = vmatprep.subr.msk.bf16.mxu0 %vm736_vm0, %v5267_v5  ;;  %s6242_s24 = smul.u32 216, %s8341_s12  ;;  %vm687_vm3 = vcmask 31744   ;;  %v6474_v17 = vsel %vm736_vm0, %v233_v4, 0  ;;  %v6480_v26 = vld [vmem:[%s8266_s1 + $0xc] sm:$0x3]  ;;  %vm6487_vm4 = vmor %vm250_vm1, %vm251_vm2  ;;  %v6493_v37 = vsel %vm736_vm0, %v5267_v5, 0 }
  0x12   : > { %v6497_v41 = vsel %vm736_vm0, %v6480_v26, 0  ;;  %vm1241_vm5 = vcmask 1042432   ;;  %vm1242_vm6 = vcmask 1046532   ;;  %s5514_s21 = sshll.u32 %s8341_s12, 8  ;;  %vm4837_vm8 = vcmask 64512  }
  0x13   : > { %s6461_s27 = scalar_lea.vmem %s8265_s0, %s6242_s24  ;;  %vm6713_vm7 = vmor %vm1241_vm5, %vm1242_vm6  ;;  %s8155_s24 = scalar_lea.vmem %s8268_s3, %s5514_s21 }
  0x14   : > { %v201_v6 = vld [vmem:[%s6461_s27] sm:$0xf]  ;;  %v202_v7 = vld [vmem:[%s6461_s27 + $0x4] sm:$0xf]  ;;  %v234_v8 = vld [vmem:[%s6461_s27 + $0x8] sm:$0x1] }
  0x15   : > { %v254_v9 = vshrl.u32 %v201_v6, 16  ;;  %v257_v10 = vshll.u32 %v201_v6, 16  ;;  %v263_v11 = vshll.u32 %v202_v7, 16  ;;  %v267_v12 = vshrl.u32 %v202_v7, 16  ;;  %v5154_v13 = vld [vmem:[%s6461_s27 + $0xc] sm:$0xf] }
  0x16   : > { %v273_v14 = vshll.u32 %v234_v8, 16  ;;  %v6468_v15 = vld [vmem:[%s6461_s27 + $0x10] sm:$0xf]  ;;  %v6471_v16 = vld [vmem:[%s6461_s27 + $0x14] sm:$0x1]  ;;  %v2061_v23 = vshrl.u32 %v5154_v13, 16 }
  0x17   : > { %v256_v18 = vrot.slane %v254_v9, 4  ;;  %v259_v19 = vrot.slane %v257_v10, 5  ;;  %v265_v20 = vrot.slane %v263_v11, 5  ;;  %v269_v21 = vrot.slane %v267_v12, 4  ;;  %v203_v31 = vld [vmem:[%s6461_s27 + $0xc] sm:$0xf] }
  0x18   : > { %v275_v22 = vrot.slane %v273_v14, 5  ;;  %v2064_v24 = vshll.u32 %v5154_v13, 16  ;;  %v2070_v25 = vshll.u32 %v6468_v15, 16  ;;  %v2074_v29 = vshrl.u32 %v6468_v15, 16  ;;  %v204_v36 = vld [vmem:[%s6461_s27 + $0x10] sm:$0xf] }
  0x19   : > { %v260_v27 = vor.u32 %v259_v19, %v256_v18  ;;  %v270_v28 = vor.u32 %v269_v21, %v265_v20  ;;  %v2080_v30 = vshll.u32 %v6471_v16, 16  ;;  %v2063_v33 = vrot.slane %v2061_v23, 4  ;;  %v235_v44 = vld [vmem:[%s6461_s27 + $0x14] sm:$0x1]  ;;  %v5157_v55 = vld [vmem:[%s6461_s27 + $0x18] sm:$0xf] }
  0x1a   : > { %v2066_v34 = vrot.slane %v2064_v24, 5  ;;  %v2072_v35 = vrot.slane %v2070_v25, 5  ;;  %v2076_v40 = vrot.slane %v2074_v29, 4  ;;  %v278_v45 = vshrl.u32 %v203_v31, 16  ;;  %v6506_v60 = vld [vmem:[%s6461_s27 + $0x1c] sm:$0xf] }
  0x1b   : > { %v261_v38 = vrot.slane %v260_v27, 4  ;;  %v271_v39 = vrot.slane %v270_v28, 4  ;;  %v2082_v43 = vrot.slane %v2080_v30, 5  ;;  %v281_v46 = vshll.u32 %v203_v31, 16  ;;  %v6514_v1 = vld [vmem:[%s6461_s27 + $0x20] sm:$0x1] }
  0x1c   : > { %v2067_v42 = vor.u32 %v2066_v34, %v2063_v33  ;;  %v2077_v49 = vor.u32 %v2076_v40, %v2072_v35  ;;  %v287_v50 = vshll.u32 %v204_v36, 16  ;;  %v280_v53 = vrot.slane %v278_v45, 4  ;;  %v205_v18 = vld [vmem:[%s6461_s27 + $0x18] sm:$0xf]  ;;  %v206_v23 = vld [vmem:[%s6461_s27 + $0x1c] sm:$0xf] }
  0x1d   : > { %v266_v47 = vsel %vm6487_vm4, %v261_v38, %v265_v20  ;;  %v276_v48 = vsel %vm6487_vm4, %v271_v39, %v275_v22  ;;  %v283_v54 = vrot.slane %v281_v46, 5  ;;  %v291_v58 = vshrl.u32 %v204_v36, 16  ;;  %v236_v31 = vld [vmem:[%s6461_s27 + $0x20] sm:$0x1]  ;;  %v5160_v40 = vld [vmem:[%s6461_s27 + $0x24] sm:$0xf] }
  0x1e   : > { %v4976_v51 = vcombine.low %v266_v47, %v276_v48  ;;  %v2068_v52 = vrot.slane %v2067_v42, 4  ;;  %v2078_v56 = vrot.slane %v2077_v49, 4  ;;  %v289_v57 = vrot.slane %v287_v50, 5  ;;  %v6537_v46 = vld [vmem:[%s6461_s27 + $0x28] sm:$0xf] }
  0x1f   : > { %v297_v59 = vshll.u32 %v235_v44, 16  ;;  %v2804_v62 = vrot.slane %v6468_v15, 5  ;;  %v2807_v63 = vrot.slane %v6471_v16, 5  ;;  %v284_v0 = vor.u32 %v283_v54, %v280_v53  ;;  %v6546_v54 = vld [vmem:[%s6461_s27 + $0x2c] sm:$0x1] }
  0x20   : > { %5670 = vmatprep.mubr.msk.bf16.mxu1 %vm687_vm3, %v4976_v51  ;;  %v2073_v61 = vsel %vm6487_vm4, %v2068_v52, %v2072_v35  ;;  %v2083_v2 = vsel %vm6487_vm4, %v2078_v56, %v2082_v43  ;;  %v293_v4 = vrot.slane %v291_v58, 4  ;;  %v2085_v6 = vshrl.u32 %v5157_v55, 16  ;;  %v5056_v51 = vld [vmem:[%s8266_s1 + $0x4] sm:$0x3]  ;;  %v6746_v16 = vld [vmem:[%s6461_s27 + $0x7c] sm:$0xf] }
  0x21   : > { %v299_v5 = vrot.slane %v297_v59, 5  ;;  %v5203_v7 = vcombine.low %v2073_v61, %v2083_v2  ;;  %v285_v8 = vrot.slane %v284_v0, 4  ;;  %v2088_v9 = vshll.u32 %v5157_v55, 16  ;;  %v207_v0 = vld [vmem:[%s6461_s27 + $0x24] sm:$0xf] }
  0x22   : > { %v2094_v10 = vshll.u32 %v6506_v60, 16  ;;  %v294_v11 = vor.u32 %v293_v4, %v289_v57  ;;  %v2087_v12 = vrot.slane %v2085_v6, 4  ;;  %v2098_v13 = vshrl.u32 %v6506_v60, 16 }
  0x23   : > { %v2104_v14 = vshll.u32 %v6514_v1, 16  ;;  %5806 = vmatprep.mubr.msk.bf16.mxu0 %vm687_vm3, %v5203_v7  ;;  %v290_v19 = vsel %vm6487_vm4, %v285_v8, %v289_v57  ;;  %v2090_v20 = vrot.slane %v2088_v9, 5  ;;  %v2811_v22 = vrot.slane %v6506_v60, 5  ;;  %v208_v7 = vld [vmem:[%s6461_s27 + $0x28] sm:$0xf] }
  0x24   : > { %v2096_v21 = vrot.slane %v2094_v10, 5  ;;  %v295_v24 = vrot.slane %v294_v11, 4  ;;  %v2100_v25 = vrot.slane %v2098_v13, 4  ;;  %v2814_v28 = vrot.slane %v6514_v1, 5  ;;  %v237_v13 = vld [vmem:[%s6461_s27 + $0x2c] sm:$0x1] }
  0x25   : > { %v2106_v27 = vrot.slane %v2104_v14, 5  ;;  %v2091_v29 = vor.u32 %v2090_v20, %v2087_v12  ;;  %v6530_v30 = vrot.slane %v2811_v22, 4  ;;  %v302_v33 = vshrl.u32 %v205_v18, 16 }
  0x26   : > { %v305_v34 = vshll.u32 %v205_v18, 16  ;;  %v300_v35 = vsel %vm6487_vm4, %v295_v24, %v299_v5  ;;  %v2101_v36 = vor.u32 %v2100_v25, %v2096_v21  ;;  %v311_v38 = vshll.u32 %v206_v23, 16  ;;  %v5163_v24 = vld [vmem:[%s6461_s27 + $0x30] sm:$0xf] }
  0x27   : > { %v315_v39 = vshrl.u32 %v206_v23, 16  ;;  %v4977_v42 = vcombine.low %v290_v19, %v300_v35  ;;  %v2092_v43 = vrot.slane %v2091_v29, 4  ;;  %v304_v44 = vrot.slane %v302_v33, 4  ;;  %v6566_v33 = vld [vmem:[%s6461_s27 + $0x34] sm:$0xf] }
  0x28   : > { %v307_v45 = vrot.slane %v305_v34, 5  ;;  %v2102_v47 = vrot.slane %v2101_v36, 4  ;;  %v313_v48 = vrot.slane %v311_v38, 5  ;;  %v321_v50 = vshll.u32 %v236_v31, 16 }
  0x29   : > { %v317_v49 = vrot.slane %v315_v39, 4  ;;  %5671 = vmatmul.mubr.msk.bf16.vlgmr.msra.gmra.mrb[0].mxu1 %vm687_vm3, %v4977_v42  ;;  %v2097_v52 = vsel %vm6487_vm4, %v2092_v43, %v2096_v21  ;;  %v2109_v55 = vshrl.u32 %v5160_v40, 16  ;;  %v2112_v56 = vshll.u32 %v5160_v40, 16  ;;  %v6574_v40 = vld [vmem:[%s6461_s27 + $0x38] sm:$0x1] }
  0x2a   : > { %v308_v53 = vor.u32 %v307_v45, %v304_v44  ;;  %5703 = vmatpush3.bf16.msra.mxu1 %v6474_v17  ;;  %v2107_v57 = vsel %vm6487_vm4, %v2102_v47, %v2106_v27  ;;  %v323_v59 = vrot.slane %v321_v50, 5  ;;  %v2118_v61 = vshll.u32 %v6537_v46, 16 }
  0x2b   : > { %v318_v58 = vor.u32 %v317_v49, %v313_v48  ;;  %v5204_v2 = vcombine.low %v2097_v52, %v2107_v57  ;;  %v2111_v5 = vrot.slane %v2109_v55, 4  ;;  %v2114_v6 = vrot.slane %v2112_v56, 5  ;;  %6234 = vmatprep.subr.msk.bf16.mxu1 %vm736_vm0, %v5056_v51  ;;  %v209_v52 = vld [vmem:[%s6461_s27 + $0x30] sm:$0xf] }
  0x2c   : > { %v309_v4 = vrot.slane %v308_v53, 4  ;;  %v2120_v9 = vrot.slane %v2118_v61, 5  ;;  %v2122_v17 = vshrl.u32 %v6537_v46, 16  ;;  %v2128_v10 = vshll.u32 %v6546_v54, 16 }
  0x2d   : > { %v319_v8 = vrot.slane %v318_v58, 4  ;;  %5807 = vmatmul.mubr.msk.bf16.vlgmr.msra.gmra.mrb[0].mxu0 %vm687_vm3, %v5204_v2  ;;  %v2115_v12 = vor.u32 %v2114_v6, %v2111_v5  ;;  %v326_v14 = vshrl.u32 %v207_v0, 16  ;;  %v329_v18 = vshll.u32 %v207_v0, 16  ;;  %v210_v58 = vld [vmem:[%s6461_s27 + $0x34] sm:$0xf] }
  0x2e   : > { %v314_v11 = vsel %vm6487_vm4, %v309_v4, %v313_v48  ;;  %5839 = vmatpush3.bf16.msra.mxu0 %v6493_v37  ;;  %v2124_v20 = vrot.slane %v2122_v17, 4  ;;  %v2130_v21 = vrot.slane %v2128_v10, 5  ;;  %v335_v23 = vshll.u32 %v208_v7, 16  ;;  %v238_v4 = vld [vmem:[%s6461_s27 + $0x38] sm:$0x1] }
  0x2f   : > { %v324_v19 = vsel %vm6487_vm4, %v319_v8, %v323_v59  ;;  %v2116_v27 = vrot.slane %v2115_v12, 4  ;;  %v328_v29 = vrot.slane %v326_v14, 4  ;;  %v331_v31 = vrot.slane %v329_v18, 5  ;;  %6239 = vmatprep.subr.msk.bf16.mxu0 %vm736_vm0, %v6480_v26  ;;  %v5166_v12 = vld [vmem:[%s6461_s27 + $0x3c] sm:$0xf] }
  0x30   : > { %v4978_v25 = vcombine.low %v314_v11, %v324_v19  ;;  %v2125_v34 = vor.u32 %v2124_v20, %v2120_v9  ;;  %v337_v35 = vrot.slane %v335_v23, 5  ;;  %v339_v37 = vshrl.u32 %v208_v7, 16  ;;  %v6591_v20 = vld [vmem:[%s6461_s27 + $0x40] sm:$0xf] }
  0x31   : > { %v345_v36 = vshll.u32 %v237_v13, 16  ;;  %v2121_v38 = vsel %vm6487_vm4, %v2116_v27, %v2120_v9  ;;  %v332_v39 = vor.u32 %v331_v31, %v328_v29  ;;  %v2133_v42 = vshrl.u32 %v5163_v24, 16 }
  0x32   : > { %5674 = vmatprep.mubr.msk.bf16.mxu1 %vm687_vm3, %v4978_v25  ;;  %v2136_v43 = vshll.u32 %v5163_v24, 16  ;;  %v2126_v44 = vrot.slane %v2125_v34, 4  ;;  %v341_v45 = vrot.slane %v339_v37, 4  ;;  %v2142_v26 = vshll.u32 %v6566_v33, 16  ;;  %v6596_v34 = vld [vmem:[%s6461_s27 + $0x44] sm:$0x1] }
  0x33   : > { %v347_v47 = vrot.slane %v345_v36, 5  ;;  %v333_v48 = vrot.slane %v332_v39, 4  ;;  %v2135_v49 = vrot.slane %v2133_v42, 4  ;;  %v2146_v51 = vshrl.u32 %v6566_v33, 16  ;;  %v211_v42 = vld [vmem:[%s6461_s27 + $0x3c] sm:$0xf] }
  0x34   : > { %v2138_v50 = vrot.slane %v2136_v43, 5  ;;  %v2131_v53 = vsel %vm6487_vm4, %v2126_v44, %v2130_v21  ;;  %v342_v55 = vor.u32 %v341_v45, %v337_v35  ;;  %v2144_v56 = vrot.slane %v2142_v26, 5  ;;  %v212_v26 = vld [vmem:[%s6461_s27 + $0x40] sm:$0xf] }
  0x35   : > { %v2152_v57 = vshll.u32 %v6574_v40, 16  ;;  %v5205_v59 = vcombine.low %v2121_v38, %v2131_v53  ;;  %v338_v61 = vsel %vm6487_vm4, %v333_v48, %v337_v35  ;;  %v2148_v2 = vrot.slane %v2146_v51, 4 }
  0x36   : > { %v2139_v0 = vor.u32 %v2138_v50, %v2135_v49  ;;  %v343_v5 = vrot.slane %v342_v55, 4  ;;  %v350_v7 = vshrl.u32 %v209_v52, 16  ;;  %v353_v8 = vshll.u32 %v209_v52, 16 }
  0x37   : > { %v2154_v6 = vrot.slane %v2152_v57, 5  ;;  %5810 = vmatprep.mubr.msk.bf16.mxu0 %vm687_vm3, %v5205_v59  ;;  %v2149_v17 = vor.u32 %v2148_v2, %v2144_v56  ;;  %v359_v10 = vshll.u32 %v210_v58, 16  ;;  %v363_v11 = vshrl.u32 %v210_v58, 16  ;;  %v5169_v2 = vld [vmem:[%s6461_s27 + $0x48] sm:$0xf] }
  0x38   : > { %v2140_v9 = vrot.slane %v2139_v0, 4  ;;  %v348_v13 = vsel %vm6487_vm4, %v343_v5, %v347_v47  ;;  %v352_v14 = vrot.slane %v350_v7, 4  ;;  %v355_v18 = vrot.slane %v353_v8, 5  ;;  %v6614_v8 = vld [vmem:[%s6461_s27 + $0x4c] sm:$0xf] }
  0x39   : > { %v369_v19 = vshll.u32 %v238_v4, 16  ;;  %v4979_v21 = vcombine.low %v338_v61, %v348_v13  ;;  %v2150_v24 = vrot.slane %v2149_v17, 4  ;;  %v361_v25 = vrot.slane %v359_v10, 5  ;;  %v239_v61 = vld [vmem:[%s6461_s27 + $0x44] sm:$0x1] }
  0x3a   : > { %v2145_v23 = vsel %vm6487_vm4, %v2140_v9, %v2144_v56  ;;  %v356_v27 = vor.u32 %v355_v18, %v352_v14  ;;  %v365_v29 = vrot.slane %v363_v11, 4  ;;  %v2157_v35 = vshrl.u32 %v5166_v12, 16 }
  0x3b   : > { %v371_v31 = vrot.slane %v369_v19, 5  ;;  %5675 = vmatmul.mubr.msk.bf16.gmra.mrb[4].mxu1 %vm687_vm3, %v4979_v21  ;;  %v2155_v37 = vsel %vm6487_vm4, %v2150_v24, %v2154_v6  ;;  %v2160_v36 = vshll.u32 %v5166_v12, 16  ;;  %v2166_v38 = vshll.u32 %v6591_v20, 16 }
  0x3c   : > { %v2170_v39 = vshrl.u32 %v6591_v20, 16  ;;  %v5206_v43 = vcombine.low %v2145_v23, %v2155_v37  ;;  %v357_v44 = vrot.slane %v356_v27, 4  ;;  %v366_v45 = vor.u32 %v365_v29, %v361_v25  ;;  %v6622_v23 = vld [vmem:[%s6461_s27 + $0x50] sm:$0x1]  ;;  %v6626_v27 = vld [vmem:[%s6461_s27 + $0x48] sm:$0xf] }
  0x3d   : > { %v2159_v47 = vrot.slane %v2157_v35, 4  ;;  %v2162_v48 = vrot.slane %v2160_v36, 5  ;;  %v2168_v49 = vrot.slane %v2166_v38, 5  ;;  %v2176_v51 = vshll.u32 %v6596_v34, 16  ;;  %v6629_v36 = vld [vmem:[%s6461_s27 + $0x4c] sm:$0xf] }
  0x3e   : > { %v2172_v50 = vrot.slane %v2170_v39, 4  ;;  %5811 = vmatmul.mubr.msk.bf16.gmra.mrb[4].mxu0 %vm687_vm3, %v5206_v43  ;;  %v362_v52 = vsel %vm6487_vm4, %v357_v44, %v361_v25  ;;  %v367_v53 = vrot.slane %v366_v45, 4  ;;  %v374_v55 = vshrl.u32 %v211_v42, 16 }
  0x3f   : > { %v377_v56 = vshll.u32 %v211_v42, 16  ;;  %v2163_v57 = vor.u32 %v2162_v48, %v2159_v47  ;;  %v2178_v59 = vrot.slane %v2176_v51, 5  ;;  %v383_v0 = vshll.u32 %v212_v26, 16 }
  0x40   : > { %v2173_v58 = vor.u32 %v2172_v50, %v2168_v49  ;;  %v372_v4 = vsel %vm6487_vm4, %v367_v53, %v371_v31  ;;  %v376_v5 = vrot.slane %v374_v55, 4  ;;  %v387_v7 = vshrl.u32 %v212_v26, 16  ;;  %v240_v26 = vld [vmem:[%s6461_s27 + $0x50] sm:$0x1]  ;;  %v5172_v53 = vld [vmem:[%s6461_s27 + $0x54] sm:$0xf] }
  0x41   : > { %v379_v6 = vrot.slane %v377_v56, 5  ;;  %v4980_v9 = vcombine.low %v362_v52, %v372_v4  ;;  %v2164_v17 = vrot.slane %v2163_v57, 4  ;;  %v385_v11 = vrot.slane %v383_v0, 5  ;;  %v6645_v4 = vld [vmem:[%s6461_s27 + $0x58] sm:$0xf] }
  0x42   : > { %v2174_v10 = vrot.slane %v2173_v58, 4  ;;  %v389_v13 = vrot.slane %v387_v7, 4  ;;  %v393_v14 = vshll.u32 %v239_v61, 16  ;;  %v2181_v18 = vshrl.u32 %v5169_v2, 16 }
  0x43   : > { %v380_v12 = vor.u32 %v379_v6, %v376_v5  ;;  %5678 = vmatprep.mubr.msk.bf16.mxu1 %vm687_vm3, %v4980_v9  ;;  %v2169_v19 = vsel %vm6487_vm4, %v2164_v17, %v2168_v49  ;;  %v2184_v24 = vshll.u32 %v5169_v2, 16  ;;  %v2190_v25 = vshll.u32 %v6614_v8, 16 }
  0x44   : > { %v2179_v21 = vsel %vm6487_vm4, %v2174_v10, %v2178_v59  ;;  %v390_v35 = vor.u32 %v389_v13, %v385_v11  ;;  %v395_v37 = vrot.slane %v393_v14, 5  ;;  %v2183_v38 = vrot.slane %v2181_v18, 4 }
  0x45   : > { %v5207_v29 = vcombine.low %v2169_v19, %v2179_v21  ;;  %v381_v31 = vrot.slane %v380_v12, 4  ;;  %v2186_v39 = vrot.slane %v2184_v24, 5  ;;  %v2192_v42 = vrot.slane %v2190_v25, 5  ;;  %v6651_v12 = vld [vmem:[%s6461_s27 + $0x5c] sm:$0x1] }
  0x46   : > { %v2194_v43 = vshrl.u32 %v6614_v8, 16  ;;  %v391_v45 = vrot.slane %v390_v35, 4  ;;  %v2200_v47 = vshll.u32 %v6622_v23, 16  ;;  %v398_v48 = vshrl.u32 %v6626_v27, 16  ;;  %v6655_v24 = vld [vmem:[%s6461_s27 + $0x54] sm:$0xf] }
  0x47   : > { %5814 = vmatprep.mubr.msk.bf16.mxu0 %vm687_vm3, %v5207_v29  ;;  %v386_v44 = vsel %vm6487_vm4, %v381_v31, %v385_v11  ;;  %v2187_v49 = vor.u32 %v2186_v39, %v2183_v38  ;;  %v401_v51 = vshll.u32 %v6626_v27, 16  ;;  %v407_v52 = vshll.u32 %v6629_v36, 16 }
  0x48   : > { %v2196_v50 = vrot.slane %v2194_v43, 4  ;;  %v396_v55 = vsel %vm6487_vm4, %v391_v45, %v395_v37  ;;  %v2202_v56 = vrot.slane %v2200_v47, 5  ;;  %v400_v57 = vrot.slane %v398_v48, 4  ;;  %v6661_v37 = vld [vmem:[%s6461_s27 + $0x58] sm:$0xf] }
  0x49   : > { %v411_v58 = vshrl.u32 %v6629_v36, 16  ;;  %v4981_v59 = vcombine.low %v386_v44, %v396_v55  ;;  %v2188_v61 = vrot.slane %v2187_v49, 4  ;;  %v403_v2 = vrot.slane %v401_v51, 5 }
  0x4a   : > { %v2197_v0 = vor.u32 %v2196_v50, %v2192_v42  ;;  %v409_v5 = vrot.slane %v407_v52, 5  ;;  %v417_v7 = vshll.u32 %v240_v26, 16  ;;  %v2205_v9 = vshrl.u32 %v5172_v53, 16  ;;  %v241_v26 = vld [vmem:[%s6461_s27 + $0x5c] sm:$0x1] }
  0x4b   : > { %v413_v6 = vrot.slane %v411_v58, 4  ;;  %5679 = vmatmul.mubr.msk.bf16.gmra.mrb[8].mxu1 %vm687_vm3, %v4981_v59  ;;  %v2193_v17 = vsel %vm6487_vm4, %v2188_v61, %v2192_v42  ;;  %v404_v11 = vor.u32 %v403_v2, %v400_v57  ;;  %v2208_v13 = vshll.u32 %v5172_v53, 16  ;;  %v5175_v53 = vld [vmem:[%s6461_s27 + $0x60] sm:$0xf]  ;;  %v6675_v59 = vld [vmem:[%s6461_s27 + $0x64] sm:$0xf] }
  0x4c   : > { %v2198_v10 = vrot.slane %v2197_v0, 4  ;;  %v419_v18 = vrot.slane %v417_v7, 5  ;;  %v2207_v19 = vrot.slane %v2205_v9, 4  ;;  %v2214_v21 = vshll.u32 %v6645_v4, 16  ;;  %v6682_v9 = vld [vmem:[%s6461_s27 + $0x68] sm:$0x1] }
  0x4d   : > { %v414_v14 = vor.u32 %v413_v6, %v409_v5  ;;  %v405_v29 = vrot.slane %v404_v11, 4  ;;  %v2210_v31 = vrot.slane %v2208_v13, 5  ;;  %v2218_v35 = vshrl.u32 %v6645_v4, 16 }
  0x4e   : > { %v2203_v25 = vsel %vm6487_vm4, %v2198_v10, %v2202_v56  ;;  %v2216_v42 = vrot.slane %v2214_v21, 5  ;;  %v2224_v43 = vshll.u32 %v6651_v12, 16  ;;  %v422_v48 = vshrl.u32 %v6655_v24, 16 }
  0x4f   : > { %v5208_v38 = vcombine.low %v2193_v17, %v2203_v25  ;;  %v415_v39 = vrot.slane %v414_v14, 4  ;;  %v410_v44 = vsel %vm6487_vm4, %v405_v29, %v409_v5  ;;  %v2211_v45 = vor.u32 %v2210_v31, %v2207_v19  ;;  %v6686_v19 = vld [vmem:[%s6461_s27 + $0x60] sm:$0xf] }
  0x50   : > { %v2220_v47 = vrot.slane %v2218_v35, 4  ;;  %v2226_v50 = vrot.slane %v2224_v43, 5  ;;  %v425_v51 = vshll.u32 %v6655_v24, 16  ;;  %v431_v52 = vshll.u32 %v6661_v37, 16  ;;  %v6692_v35 = vld [vmem:[%s6461_s27 + $0x64] sm:$0xf] }
  0x51   : > { %5815 = vmatmul.mubr.msk.bf16.gmra.mrb[8].mxu0 %vm687_vm3, %v5208_v38  ;;  %v420_v49 = vsel %vm6487_vm4, %v415_v39, %v419_v18  ;;  %v2212_v56 = vrot.slane %v2211_v45, 4  ;;  %v424_v58 = vrot.slane %v422_v48, 4  ;;  %v435_v2 = vshrl.u32 %v6661_v37, 16 }
  0x52   : > { %v4982_v55 = vcombine.low %v410_v44, %v420_v49  ;;  %v2221_v57 = vor.u32 %v2220_v47, %v2216_v42  ;;  %v427_v61 = vrot.slane %v425_v51, 5  ;;  %v433_v0 = vrot.slane %v431_v52, 5 }
  0x53   : > { %v441_v5 = vshll.u32 %v241_v26, 16  ;;  %v2217_v6 = vsel %vm6487_vm4, %v2212_v56, %v2216_v42  ;;  %v2229_v17 = vshrl.u32 %v5175_v53, 16  ;;  %v2232_v10 = vshll.u32 %v5175_v53, 16 }
  0x54   : > { %5682 = vmatprep.mubr.msk.bf16.mxu1 %vm687_vm3, %v4982_v55  ;;  %v2222_v7 = vrot.slane %v2221_v57, 4  ;;  %v428_v11 = vor.u32 %v427_v61, %v424_v58  ;;  %v437_v13 = vrot.slane %v435_v2, 4  ;;  %v2238_v18 = vshll.u32 %v6675_v59, 16  ;;  %v5235_v58 = vld [vmem:[%s6461_s27 + $0xc] sm:$0xe] }
  0x55   : > { %v443_v14 = vrot.slane %v441_v5, 5  ;;  %v2231_v25 = vrot.slane %v2229_v17, 4  ;;  %v2234_v29 = vrot.slane %v2232_v10, 5  ;;  %v2242_v31 = vshrl.u32 %v6675_v59, 16 }
  0x56   : > { %v2227_v21 = vsel %vm6487_vm4, %v2222_v7, %v2226_v50  ;;  %v429_v39 = vrot.slane %v428_v11, 4  ;;  %v438_v42 = vor.u32 %v437_v13, %v433_v0  ;;  %v2240_v43 = vrot.slane %v2238_v18, 5  ;;  %v242_v50 = vld [vmem:[%s6461_s27 + $0x68] sm:$0x1] }
  0x57   : > { %v5209_v38 = vcombine.low %v2217_v6, %v2227_v21  ;;  %v2235_v44 = vor.u32 %v2234_v29, %v2231_v25  ;;  %v2244_v45 = vrot.slane %v2242_v31, 4  ;;  %v2248_v47 = vshll.u32 %v6682_v9, 16  ;;  %v6720_v29 = vld [vmem:[%s6461_s27 + $0x70] sm:$0xf] }
  0x58   : > { %v446_v26 = vshrl.u32 %v6686_v19, 16  ;;  %v434_v48 = vsel %vm6487_vm4, %v429_v39, %v433_v0  ;;  %v439_v49 = vrot.slane %v438_v42, 4  ;;  %v449_v51 = vshll.u32 %v6686_v19, 16  ;;  %v6707_v0 = vld [vmem:[%s6461_s27 + $0x6c] sm:$0xf] }
  0x59   : > { %5818 = vmatprep.mubr.msk.bf16.mxu0 %vm687_vm3, %v5209_v38  ;;  %v455_v52 = vshll.u32 %v6692_v35, 16  ;;  %v2236_v53 = vrot.slane %v2235_v44, 4  ;;  %v2245_v55 = vor.u32 %v2244_v45, %v2240_v43  ;;  %v2250_v56 = vrot.slane %v2248_v47, 5 }
  0x5a   : > { %v448_v57 = vrot.slane %v446_v26, 4  ;;  %v444_v61 = vsel %vm6487_vm4, %v439_v49, %v443_v14  ;;  %v451_v2 = vrot.slane %v449_v51, 5  ;;  %v459_v6 = vshrl.u32 %v6692_v35, 16  ;;  %v243_v26 = vld [vmem:[%s6461_s27 + $0x74] sm:$0x1] }
  0x5b   : > { %v457_v5 = vrot.slane %v455_v52, 5  ;;  %v4983_v7 = vcombine.low %v434_v48, %v444_v61  ;;  %v2241_v17 = vsel %vm6487_vm4, %v2236_v53, %v2240_v43  ;;  %v2246_v10 = vrot.slane %v2245_v55, 4  ;;  %v5236_v48 = vld [vmem:[%s6461_s27 + $0x18] sm:$0xe] }
  0x5c   : > { %v465_v11 = vshll.u32 %v242_v50, 16  ;;  %v452_v14 = vor.u32 %v451_v2, %v448_v57  ;;  %v461_v18 = vrot.slane %v459_v6, 4  ;;  %v5251_v21 = vrot.slane %v5235_v58, 9  ;;  %v6739_v53 = vld [vmem:[%s6461_s27 + $0x78] sm:$0xf] }
  0x5d   : > { %v2806_v25 = vrot.slane %v2804_v62, 4  ;;  %5683 = vmatmul.mubr.msk.bf16.gmra.mrb[12].mxu1 %vm687_vm3, %v4983_v7  ;;  %v2251_v31 = vsel %vm6487_vm4, %v2246_v10, %v2250_v56  ;;  %v470_v39 = vshrl.u32 %v6707_v0, 16  ;;  %v473_v42 = vshll.u32 %v6707_v0, 16  ;;  %v244_v57 = vld [vmem:[%s6461_s27 + $0x80] sm:$0x1] }
  0x5e   : > { %v467_v38 = vrot.slane %v465_v11, 5  ;;  %v5210_v43 = vcombine.low %v2241_v17, %v2251_v31  ;;  %v453_v44 = vrot.slane %v452_v14, 4  ;;  %v462_v45 = vor.u32 %v461_v18, %v457_v5  ;;  %v5237_v10 = vld [vmem:[%s6461_s27 + $0x24] sm:$0xe] }
  0x5f   : > { %v2805_v47 = vsel %vm6713_vm7, %v5251_v21, %v2804_v62  ;;  %v2808_v49 = vsel %vm6713_vm7, %v2806_v25, %v2807_v63  ;;  %v472_v50 = vrot.slane %v470_v39, 4  ;;  %v475_v51 = vrot.slane %v473_v42, 5  ;;  %v6765_v39 = vld [vmem:[%s6461_s27 + $0x84] sm:$0xf] }
  0x60   : > { %v479_v52 = vshll.u32 %v6720_v29, 16  ;;  %5819 = vmatmul.mubr.msk.bf16.gmra.mrb[12].mxu0 %vm687_vm3, %v5210_v43  ;;  %v458_v15 = vsel %vm6487_vm4, %v453_v44, %v457_v5  ;;  %v463_v62 = vrot.slane %v462_v45, 4  ;;  %v5268_v55 = vcombine.low %v2805_v47, %v2808_v49  ;;  %v6773_v43 = vld [vmem:[%s6461_s27 + $0x88] sm:$0xf] }
  0x61   : > { %v483_v56 = vshrl.u32 %v6720_v29, 16  ;;  %v476_v63 = vor.u32 %v475_v51, %v472_v50  ;;  %v489_v61 = vshll.u32 %v243_v26, 16  ;;  %v5252_v2 = vrot.slane %v5236_v48, 9 }
  0x62   : > { %v481_v58 = vrot.slane %v479_v52, 5  ;;  %v468_v6 = vsel %vm6487_vm4, %v463_v62, %v467_v38  ;;  %5840 = vmatprep.mubr.msk.bf16.mxu0 %vm687_vm3, %v5268_v55  ;;  %v2815_v5 = vsel %vm6713_vm7, %v6530_v30, %v2814_v28  ;;  %v494_v17 = vshrl.u32 %v6739_v53, 16  ;;  %v245_v52 = vld [vmem:[%s6461_s27 + $0x8c] sm:$0x1] }
  0x63   : > { %v485_v7 = vrot.slane %v483_v56, 4  ;;  %v4984_v11 = vcombine.low %v458_v15, %v468_v6  ;;  %v477_v14 = vrot.slane %v476_v63, 4  ;;  %v491_v18 = vrot.slane %v489_v61, 5 }
  0x64   : > { %v2812_v21 = vsel %vm6713_vm7, %v5252_v2, %v2811_v22  ;;  %v496_v38 = vrot.slane %v494_v17, 4  ;;  %v497_v1 = vshll.u32 %v6739_v53, 16  ;;  %v503_v30 = vshll.u32 %v6746_v16, 16  ;;  %v6778_v22 = vld [vmem:[%s8266_s1 + $0xe] sm:$0x3] }
  0x65   : > { %v486_v25 = vor.u32 %v485_v7, %v481_v58  ;;  %v5269_v31 = vcombine.low %v2812_v21, %v2815_v5  ;;  %5686 = vmatprep.mubr.msk.bf16.mxu1 %vm687_vm3, %v4984_v11  ;;  %v482_v28 = vsel %vm6487_vm4, %v477_v14, %v481_v58  ;;  %v507_v60 = vshrl.u32 %v6746_v16, 16  ;;  %v6797_v5 = vld [vmem:[%s6461_s27 + $0x90] sm:$0xf] }
  0x66   : > { %v513_v42 = vshll.u32 %v244_v57, 16  ;;  %v499_v45 = vrot.slane %v497_v1, 5  ;;  %v5253_v47 = vrot.slane %v5237_v10, 9  ;;  %v2818_v26 = vrot.slane %v6537_v46, 5  ;;  %v5238_v57 = vld [vmem:[%s6461_s27 + $0x30] sm:$0xe] }
  0x67   : > { %v487_v44 = vrot.slane %v486_v25, 4  ;;  %v505_v48 = vrot.slane %v503_v30, 5  ;;  %v509_v49 = vrot.slane %v507_v60, 4  ;;  %v2821_v51 = vrot.slane %v6546_v54, 5  ;;  %v6809_v30 = vld [vmem:[%s6461_s27 + $0x94] sm:$0xf] }
  0x68   : > { %v515_v50 = vrot.slane %v513_v42, 5  ;;  %5841 = vmatmul.mubr.msk.bf16.vlgmr.msra.gmra.mrb[0].mxu0 %vm687_vm3, %v5269_v31  ;;  %v500_v62 = vor.u32 %v499_v45, %v496_v38  ;;  %v2819_v55 = vsel %vm6713_vm7, %v5253_v47, %v2818_v26  ;;  %v2820_v56 = vrot.slane %v2818_v26, 4  ;;  %v246_v60 = vld [vmem:[%s6461_s27 + $0x98] sm:$0x1]  ;;  %v5239_v26 = vld [vmem:[%s6461_s27 + $0x3c] sm:$0xe] }
  0x69   : > { %v492_v15 = vsel %vm6487_vm4, %v487_v44, %v491_v18  ;;  %5873 = vmatpush3.bf16.msra.mxu0 %v6497_v41  ;;  %v510_v46 = vor.u32 %v509_v49, %v505_v48  ;;  %v518_v58 = vshrl.u32 %v6765_v39, 16  ;;  %v521_v54 = vshll.u32 %v6765_v39, 16 }
  0x6a   : > { %v4985_v63 = vcombine.low %v482_v28, %v492_v15  ;;  %v501_v61 = vrot.slane %v500_v62, 4  ;;  %v2822_v2 = vsel %vm6713_vm7, %v2820_v56, %v2821_v51  ;;  %v527_v6 = vshll.u32 %v6773_v43, 16  ;;  %6240 = vmatprep.subr.msk.bf16.mxu0 %vm736_vm0, %v6778_v22 }
  0x6b   : > { %v531_v7 = vshrl.u32 %v6773_v43, 16  ;;  %v511_v41 = vrot.slane %v510_v46, 4  ;;  %v5270_v17 = vcombine.low %v2819_v55, %v2822_v2  ;;  %v520_v10 = vrot.slane %v518_v58, 4  ;;  %v6829_v46 = vld [vmem:[%s6461_s27 + $0xa0] sm:$0xf] }
  0x6c   : > { %5687 = vmatmul.mubr.msk.bf16.gmra.mrb[16].mxu1 %vm687_vm3, %v4985_v63  ;;  %v523_v11 = vrot.slane %v521_v54, 5  ;;  %v506_v14 = vsel %vm6487_vm4, %v501_v61, %v505_v48  ;;  %v529_v18 = vrot.slane %v527_v6, 5  ;;  %v537_v25 = vshll.u32 %v245_v52, 16  ;;  %v6818_v52 = vld [vmem:[%s6461_s27 + $0x9c] sm:$0xf] }
  0x6d   : > { %v533_v21 = vrot.slane %v531_v7, 4  ;;  %v516_v31 = vsel %vm6487_vm4, %v511_v41, %v515_v50  ;;  %5844 = vmatprep.mubr.msk.bf16.mxu0 %vm687_vm3, %v5270_v17  ;;  %v5254_v1 = vrot.slane %v5238_v57, 9  ;;  %v2825_v28 = vrot.slane %v6566_v33, 5 }
  0x6e   : > { %v524_v38 = vor.u32 %v523_v11, %v520_v10  ;;  %v4986_v42 = vcombine.low %v506_v14, %v516_v31  ;;  %v539_v45 = vrot.slane %v537_v25, 5  ;;  %v2828_v47 = vrot.slane %v6574_v40, 5  ;;  %v247_v10 = vld [vmem:[%s6461_s27 + $0xa4] sm:$0x1]  ;;  %v5240_v11 = vld [vmem:[%s6461_s27 + $0x48] sm:$0xe] }
  0x6f   : > { %v534_v44 = vor.u32 %v533_v21, %v529_v18  ;;  %v2826_v49 = vsel %vm6713_vm7, %v5254_v1, %v2825_v28  ;;  %v2827_v50 = vrot.slane %v2825_v28, 4  ;;  %v542_v51 = vshrl.u32 %v6797_v5, 16 }
  0x70   : > { %v525_v48 = vrot.slane %v524_v38, 4  ;;  %5690 = vmatprep.mubr.msk.bf16.mxu1 %vm687_vm3, %v4986_v42  ;;  %v545_v15 = vshll.u32 %v6797_v5, 16  ;;  %v551_v62 = vshll.u32 %v6809_v30, 16  ;;  %v555_v40 = vshrl.u32 %v6809_v30, 16 }
  0x71   : > { %v535_v33 = vrot.slane %v534_v44, 4  ;;  %v2829_v56 = vsel %vm6713_vm7, %v2827_v50, %v2828_v47  ;;  %v544_v57 = vrot.slane %v542_v51, 4  ;;  %v561_v63 = vshll.u32 %v246_v60, 16 }
  0x72   : > { %v530_v55 = vsel %vm6487_vm4, %v525_v48, %v529_v18  ;;  %v5271_v54 = vcombine.low %v2826_v49, %v2829_v56  ;;  %v547_v61 = vrot.slane %v545_v15, 5  ;;  %v553_v2 = vrot.slane %v551_v62, 5  ;;  %v6855_v56 = vld [vmem:[%s6461_s27 + $0xac] sm:$0xf] }
  0x73   : > { %v540_v58 = vsel %vm6487_vm4, %v535_v33, %v539_v45  ;;  %v557_v7 = vrot.slane %v555_v40, 4  ;;  %v563_v41 = vrot.slane %v561_v63, 5  ;;  %v5255_v17 = vrot.slane %v5239_v26, 9  ;;  %v6850_v33 = vld [vmem:[%s6461_s27 + $0xa8] sm:$0xf] }
  0x74   : > { %v4987_v6 = vcombine.low %v530_v55, %v540_v58  ;;  %5845 = vmatmul.mubr.msk.bf16.gmra.mrb[4].mxu0 %vm687_vm3, %v5271_v54  ;;  %v548_v14 = vor.u32 %v547_v61, %v544_v57  ;;  %v2832_v18 = vrot.slane %v6591_v20, 5  ;;  %v2835_v21 = vrot.slane %v6596_v34, 5  ;;  %v248_v61 = vld [vmem:[%s6461_s27 + $0xb0] sm:$0x1] }
  0x75   : > { %v566_v25 = vshrl.u32 %v6818_v52, 16  ;;  %v558_v31 = vor.u32 %v557_v7, %v553_v2  ;;  %v569_v38 = vshll.u32 %v6818_v52, 16  ;;  %v575_v1 = vshll.u32 %v6829_v46, 16 }
  0x76   : > { %5691 = vmatmul.mubr.msk.bf16.gmra.mrb[20].mxu1 %vm687_vm3, %v4987_v6  ;;  %v579_v28 = vshrl.u32 %v6829_v46, 16  ;;  %v549_v60 = vrot.slane %v548_v14, 4  ;;  %v2833_v42 = vsel %vm6713_vm7, %v5255_v17, %v2832_v18  ;;  %v2834_v20 = vrot.slane %v2832_v18, 4  ;;  %v6870_v14 = vld [vmem:[%s6461_s27 + $0xb4] sm:$0xf] }
  0x77   : > { %v568_v44 = vrot.slane %v566_v25, 4  ;;  %v559_v34 = vrot.slane %v558_v31, 4  ;;  %v571_v45 = vrot.slane %v569_v38, 5  ;;  %v577_v47 = vrot.slane %v575_v1, 5 }
  0x78   : > { %v581_v26 = vrot.slane %v579_v28, 4  ;;  %v554_v48 = vsel %vm6487_vm4, %v549_v60, %v553_v2  ;;  %v2836_v49 = vsel %vm6713_vm7, %v2834_v20, %v2835_v21  ;;  %v585_v50 = vshll.u32 %v247_v10, 16  ;;  %v5241_v2 = vld [vmem:[%s6461_s27 + $0x54] sm:$0xe] }
  0x79   : > { %v5256_v51 = vrot.slane %v5240_v11, 9  ;;  %v564_v15 = vsel %vm6487_vm4, %v559_v34, %v563_v41  ;;  %v5272_v62 = vcombine.low %v2833_v42, %v2836_v49  ;;  %v572_v40 = vor.u32 %v571_v45, %v568_v44  ;;  %v6879_v42 = vld [vmem:[%s6461_s27 + $0xb8] sm:$0xf]  ;;  %v249_v49 = vld [vmem:[%s6461_s27 + $0xbc] sm:$0x1] }
  0x7a   : > { %v582_v55 = vor.u32 %v581_v26, %v577_v47  ;;  %v4988_v57 = vcombine.low %v554_v48, %v564_v15  ;;  %v587_v63 = vrot.slane %v585_v50, 5  ;;  %v2839_v58 = vrot.slane %v6614_v8, 5 }
  0x7b   : > { %v2842_v54 = vrot.slane %v6622_v23, 5  ;;  %5848 = vmatprep.mubr.msk.bf16.mxu0 %vm687_vm3, %v5272_v62  ;;  %v573_v6 = vrot.slane %v572_v40, 4  ;;  %v590_v41 = vshrl.u32 %v6850_v33, 16  ;;  %v593_v17 = vshll.u32 %v6850_v33, 16 }
  0x7c   : > { %v583_v7 = vrot.slane %v582_v55, 4  ;;  %5694 = vmatprep.mubr.msk.bf16.mxu1 %vm687_vm3, %v4988_v57  ;;  %v2840_v10 = vsel %vm6713_vm7, %v5256_v51, %v2839_v58  ;;  %v2841_v11 = vrot.slane %v2839_v58, 4  ;;  %v599_v8 = vshll.u32 %v6855_v56, 16  ;;  %v5242_v55 = vld [vmem:[%s6461_s27 + $0x60] sm:$0xe] }
  0x7d   : > { %v603_v23 = vshrl.u32 %v6855_v56, 16  ;;  %v578_v18 = vsel %vm6487_vm4, %v573_v6, %v577_v47  ;;  %v592_v25 = vrot.slane %v590_v41, 4  ;;  %v595_v31 = vrot.slane %v593_v17, 5  ;;  %v5243_v6 = vld [vmem:[%s6461_s27 + $0x6c] sm:$0xe] }
  0x7e   : > { %v588_v21 = vsel %vm6487_vm4, %v583_v7, %v587_v63  ;;  %v2843_v1 = vsel %vm6713_vm7, %v2841_v11, %v2842_v54  ;;  %v601_v28 = vrot.slane %v599_v8, 5  ;;  %v609_v34 = vshll.u32 %v248_v61, 16  ;;  %v5179_v11 = vld [vmem:[%s6461_s27 + $0x70] sm:$0xf]  ;;  %v5180_v8 = vld [vmem:[%s6461_s27 + $0x74] sm:$0x1] }
  0x7f   : > { %v4989_v38 = vcombine.low %v578_v18, %v588_v21  ;;  %v605_v60 = vrot.slane %v603_v23, 4  ;;  %v5273_v20 = vcombine.low %v2840_v10, %v2843_v1  ;;  %v596_v44 = vor.u32 %v595_v31, %v592_v25 }
  0x80   : > { %v5257_v45 = vrot.slane %v5241_v2, 9  ;;  %v2846_v26 = vrot.slane %v6645_v4, 5  ;;  %v2849_v48 = vrot.slane %v6651_v12, 5  ;;  %v614_v50 = vshrl.u32 %v6870_v14, 16 }
  0x81   : > { %5695 = vmatmul.mubr.msk.bf16.gmra.mrb[24].mxu1 %vm687_vm3, %v4989_v38  ;;  %v606_v47 = vor.u32 %v605_v60, %v601_v28  ;;  %5849 = vmatmul.mubr.msk.bf16.gmra.mrb[8].mxu0 %vm687_vm3, %v5273_v20  ;;  %v597_v51 = vrot.slane %v596_v44, 4  ;;  %v611_v15 = vrot.slane %v609_v34, 5  ;;  %v617_v62 = vshll.u32 %v6870_v14, 16 }
  0x82   : > { %v623_v40 = vshll.u32 %v6879_v42, 16  ;;  %v2847_v4 = vsel %vm6713_vm7, %v5257_v45, %v2846_v26  ;;  %v2848_v12 = vrot.slane %v2846_v26, 4  ;;  %v616_v63 = vrot.slane %v614_v50, 4 }
  0x83   : > { %v607_v57 = vrot.slane %v606_v47, 4  ;;  %v602_v58 = vsel %vm6487_vm4, %v597_v51, %v601_v28  ;;  %v619_v54 = vrot.slane %v617_v62, 5  ;;  %v627_v2 = vshrl.u32 %v6879_v42, 16  ;;  %v5244_v47 = vld [vmem:[%s6461_s27 + $0x78] sm:$0xe] }
  0x84   : > { %v625_v61 = vrot.slane %v623_v40, 5  ;;  %v2850_v41 = vsel %vm6713_vm7, %v2848_v12, %v2849_v48  ;;  %v633_v17 = vshll.u32 %v249_v49, 16  ;;  %v5258_v10 = vrot.slane %v5242_v55, 9  ;;  %v6315_v51 = vld [vmem:[%s6461_s27] sm:$0xf] }
  0x85   : > { %v612_v7 = vsel %vm6487_vm4, %v607_v57, %v611_v15  ;;  %v5274_v18 = vcombine.low %v2847_v4, %v2850_v41  ;;  %v620_v21 = vor.u32 %v619_v54, %v616_v63  ;;  %v629_v25 = vrot.slane %v627_v2, 4  ;;  %v6917_v15 = vld [vmem:[%s6461_s27 + $0x4] sm:$0xf]  ;;  %v6921_v40 = vld [vmem:[%s6461_s27 + $0x7c] sm:$0xf] }
  0x86   : > { %v4990_v23 = vcombine.low %v602_v58, %v612_v7  ;;  %v635_v31 = vrot.slane %v633_v17, 5  ;;  %v2853_v38 = vrot.slane %v6675_v59, 5  ;;  %v2856_v1 = vrot.slane %v6682_v9, 5  ;;  %v6924_v55 = vld [vmem:[%s6461_s27 + $0x80] sm:$0x1] }
  0x87   : > { %v5259_v28 = vrot.slane %v5243_v6, 9  ;;  %5852 = vmatprep.mubr.msk.bf16.mxu0 %vm687_vm3, %v5274_v18  ;;  %v621_v60 = vrot.slane %v620_v21, 4  ;;  %v630_v20 = vor.u32 %v629_v25, %v625_v61  ;;  %v2860_v44 = vrot.slane %v5179_v11, 5  ;;  %v5185_v57 = vld [vmem:[%s6461_s27 + $0x88] sm:$0xf] }
  0x88   : > { %5698 = vmatprep.mubr.msk.bf16.mxu1 %vm687_vm3, %v4990_v23  ;;  %v2863_v34 = vrot.slane %v5180_v8, 5  ;;  %v2854_v45 = vsel %vm6713_vm7, %v5258_v10, %v2853_v38  ;;  %v2855_v59 = vrot.slane %v2853_v38, 4  ;;  %v5008_v62 = vcombine.low %v6315_v51, %v6917_v15  ;;  %v5186_v54 = vld [vmem:[%s6461_s27 + $0x8c] sm:$0x1]  ;;  %v5188_v17 = vld [vmem:[%s6461_s27 + $0x94] sm:$0xf] }
  0x89   : > { %v626_v9 = vsel %vm6487_vm4, %v621_v60, %v625_v61  ;;  %v631_v26 = vrot.slane %v630_v20, 4  ;;  %v2861_v48 = vsel %vm6713_vm7, %v5259_v28, %v2860_v44  ;;  %v2862_v49 = vrot.slane %v2860_v44, 4  ;;  %v5245_v61 = vld [vmem:[%s6461_s27 + $0x84] sm:$0xe]  ;;  %v5246_v23 = vld [vmem:[%s6461_s27 + $0x90] sm:$0xe] }
  0x8a   : > { %v2857_v50 = vsel %vm6713_vm7, %v2855_v59, %v2856_v1  ;;  %v5260_v58 = vrot.slane %v5244_v47, 9  ;;  %v2867_v7 = vrot.slane %v6921_v40, 5  ;;  %v2870_v41 = vrot.slane %v6924_v55, 5  ;;  %v5189_v25 = vld [vmem:[%s6461_s27 + $0x98] sm:$0x1] }
  0x8b   : > { %v636_v4 = vsel %vm6487_vm4, %v631_v26, %v635_v31  ;;  %v5275_v12 = vcombine.low %v2854_v45, %v2857_v50  ;;  %v2864_v63 = vsel %vm6713_vm7, %v2862_v49, %v2863_v34  ;;  %v5261_v10 = vrot.slane %v5245_v61, 9  ;;  %v5191_v31 = vld [vmem:[%s6461_s27 + $0xa0] sm:$0xf]  ;;  %v5192_v60 = vld [vmem:[%s6461_s27 + $0xa4] sm:$0x1] }
  0x8c   : > { %v4991_v2 = vcombine.low %v626_v9, %v636_v4  ;;  %v5276_v6 = vcombine.low %v2861_v48, %v2864_v63  ;;  %v2874_v11 = vrot.slane %v5185_v57, 5  ;;  %v2877_v8 = vrot.slane %v5186_v54, 5  ;;  %v5247_v20 = vld [vmem:[%s6461_s27 + $0x9c] sm:$0xe]  ;;  %v6317_v44 = vld [vmem:[%s6461_s27 + $0xc] sm:$0xf] }
  0x8d   : > { %5853 = vmatmul.mubr.msk.bf16.gmra.mrb[12].mxu0 %vm687_vm3, %v5275_v12  ;;  %v2868_v18 = vsel %vm6713_vm7, %v5260_v58, %v2867_v7  ;;  %v2869_v21 = vrot.slane %v2867_v7, 4  ;;  %v2881_v28 = vrot.slane %v5188_v17, 5  ;;  %v6951_v34 = vld [vmem:[%s6461_s27 + $0x10] sm:$0xf]  ;;  %v6319_v47 = vld [vmem:[%s6461_s27 + $0x18] sm:$0xf] }
  0x8e   : > { %5699 = vmatmul.mubr.msk.bf16.gmra.mrb[28].mxu1 %vm687_vm3, %v4991_v2  ;;  %5856 = vmatprep.mubr.msk.bf16.mxu0 %vm687_vm3, %v5276_v6  ;;  %v2875_v38 = vsel %vm6713_vm7, %v5261_v10, %v2874_v11  ;;  %v2876_v1 = vrot.slane %v2874_v11, 4  ;;  %v5009_v45 = vcombine.low %v6317_v44, %v6951_v34  ;;  %v6958_v9 = vld [vmem:[%s6461_s27 + $0x1c] sm:$0xf]  ;;  %v5262_v48 = vrot.slane %v5246_v23, 9  ;;  %v5194_v57 = vld [vmem:[%s6461_s27 + $0xac] sm:$0xf] }
  0x8f   : > { %5704 = vmatprep.mubr.msk.bf16.mxu1 %vm687_vm3, %v5008_v62  ;;  %v2871_v59 = vsel %vm6713_vm7, %v2869_v21, %v2870_v41  ;;  %v5010_v26 = vcombine.low %v6319_v47, %v6958_v9  ;;  %v2883_v51 = vrot.slane %v2881_v28, 4  ;;  %v2884_v62 = vrot.slane %v5189_v25, 5  ;;  %v6321_v54 = vld [vmem:[%s8266_s1 + $0x4] sm:$0x3]  ;;  %v5197_v2 = vld [vmem:[%s6461_s27 + $0xb8] sm:$0xf] }
  0x90   : > { %v5277_v49 = vcombine.low %v2868_v18, %v2871_v59  ;;  %v2878_v50 = vsel %vm6713_vm7, %v2876_v1, %v2877_v8  ;;  %v5263_v12 = vrot.slane %v5247_v20, 9  ;;  %v2888_v63 = vrot.slane %v5191_v31, 5  ;;  %v6973_v7 = vld [vmem:[%s8266_s1 + $0x6] sm:$0x3]  ;;  %v5195_v10 = vld [vmem:[%s6461_s27 + $0xb0] sm:$0x1] }
  0x91   : > { %v5278_v4 = vcombine.low %v2875_v38, %v2878_v50  ;;  %v2891_v58 = vrot.slane %v5192_v60, 5  ;;  %v1455_v61 = vsel %vm736_vm0, %v6321_v54, 0  ;;  %v2882_v41 = vsel %vm6713_vm7, %v5262_v48, %v2881_v28  ;;  %v5248_v11 = vld [vmem:[%s6461_s27 + $0xa8] sm:$0xe]  ;;  %v5198_v25 = vld [vmem:[%s6461_s27 + $0xbc] sm:$0x1] }
  0x92   : > { %v2890_v6 = vrot.slane %v2888_v63, 4  ;;  %v2885_v17 = vsel %vm6713_vm7, %v2883_v51, %v2884_v62  ;;  %v2895_v8 = vrot.slane %v5194_v57, 5  ;;  %v2889_v23 = vsel %vm6713_vm7, %v5263_v12, %v2888_v63  ;;  %v5249_v31 = vld [vmem:[%s6461_s27 + $0xb4] sm:$0xe]  ;;  %v6322_v38 = vld [vmem:[%s6461_s27 + $0x24] sm:$0xf] }
  0x93   : > { %v2902_v21 = vrot.slane %v5197_v2, 5  ;;  %v6994_v1 = vld [vmem:[%s6461_s27 + $0x28] sm:$0xf]  ;;  %v5279_v60 = vcombine.low %v2882_v41, %v2885_v17  ;;  %v5264_v44 = vrot.slane %v5248_v11, 9  ;;  %v2898_v59 = vrot.slane %v5195_v10, 5 }
  0x94   : > { %v2892_v18 = vsel %vm6713_vm7, %v2890_v6, %v2891_v58  ;;  %v5011_v28 = vcombine.low %v6322_v38, %v6994_v1  ;;  %v6324_v47 = vld [vmem:[%s6461_s27 + $0x30] sm:$0xf]  ;;  %v2905_v51 = vrot.slane %v5198_v25, 5  ;;  %v5200_v62 = vld [vmem:[%s6461_s27 + $0xc4] sm:$0xf]  ;;  %v2290_v25 = vshrl.u32 %v6921_v40, 16 }
  0x95   : > { %5857 = vmatmul.mubr.msk.bf16.gmra.mrb[16].mxu0 %vm687_vm3, %v5277_v49  ;;  %v5280_v20 = vcombine.low %v2889_v23, %v2892_v18  ;;  %v5265_v49 = vrot.slane %v5249_v31, 9  ;;  %v2904_v50 = vrot.slane %v2902_v21, 4  ;;  %v2896_v57 = vsel %vm6713_vm7, %v5264_v44, %v2895_v8  ;;  %v5250_v12 = vld [vmem:[%s6461_s27 + $0xc0] sm:$0xe]  ;;  %v6326_v41 = vld [vmem:[%s6461_s27 + $0x3c] sm:$0xf] }
  0x96   : > { %5705 = vmatmul.mubr.msk.bf16.vlgmr.msra.gmra.mrb[0].mxu1 %vm687_vm3, %v5009_v45  ;;  %5860 = vmatprep.mubr.msk.bf16.mxu0 %vm687_vm3, %v5278_v4  ;;  %v2897_v45 = vrot.slane %v2895_v8, 4  ;;  %v2909_v63 = vrot.slane %v5200_v62, 5  ;;  %v5266_v6 = vrot.slane %v5250_v12, 9  ;;  %v7019_v17 = vld [vmem:[%s6461_s27 + $0x40] sm:$0xf]  ;;  %v5014_v18 = vcombine.low %v6626_v27, %v6629_v36  ;;  %v6278_v62 = vld [vmem:[%s6461_s27 + $0x24] sm:$0xff]  }
  0x97   : > { %5737 = vmatpush3.bf16.msra.mxu1 %v1455_v61  ;;  %5708 = vmatprep.mubr.msk.bf16.mxu1 %vm687_vm3, %v5010_v26  ;;  %v6999_v26 = vld [vmem:[%s6461_s27 + $0x34] sm:$0xf]  ;;  %v2903_v58 = vsel %vm6713_vm7, %v5265_v49, %v2902_v21  ;;  %v2906_v54 = vsel %vm6713_vm7, %v2904_v50, %v2905_v51  ;;  %v5201_v61 = vld [vmem:[%s6461_s27 + $0xc8] sm:$0x1]  ;;  %v5013_v10 = vcombine.low %v6326_v41, %v7019_v17  ;;  %v2286_v21 = vshll.u32 %v6921_v40, 16 }
  0x98   : > { %6235 = vmatprep.subr.msk.bf16.mxu1 %vm736_vm0, %v6973_v7  ;;  %v5012_v48 = vcombine.low %v6324_v47, %v6999_v26  ;;  %v2899_v4 = vsel %vm6713_vm7, %v2897_v45, %v2898_v59  ;;  %v5282_v11 = vcombine.low %v2903_v58, %v2906_v54  ;;  %v2911_v8 = vrot.slane %v2909_v63, 4  ;;  %v1193_v45 = vld [vmem:[%s6461_s27] sm:$0xe]  ;;  %v1194_v59 = vld [vmem:[%s6461_s27 + $0xc] sm:$0xe] }
  0x99   : > { %v5281_v2 = vcombine.low %v2896_v57, %v2899_v4  ;;  %v2912_v23 = vrot.slane %v5201_v61, 5  ;;  %v2910_v31 = vsel %vm6713_vm7, %v5266_v6, %v2909_v63  ;;  %v7034_v27 = vrot.slane %v2286_v21, 5  ;;  %v1197_v41 = vld [vmem:[%s6461_s27 + $0x30] sm:$0xe] }
  0x9a   : > { %v2292_v36 = vrot.slane %v2290_v25, 4  ;;  %v5016_v44 = vcombine.low %v6686_v19, %v6692_v35  ;;  %v2296_v47 = vshll.u32 %v6924_v55, 16  ;;  %v5040_v19 = vrot.slane %v1193_v45, 9 }
  0x9b   : > { %v2913_v38 = vsel %vm6713_vm7, %v2911_v8, %v2912_v23  ;;  %8287 = vst [vmem:[#allocation3_spill] sm:$0xff] %v7034_v27  ;;  %v5041_v35 = vrot.slane %v1194_v59, 9  ;;  %v1260_v4 = vrot.slane %v6958_v9, 5  ;;  %v1267_v12 = vrot.slane %v6994_v1, 5  ;;  %v1198_v8 = vld [vmem:[%s6461_s27 + $0x3c] sm:$0xe] }
  0x9c   : > { %v5283_v40 = vcombine.low %v2910_v31, %v2913_v38  ;;  %v2293_v49 = vor.u32 %v2292_v36, %v7034_v27  ;;  %v7054_v51 = vrot.slane %v2296_v47, 5  ;;  %v5017_v58 = vcombine.low %v6707_v0, %v6720_v29  ;;  %v1199_v31 = vld [vmem:[%s6461_s27 + $0x48] sm:$0xe]  ;;  %v6332_v59 = vld [vmem:[%s6461_s27 + $0x38] sm:$0x1] }
  0x9d   : > { %5861 = vmatmul.mubr.msk.bf16.gmra.mrb[20].mxu0 %vm687_vm3, %v5279_v60  ;;  %v5015_v60 = vcombine.low %v6655_v24, %v6661_v37  ;;  %v6329_v24 = vld [vmem:[%s6461_s27 + $0x14] sm:$0x1]  ;;  %v4101_v54 = vsel %vm736_vm0, %v6778_v22, 0  ;;  %v5018_v61 = vcombine.low %v6739_v53, %v6746_v16  ;;  %v5019_v6 = vcombine.low %v6765_v39, %v6773_v43  ;;  %v6330_v16 = vld [vmem:[%s6461_s27 + $0x20] sm:$0x1] }
  0x9e   : > { %5709 = vmatmul.mubr.msk.bf16.gmra.mrb[4].mxu1 %vm687_vm3, %v5011_v28  ;;  %5864 = vmatprep.mubr.msk.bf16.mxu0 %vm687_vm3, %v5280_v20  ;;  %v1253_v28 = vrot.slane %v6951_v34, 5  ;;  %v6276_v20 = vld [vmem:[%s6461_s27 + $0x18] sm:$0xff]   ;;  %v6328_v34 = vld [vmem:[%s6461_s27 + $0x8] sm:$0x1]  ;;  %v1256_v37 = vrot.slane %v6329_v24, 5  ;;  %8288 = vst [vmem:[#allocation4_spill] sm:$0xff] %v7054_v51  ;;  %v5020_v9 = vcombine.low %v6797_v5, %v6809_v30 }
  0x9f   : > { %5712 = vmatprep.mubr.msk.bf16.mxu1 %vm687_vm3, %v5012_v48  ;;  %v1246_v48 = vrot.slane %v6917_v15, 5  ;;  %v1249_v50 = vrot.slane %v6328_v34, 5  ;;  %v1195_v15 = vld [vmem:[%s6461_s27 + $0x18] sm:$0xe]  ;;  %v7059_v63 = vrot.slane %v2293_v49, 4  ;;  %v1263_v22 = vrot.slane %v6330_v16, 5 }
  0xa0   : > { %v1255_v55 = vrot.slane %v1253_v28, 4  ;;  %v5042_v1 = vrot.slane %v1195_v15, 9  ;;  %v7081_v29 = vsel %vm6713_vm7, %v5041_v35, %v1253_v28  ;;  %v1269_v25 = vrot.slane %v1267_v12, 4  ;;  %v5365_v24 = vld [vmem:[%s6461_s27 + $0x18] sm:$0xf] }
  0xa1   : > { %v1248_v57 = vrot.slane %v1246_v48, 4  ;;  %8289 = vst [vmem:[#allocation5_spill] sm:$0xff] %v7059_v63  ;;  %v7077_v0 = vsel %vm6713_vm7, %v5040_v19, %v1246_v48  ;;  %v1277_v47 = vrot.slane %v6332_v59, 5  ;;  %v7118_v49 = vsel %vm736_vm0, %v6973_v7, 0  ;;  %v5366_v7 = vld [vmem:[%s6461_s27 + $0x1c] sm:$0xf] }
  0xa2   : > { %v7085_v53 = vsel %vm6713_vm7, %v1255_v55, %v1256_v37  ;;  %v7122_v34 = vsel %vm6713_vm7, %v5042_v1, %v1260_v4  ;;  %v6282_v37 = vld [vmem:[%s6461_s27 + $0x3c] sm:$0xff]   ;;  %v5045_v35 = vrot.slane %v1198_v8, 9  ;;  %v6333_v55 = vld [vmem:[%s6461_s27 + $0x44] sm:$0x1]  ;;  %v3622_v8 = vshll.u32 %v5365_v24, 16 }
  0xa3   : > { %v7096_v23 = vsel %vm6713_vm7, %v1248_v57, %v1249_v50  ;;  %v1200_v50 = vld [vmem:[%s6461_s27 + $0x54] sm:$0xe]  ;;  %v1284_v15 = vrot.slane %v6333_v55, 5  ;;  %v5369_v39 = vld [vmem:[%s6461_s27 + $0x28] sm:$0xf] }
  0xa4   : > { %v6340_v5 = vld [vmem:[%s6461_s27 + $0x70] sm:$0xf] }
  0xa5   : > { %5865 = vmatmul.mubr.msk.bf16.gmra.mrb[24].mxu0 %vm687_vm3, %v5281_v2  ;;  %v1196_v2 = vld [vmem:[%s6461_s27 + $0x24] sm:$0xe]  ;;  %v1309_v30 = vrot.slane %v6340_v5, 5 }
  0xa6   : > { %5713 = vmatmul.mubr.msk.bf16.gmra.mrb[8].mxu1 %vm687_vm3, %v5013_v10  ;;  %5868 = vmatprep.mubr.msk.bf16.mxu0 %vm687_vm3, %v5282_v11  ;;  %v1274_v10 = vrot.slane %v6999_v26, 5  ;;  %v6280_v11 = vld [vmem:[%s6461_s27 + $0x30] sm:$0xff]   ;;  %v5043_v21 = vrot.slane %v1196_v2, 9 }
  0xa7   : > { %5716 = vmatprep.mubr.msk.bf16.mxu1 %vm687_vm3, %v5014_v18  ;;  %v7092_v26 = vld [vmem:[%s8266_s1 + $0x10] sm:$0x3]  ;;  %v1262_v18 = vrot.slane %v1260_v4, 4  ;;  %v1311_v48 = vrot.slane %v1309_v30, 4 }
  0xa8   : > { %v1276_v45 = vrot.slane %v1274_v10, 4  ;;  %v7129_v19 = vsel %vm6713_vm7, %v5043_v21, %v1267_v12  ;;  %v3632_v21 = vshrl.u32 %v5366_v7, 16 }
  0xa9   : > { %v7138_v4 = vsel %vm6713_vm7, %v1262_v18, %v1263_v22  ;;  %v3619_v22 = vshrl.u32 %v5365_v24, 16  ;;  %v3628_v18 = vshll.u32 %v5366_v7, 16  ;;  %v5368_v24 = vld [vmem:[%s6461_s27 + $0x24] sm:$0xf] }
  0xaa   : > { %v7151_v1 = vsel %vm6713_vm7, %v1276_v45, %v1277_v47 }
  0xab   : > { %v3621_v43 = vrot.slane %v3619_v22, 4  ;;  %v7193_v7 = vrot.slane %v3628_v18, 5  ;;  %v3646_v22 = vshll.u32 %v5368_v24, 16  ;;  %v3656_v18 = vshrl.u32 %v5369_v39, 16 }
  0xad   : > { %5869 = vmatmul.mubr.msk.bf16.gmra.mrb[28].mxu0 %vm687_vm3, %v5283_v40  ;;  %v6331_v40 = vld [vmem:[%s6461_s27 + $0x2c] sm:$0x1]  ;;  %v3648_v27 = vrot.slane %v3646_v22, 5 }
  0xae   : > { %5717 = vmatmul.mubr.msk.bf16.gmra.mrb[12].mxu1 %vm687_vm3, %v5015_v60  ;;  %5874 = vmatprep.mubr.msk.bf16.mxu0 %vm687_vm3, %v6276_v20  ;;  %v1270_v28 = vrot.slane %v6331_v40, 5  ;;  %v1281_v60 = vrot.slane %v7019_v17, 5  ;;  %v6336_v40 = vld [vmem:[%s6461_s27 + $0x50] sm:$0x1]  ;;  %v6341_v17 = vld [vmem:[%s6461_s27 + $0x74] sm:$0x1] }
  0xaf   : > { %5720 = vmatprep.mubr.msk.bf16.mxu1 %vm687_vm3, %v5016_v44  ;;  %v5044_v44 = vrot.slane %v1197_v41, 9  ;;  %v5047_v41 = vrot.slane %v1200_v50, 9  ;;  %v1201_v50 = vld [vmem:[%s6461_s27 + $0x60] sm:$0xe]  ;;  %v5370_v20 = vld [vmem:[%s6461_s27 + $0x2c] sm:$0x1] }
  0xb0   : > { %v1283_v12 = vrot.slane %v1281_v60, 4  ;;  %v7164_v45 = vsel %vm6713_vm7, %v5045_v35, %v1281_v60  ;;  %v6337_v35 = vld [vmem:[%s6461_s27 + $0x5c] sm:$0x1] }
  0xb1   : > { %v7147_v2 = vsel %vm6713_vm7, %v5044_v44, %v1274_v10  ;;  %v1298_v55 = vrot.slane %v6337_v35, 5  ;;  %v1202_v35 = vld [vmem:[%s6461_s27 + $0x6c] sm:$0xe] }
  0xb2   : > { %v7168_v59 = vsel %vm6713_vm7, %v1283_v12, %v1284_v15  ;;  %v6338_v15 = vld [vmem:[%s6461_s27 + $0x64] sm:$0xf]  ;;  %v3634_v12 = vrot.slane %v3632_v21, 4  ;;  %v5049_v5 = vrot.slane %v1202_v35, 9 }
  0xb3   : > { %v6288_v21 = vld [vmem:[%s6461_s27 + $0x60] sm:$0xff]  }
  0xb5   : > { %5875 = vmatmul.mubr.msk.bf16.vlgmr.msra.gmra.mrb[0].mxu0 %vm687_vm3, %v6278_v62  ;;  %v6334_v62 = vld [vmem:[%s6461_s27 + $0x4c] sm:$0xf] }
  0xb6   : > { %5721 = vmatmul.mubr.msk.bf16.gmra.mrb[16].mxu1 %vm687_vm3, %v5017_v58  ;;  %5907 = vmatpush3.bf16.msra.mxu0 %v4101_v54  ;;  %v1288_v57 = vrot.slane %v6334_v62, 5  ;;  %v7142_v58 = vsel %vm6713_vm7, %v1269_v25, %v1270_v28  ;;  %v5046_v54 = vrot.slane %v1199_v31, 9  ;;  %v1291_v28 = vrot.slane %v6336_v40, 5 }
  0xb7   : > { %5724 = vmatprep.mubr.msk.bf16.mxu1 %vm687_vm3, %v5018_v61  ;;  %5878 = vmatprep.mubr.msk.bf16.mxu0 %vm687_vm3, %v6280_v11  ;;  %v6284_v61 = vld [vmem:[%s6461_s27 + $0x48] sm:$0xff]   ;;  %v6335_v11 = vld [vmem:[%s6461_s27 + $0x58] sm:$0xf]  ;;  %v1302_v62 = vrot.slane %v6338_v15, 5  ;;  %v5372_v15 = vld [vmem:[%s6461_s27 + $0x34] sm:$0xf] }
  0xb8   : > { %6241 = vmatprep.subr.msk.bf16.mxu0 %vm736_vm0, %v7092_v26  ;;  %v1295_v16 = vrot.slane %v6335_v11, 5  ;;  %v1290_v31 = vrot.slane %v1288_v57, 4  ;;  %v7172_v47 = vsel %vm6713_vm7, %v5046_v54, %v1288_v57  ;;  %v5367_v57 = vld [vmem:[%s6461_s27 + $0x20] sm:$0x1]  ;;  %v5371_v54 = vld [vmem:[%s6461_s27 + $0x30] sm:$0xf] }
  0xb9   : > { %v5048_v11 = vrot.slane %v1201_v50, 9  ;;  %v3670_v50 = vshll.u32 %v5371_v54, 16  ;;  %v3638_v25 = vshll.u32 %v5367_v57, 16  ;;  %v3676_v36 = vshll.u32 %v5372_v15, 16 }
  0xba   : > { %v7183_v60 = vsel %vm6713_vm7, %v5047_v41, %v1295_v16  ;;  %v7199_v41 = vsel %vm6713_vm7, %v1290_v31, %v1291_v28  ;;  %v1304_v31 = vrot.slane %v1302_v62, 4  ;;  %v3667_v28 = vshrl.u32 %v5371_v54, 16 }
  0xbb   : > { %v7241_v35 = vrot.slane %v3676_v36, 5 }
  0xbd   : > { %5879 = vmatmul.mubr.msk.bf16.gmra.mrb[4].mxu0 %vm687_vm3, %v6282_v37  ;;  %v1297_v37 = vrot.slane %v1295_v16, 4  ;;  %v6339_v16 = vld [vmem:[%s6461_s27 + $0x68] sm:$0x1] }
  0xbe   : > { %5725 = vmatmul.mubr.msk.bf16.gmra.mrb[20].mxu1 %vm687_vm3, %v5019_v6  ;;  %5882 = vmatprep.mubr.msk.bf16.mxu0 %vm687_vm3, %v6284_v61  ;;  %v3624_v6 = vrot.slane %v3622_v8, 5  ;;  %v6286_v61 = vld [vmem:[%s6461_s27 + $0x54] sm:$0xff]   ;;  %v1305_v40 = vrot.slane %v6339_v16, 5  ;;  %v3652_v8 = vshll.u32 %v5369_v39, 16  ;;  %v3635_v16 = vor.u32 %v3634_v12, %v7193_v7 }
  0xbf   : > { %5728 = vmatprep.mubr.msk.bf16.mxu1 %vm687_vm3, %v5020_v9  ;;  %v3643_v9 = vshrl.u32 %v5368_v24, 16  ;;  %v7208_v44 = vsel %vm6713_vm7, %v1297_v37, %v1298_v55  ;;  %v1312_v24 = vrot.slane %v6341_v17, 5  ;;  %v3680_v39 = vshrl.u32 %v5372_v15, 16 }
  0xc0   : > { %v3625_v10 = vor.u32 %v3624_v6, %v3621_v43  ;;  %v7214_v37 = vrot.slane %v3652_v8, 5  ;;  %v3658_v55 = vrot.slane %v3656_v18, 4  ;;  %v8290_v43 = vcombine.low %v6818_v52, %v6829_v46  ;;  %v6342_v8 = vld [vmem:[%s6461_s27 + $0x7c] sm:$0xf]  ;;  %v7250_v18 = vld [vmem:[%s6461_s27 + $0x38] sm:$0x1] }
  0xc1   : > { %v3645_v38 = vrot.slane %v3643_v9, 4  ;;  %v7223_v17 = vsel %vm6713_vm7, %v5048_v11, %v1302_v62  ;;  %v7227_v57 = vsel %vm6713_vm7, %v1304_v31, %v1305_v40  ;;  %v3669_v6 = vrot.slane %v3667_v28, 4  ;;  %8292 = vst [vmem:[#allocation6_spill] sm:$0xff] %v7250_v18 }
  0xc2   : > { %v3672_v12 = vrot.slane %v3670_v50, 5  ;;  %v8291_v52 = vcombine.low %v6850_v33, %v6855_v56  ;;  %v3626_v46 = vrot.slane %v3625_v10, 4  ;;  %v3636_v54 = vrot.slane %v3635_v16, 4  ;;  %v6290_v33 = vld [vmem:[%s6461_s27 + $0x6c] sm:$0xff]   ;;  %v1204_v16 = vld [vmem:[%s6461_s27 + $0x84] sm:$0xe] }
  0xc3   : > { %v3662_v62 = vshll.u32 %v5370_v20, 16  ;;  %v7235_v11 = vsel %vm6713_vm7, %v5049_v5, %v1309_v30  ;;  %v7239_v40 = vsel %vm6713_vm7, %v1311_v48, %v1312_v24  ;;  %v3682_v9 = vrot.slane %v3680_v39, 4  ;;  %v6291_v48 = vld [vmem:[%s6461_s27 + $0x78] sm:$0xff]  }
  0xc4   : > { %v3649_v10 = vor.u32 %v3648_v27, %v3645_v38  ;;  %v3659_v20 = vor.u32 %v3658_v55, %v7214_v37  ;;  %v1316_v30 = vrot.slane %v6342_v8, 5  ;;  %v3673_v38 = vor.u32 %v3672_v12, %v3669_v6  ;;  %v5374_v5 = vld [vmem:[%s6461_s27 + $0x3c] sm:$0xf] }
  0xc5   : > { %5883 = vmatmul.mubr.msk.bf16.gmra.mrb[8].mxu0 %vm687_vm3, %v6286_v61  ;;  %v3640_v61 = vrot.slane %v3638_v25, 5  ;;  %v1203_v25 = vld [vmem:[%s6461_s27 + $0x78] sm:$0xe]  ;;  %v7266_v50 = vrot.slane %v3662_v62, 5  ;;  %v3683_v39 = vor.u32 %v3682_v9, %v7241_v35  ;;  %v3686_v55 = vshll.u32 %v7250_v18, 16 }
  0xc6   : > { %5729 = vmatmul.mubr.msk.bf16.gmra.mrb[24].mxu1 %vm687_vm3, %v8290_v43  ;;  %5886 = vmatprep.mubr.msk.bf16.mxu0 %vm687_vm3, %v6288_v21  ;;  %v3631_v21 = vsel %vm6487_vm4, %v3626_v46, %v7193_v7  ;;  %v5050_v24 = vrot.slane %v1203_v25, 9  ;;  %v6343_v43 = vld [vmem:[%s6461_s27 + $0x88] sm:$0xf]  ;;  %v7274_v7 = vld [vmem:[%s6461_s27 + $0x40] sm:$0xf]  ;;  %v3650_v12 = vrot.slane %v3649_v10, 4  ;;  %v8294_v62 = vcombine.low %v6870_v14, %v6879_v42 }
  0xc7   : > { %5732 = vmatprep.mubr.msk.bf16.mxu1 %vm687_vm3, %v8291_v52  ;;  %v3641_v31 = vsel %vm6487_vm4, %v3636_v54, %v3640_v61  ;;  %v1323_v6 = vrot.slane %v6343_v43, 5  ;;  %8293 = vst [vmem:[#allocation7_spill] sm:$0xff] %v7274_v7  ;;  %v3660_v52 = vrot.slane %v3659_v20, 4  ;;  %v1318_v46 = vrot.slane %v1316_v30, 4  ;;  %v6344_v54 = vld [vmem:[%s6461_s27 + $0x80] sm:$0x1] }
  0xc8   : > { %v1319_v61 = vrot.slane %v6344_v54, 5  ;;  %v3674_v9 = vrot.slane %v3673_v38, 4  ;;  %v5051_v25 = vrot.slane %v1204_v16, 9  ;;  %v3691_v8 = vshrl.u32 %v5374_v5, 16  ;;  %v6292_v10 = vld [vmem:[%s6461_s27 + $0x84] sm:$0xff]  }
  0xc9   : > { %v3694_v43 = vshll.u32 %v5374_v5, 16  ;;  %v7288_v20 = vcombine.low %v3631_v21, %v3641_v31  ;;  %v7292_v14 = vsel %vm736_vm0, %v7092_v26, 0  ;;  %v3704_v38 = vshrl.u32 %v7274_v7, 16  ;;  %v6293_v21 = vld [vmem:[%s6461_s27 + $0x90] sm:$0xff]   ;;  %v6349_v18 = vld [vmem:[%s6461_s27 + $0xa0] sm:$0xf] }
  0xca   : > { %v3684_v16 = vrot.slane %v3683_v39, 4  ;;  %v3688_v5 = vrot.slane %v3686_v55, 5  ;;  %v1325_v54 = vrot.slane %v1323_v6, 4  ;;  %v3655_v31 = vsel %vm6487_vm4, %v3650_v12, %v7214_v37 }
  0xcb   : > { %v3665_v26 = vsel %vm6487_vm4, %v3660_v52, %v7266_v50  ;;  %v7307_v39 = vsel %vm6713_vm7, %v5050_v24, %v1316_v30  ;;  %v7311_v55 = vsel %vm6713_vm7, %v1318_v46, %v1319_v61  ;;  %v3679_v37 = vsel %vm6487_vm4, %v3674_v9, %v7241_v35  ;;  %v5380_v30 = vld [vmem:[%s6461_s27 + $0x54] sm:$0xf]  ;;  %v7328_v24 = vld [vmem:[%s6461_s27 + $0x58] sm:$0xf]  ;;  %v7333_v61 = vld [vmem:[%s6461_s27 + $0x90] sm:$0xe] }
  0xcc   : > { %v7324_v12 = vsel %vm6713_vm7, %v5051_v25, %v1323_v6  ;;  %v3693_v50 = vrot.slane %v3691_v8, 4  ;;  %v3696_v52 = vrot.slane %v3694_v43, 5  ;;  %v3706_v46 = vrot.slane %v3704_v38, 4 }
  0xcd   : > { %5887 = vmatmul.mubr.msk.bf16.gmra.mrb[12].mxu0 %vm687_vm3, %v6290_v33  ;;  %v8295_v33 = vcombine.low %v7077_v0, %v7096_v23  ;;  %v6345_v0 = vld [vmem:[%s6461_s27 + $0x8c] sm:$0x1]  ;;  %v3689_v36 = vsel %vm6487_vm4, %v3684_v16, %v3688_v5  ;;  %v3739_v25 = vshrl.u32 %v5380_v30, 16  ;;  %v3742_v8 = vshll.u32 %v5380_v30, 16 }
  0xce   : > { %5733 = vmatmul.mubr.msk.bf16.gmra.mrb[28].mxu1 %vm687_vm3, %v8294_v62  ;;  %5890 = vmatprep.mubr.msk.bf16.mxu0 %vm687_vm3, %v6291_v48  ;;  %v3700_v48 = vshll.u32 %v7274_v7, 16  ;;  %v1326_v23 = vrot.slane %v6345_v0, 5  ;;  %v5377_v62 = vld [vmem:[%s6461_s27 + $0x48] sm:$0xf]  ;;  %v7317_v0 = vld [vmem:[%s6461_s27 + $0x4c] sm:$0xf]  ;;  %v8297_v38 = vcombine.low %v7081_v29, %v7085_v53  ;;  %v7351_v16 = vcombine.low %v3655_v31, %v3665_v26 }
  0xcf   : > { %5738 = vmatprep.mubr.msk.bf16.mxu1 %vm687_vm3, %v8295_v33  ;;  %v7314_v33 = vld [vmem:[%s6461_s27 + $0x44] sm:$0x1]  ;;  %v3715_v27 = vshrl.u32 %v5377_v62, 16  ;;  %v3718_v15 = vshll.u32 %v5377_v62, 16  ;;  %v3724_v6 = vshll.u32 %v7317_v0, 16  ;;  %v3728_v9 = vshrl.u32 %v7317_v0, 16 }
  0xd0   : > { %8296 = vst [vmem:[#allocation8_spill] sm:$0xff] %v7314_v33  ;;  %v7330_v28 = vrot.slane %v3700_v48, 5  ;;  %v7339_v35 = vsel %vm6713_vm7, %v1325_v54, %v1326_v23  ;;  %v3748_v43 = vshll.u32 %v7328_v24, 16  ;;  %v3752_v48 = vshrl.u32 %v7328_v24, 16  ;;  %v5383_v31 = vld [vmem:[%s6461_s27 + $0x60] sm:$0xf] }
  0xd1   : > { %v3710_v5 = vshll.u32 %v7314_v33, 16  ;;  %v5052_v54 = vrot.slane %v7333_v61, 9  ;;  %v8298_v23 = vcombine.low %v7122_v34, %v7138_v4  ;;  %v7362_v29 = vcombine.low %v3679_v37, %v3689_v36  ;;  %v6294_v26 = vld [vmem:[%s6461_s27 + $0x9c] sm:$0xff]   ;;  %v6295_v30 = vld [vmem:[%s6461_s27 + $0xa8] sm:$0xff]  }
  0xd2   : > { %v3697_v53 = vor.u32 %v3696_v52, %v3693_v50  ;;  %v3717_v62 = vrot.slane %v3715_v27, 4  ;;  %v7373_v34 = vrot.slane %v3724_v6, 5  ;;  %v3730_v4 = vrot.slane %v3728_v9, 4  ;;  %v6346_v36 = vld [vmem:[%s8266_s1 + $0x8] sm:$0x3] }
  0xd3   : > { %v3741_v27 = vrot.slane %v3739_v25, 4  ;;  %v3744_v37 = vrot.slane %v3742_v8, 5  ;;  %v7382_v50 = vrot.slane %v3748_v43, 5  ;;  %v3754_v52 = vrot.slane %v3752_v48, 4  ;;  %v6347_v6 = vld [vmem:[%s6461_s27 + $0x94] sm:$0xf] }
  0xd4   : > { %v7388_v9 = vld [vmem:[%s6461_s27 + $0x64] sm:$0xf]  ;;  %v3763_v61 = vshrl.u32 %v5383_v31, 16  ;;  %v7390_v22 = vrot.slane %v3697_v53, 4  ;;  %v1337_v25 = vrot.slane %v6349_v18, 5  ;;  %v3731_v43 = vor.u32 %v3730_v4, %v7373_v34 }
  0xd5   : > { %5891 = vmatmul.mubr.msk.bf16.gmra.mrb[16].mxu0 %vm687_vm3, %v6292_v10  ;;  %8299 = vst [vmem:[#allocation9_spill] sm:$0xff] %v7388_v9  ;;  %v3766_v10 = vshll.u32 %v5383_v31, 16  ;;  %v3745_v31 = vor.u32 %v3744_v37, %v3741_v27  ;;  %v3755_v53 = vor.u32 %v3754_v52, %v7382_v50  ;;  %v8300_v18 = vcombine.low %v7129_v19, %v7142_v58  ;;  %v6296_v37 = vld [vmem:[%s6461_s27 + $0xb4] sm:$0xff]  }
  0xd6   : > { %5739 = vmatmul.mubr.msk.bf16.vlgmr.msra.gmra.mrb[0].mxu1 %vm687_vm3, %v8297_v38  ;;  %5894 = vmatprep.mubr.msk.bf16.mxu0 %vm687_vm3, %v6293_v21  ;;  %v3720_v21 = vrot.slane %v3718_v15, 5  ;;  %v7371_v38 = vld [vmem:[%s6461_s27 + $0x50] sm:$0x1]  ;;  %v7380_v15 = vld [vmem:[%s6461_s27 + $0x5c] sm:$0x1]  ;;  %v8301_v27 = vcombine.low %v7147_v2, %v7151_v1  ;;  %v1339_v52 = vrot.slane %v1337_v25, 4 }
  0xd7   : > { %5771 = vmatpush3.bf16.msra.mxu1 %v7118_v49  ;;  %5742 = vmatprep.mubr.msk.bf16.mxu1 %vm687_vm3, %v8298_v23  ;;  %v3707_v49 = vor.u32 %v3706_v46, %v7330_v28  ;;  %v7384_v46 = vrot.slane %v3710_v5, 5  ;;  %v1330_v23 = vrot.slane %v6347_v6, 5  ;;  %v3734_v48 = vshll.u32 %v7371_v38, 16  ;;  %v1206_v5 = vld [vmem:[%s6461_s27 + $0x9c] sm:$0xe] }
  0xd8   : > { %6237 = vmatprep.subr.msk.bf16.mxu1 %vm736_vm0, %v6346_v36  ;;  %v6348_v36 = vld [vmem:[%s6461_s27 + $0x98] sm:$0x1]  ;;  %v3721_v7 = vor.u32 %v3720_v21, %v3717_v62  ;;  %v3758_v6 = vshll.u32 %v7380_v15, 16  ;;  %v3776_v62 = vshrl.u32 %v7388_v9, 16  ;;  %v3768_v4 = vrot.slane %v3766_v10, 5 }
  0xd9   : > { %v1333_v33 = vrot.slane %v6348_v36, 5  ;;  %v3708_v8 = vrot.slane %v3707_v49, 4  ;;  %v3772_v36 = vshll.u32 %v7388_v9, 16  ;;  %v7409_v21 = vsel %vm6713_vm7, %v5052_v54, %v1330_v23  ;;  %v7420_v2 = vld [vmem:[%s6461_s27 + $0x68] sm:$0x1] }
  0xda   : > { %v3765_v49 = vrot.slane %v3763_v61, 4  ;;  %v3722_v19 = vrot.slane %v3721_v7, 4  ;;  %v5053_v58 = vrot.slane %v1206_v5, 9  ;;  %v3732_v3 = vrot.slane %v3731_v43, 4  ;;  %8302 = vst [vmem:[#allocation10_spill] sm:$0xff] %v7420_v2  ;;  %v6297_v5 = vld [vmem:[%s6461_s27 + $0xc0] sm:$0xff]  }
  0xdb   : > { %v3736_v54 = vrot.slane %v3734_v48, 5  ;;  %v3760_v63 = vrot.slane %v3758_v6, 5  ;;  %v1344_v61 = vrot.slane %v6855_v56, 5  ;;  %v3746_v10 = vrot.slane %v3745_v31, 4  ;;  %v1208_v31 = vld [vmem:[%s6461_s27 + $0xb4] sm:$0xe] }
  0xdc   : > { %v3756_v51 = vrot.slane %v3755_v53, 4  ;;  %v7422_v1 = vrot.slane %v3772_v36, 5  ;;  %v3778_v7 = vrot.slane %v3776_v62, 4  ;;  %v3703_v43 = vsel %vm6487_vm4, %v7390_v22, %v7330_v28  ;;  %v6351_v62 = vld [vmem:[%s6461_s27 + $0xb0] sm:$0x1] }
  0xdd   : > { %5895 = vmatmul.mubr.msk.bf16.gmra.mrb[20].mxu0 %vm687_vm3, %v6294_v26  ;;  %v1332_v26 = vrot.slane %v1330_v23, 4  ;;  %v1207_v23 = vld [vmem:[%s6461_s27 + $0xa8] sm:$0xe]  ;;  %v3713_v48 = vsel %vm6487_vm4, %v3708_v8, %v7384_v46  ;;  %v3769_v6 = vor.u32 %v3768_v4, %v3765_v49  ;;  %v3727_v53 = vsel %vm6487_vm4, %v3722_v19, %v7373_v34  ;;  %v5386_v46 = vld [vmem:[%s6461_s27 + $0x6c] sm:$0xf] }
  0xde   : > { %5743 = vmatmul.mubr.msk.bf16.gmra.mrb[4].mxu1 %vm687_vm3, %v8300_v18  ;;  %5898 = vmatprep.mubr.msk.bf16.mxu0 %vm687_vm3, %v6295_v30  ;;  %v6350_v18 = vld [vmem:[%s6461_s27 + $0xa4] sm:$0x1]  ;;  %v7442_v36 = vsel %vm6713_vm7, %v5053_v58, %v1337_v25  ;;  %v5054_v28 = vrot.slane %v1207_v23, 9  ;;  %v1346_v8 = vrot.slane %v1344_v61, 4  ;;  %v3782_v49 = vshll.u32 %v7420_v2, 16 }
  0xdf   : > { %5746 = vmatprep.mubr.msk.bf16.mxu1 %vm687_vm3, %v8301_v27  ;;  %v1340_v30 = vrot.slane %v6350_v18, 5  ;;  %v7434_v56 = vsel %vm6713_vm7, %v1332_v26, %v1333_v33  ;;  %v3737_v33 = vsel %vm6487_vm4, %v3732_v3, %v3736_v54  ;;  %v1347_v26 = vrot.slane %v6351_v62, 5  ;;  %v5389_v18 = vld [vmem:[%s6461_s27 + $0x78] sm:$0xf]  ;;  %v7497_v54 = vld [vmem:[%s6461_s27 + $0xbc] sm:$0x1] }
  0xe0   : > { %v3751_v34 = vsel %vm6487_vm4, %v3746_v10, %v7382_v50  ;;  %v3761_v25 = vsel %vm6487_vm4, %v3756_v51, %v3760_v63  ;;  %v3779_v4 = vor.u32 %v3778_v7, %v7422_v1  ;;  %v5055_v27 = vrot.slane %v1208_v31, 9  ;;  %v7471_v51 = vld [vmem:[%s6461_s27 + $0x70] sm:$0xf]  ;;  %v7501_v10 = vld [vmem:[%s6461_s27 + $0x7c] sm:$0xf] }
  0xe1   : > { %v7446_v22 = vsel %vm6713_vm7, %v1339_v52, %v1340_v30  ;;  %v8304_v3 = vcombine.low %v7164_v45, %v7168_v59  ;;  %v7467_v19 = vrot.slane %v3769_v6, 4  ;;  %v1351_v50 = vrot.slane %v6879_v42, 5  ;;  %8305 = vst [vmem:[#allocation12_spill] sm:$0xff] %v7471_v51  ;;  %8307 = vst [vmem:[#allocation13_spill] sm:$0xff] %v7501_v10  ;;  %v5392_v7 = vld [vmem:[%s6461_s27 + $0x84] sm:$0xf] }
  0xe2   : > { %8303 = vst [vmem:[#allocation11_spill] sm:$0xff] %v7446_v22  ;;  %v3787_v63 = vshrl.u32 %v5386_v46, 16  ;;  %v8306_v45 = vcombine.low %v7172_v47, %v7199_v41  ;;  %v7479_v58 = vcombine.low %v3727_v53, %v3737_v33  ;;  %v7485_v42 = vsel %vm6713_vm7, %v5054_v28, %v1344_v61  ;;  %v6298_v61 = vld [vmem:[%s6461_s27 + $0xcc] sm:$0xff]   ;;  %v7513_v31 = vld [vmem:[%s6461_s27 + $0x88] sm:$0xf] }
  0xe3   : > { %v7488_v30 = vcombine.low %v3751_v34, %v3761_v25  ;;  %v7492_v47 = vsel %vm6713_vm7, %v1346_v8, %v1347_v26  ;;  %v7494_v41 = vrot.slane %v3782_v49, 5  ;;  %v3796_v6 = vshll.u32 %v7471_v51, 16  ;;  %8308 = vst [vmem:[#allocation14_spill] sm:$0xff] %v7513_v31  ;;  %v5395_v62 = vld [vmem:[%s6461_s27 + $0x90] sm:$0xf] }
  0xe4   : > { %v7519_v28 = vrot.slane %v1351_v50, 4  ;;  %v7521_v33 = vrot.slane %v3787_v63, 4  ;;  %v3800_v8 = vshrl.u32 %v7471_v51, 16  ;;  %v3811_v26 = vshrl.u32 %v5389_v18, 16  ;;  %v7528_v25 = vld [vmem:[%s6461_s27 + $0x94] sm:$0xf] }
  0xe5   : > { %5899 = vmatmul.mubr.msk.bf16.gmra.mrb[24].mxu0 %vm687_vm3, %v6296_v37  ;;  %v7465_v37 = vcombine.low %v3703_v43, %v3713_v48  ;;  %v7509_v43 = vsel %vm6713_vm7, %v5055_v27, %v1351_v50  ;;  %v3790_v48 = vshll.u32 %v5386_v46, 16  ;;  %v3814_v49 = vshll.u32 %v5389_v18, 16  ;;  %8309 = vst [vmem:[#allocation15_spill] sm:$0xff] %v7528_v25  ;;  %v7566_v2 = vld [vmem:[%s6461_s27 + $0x8c] sm:$0x1] }
  0xe6   : > { %5747 = vmatmul.mubr.msk.bf16.gmra.mrb[8].mxu1 %vm687_vm3, %v8304_v3  ;;  %5902 = vmatprep.mubr.msk.bf16.mxu0 %vm687_vm3, %v6297_v5  ;;  %v7505_v5 = vrot.slane %v3779_v4, 4  ;;  %v3820_v46 = vshll.u32 %v7501_v10, 16  ;;  %v3824_v34 = vshrl.u32 %v7501_v10, 16  ;;  %v3835_v4 = vshrl.u32 %v5392_v7, 16 }
  0xe7   : > { %5750 = vmatprep.mubr.msk.bf16.mxu1 %vm687_vm3, %v8306_v45  ;;  %v3838_v27 = vshll.u32 %v5392_v7, 16  ;;  %v3844_v3 = vshll.u32 %v7513_v31, 16  ;;  %v3848_v50 = vshrl.u32 %v7513_v31, 16  ;;  %v7538_v45 = vld [vmem:[%s6461_s27 + $0x74] sm:$0x1]  ;;  %v3792_v18 = vrot.slane %v3790_v48, 5 }
  0xe8   : > { %v3859_v52 = vshrl.u32 %v5395_v62, 16  ;;  %v3862_v53 = vshll.u32 %v5395_v62, 16  ;;  %v8310_v7 = vcombine.low %v7183_v60, %v7208_v44  ;;  %v3802_v59 = vrot.slane %v3800_v8, 4  ;;  %v5398_v48 = vld [vmem:[%s6461_s27 + $0x9c] sm:$0xf] }
  0xe9   : > { %v3868_v63 = vshll.u32 %v7528_v25, 16  ;;  %v3872_v23 = vshrl.u32 %v7528_v25, 16  ;;  %v8311_v62 = vcombine.low %v7223_v17, %v7227_v57  ;;  %v7556_v44 = vld [vmem:[%s6461_s27 + $0x80] sm:$0x1]  ;;  %v3813_v60 = vrot.slane %v3811_v26, 4 }
  0xea   : > { %8312 = vst [vmem:[#allocation16_spill] sm:$0xff] %v7556_v44  ;;  %v3837_v31 = vrot.slane %v3835_v4, 4  ;;  %v3840_v8 = vrot.slane %v3838_v27, 5  ;;  %v7560_v10 = vrot.slane %v3844_v3, 5  ;;  %v3850_v51 = vrot.slane %v3848_v50, 4 }
  0xeb   : > { %v7563_v25 = vld [vmem:[%s6461_s27 + $0xa0] sm:$0xf]  ;;  %v3861_v17 = vrot.slane %v3859_v52, 4  ;;  %v3864_v57 = vrot.slane %v3862_v53, 5  ;;  %v3886_v9 = vshll.u32 %v5398_v48, 16  ;;  %v3793_v26 = vor.u32 %v3792_v18, %v7521_v33 }
  0xec   : > { %v3830_v27 = vshll.u32 %v7556_v44, 16  ;;  %v7575_v3 = vld [vmem:[%s6461_s27 + $0x98] sm:$0x1]  ;;  %v3892_v50 = vshll.u32 %v7563_v25, 16  ;;  %v3896_v52 = vshrl.u32 %v7563_v25, 16  ;;  %v3841_v22 = vor.u32 %v3840_v8, %v3837_v31 }
  0xed   : > { %5903 = vmatmul.mubr.msk.bf16.gmra.mrb[28].mxu0 %vm687_vm3, %v6298_v61  ;;  %v7546_v61 = vrot.slane %v3796_v6, 5  ;;  %v3826_v6 = vrot.slane %v3824_v34, 4  ;;  %v3874_v34 = vrot.slane %v3872_v23, 4  ;;  %v3854_v33 = vshll.u32 %v7566_v2, 16 }
  0xee   : > { %5751 = vmatmul.mubr.msk.bf16.gmra.mrb[12].mxu1 %vm687_vm3, %v8310_v7  ;;  %5908 = vmatprep.mubr.msk.bf16.mxu0 %vm687_vm3, %v7288_v20  ;;  %v3816_v7 = vrot.slane %v3814_v49, 5  ;;  %v7558_v20 = vrot.slane %v3820_v46, 5  ;;  %v3806_v49 = vshll.u32 %v7538_v45, 16  ;;  %v7570_v46 = vrot.slane %v3868_v63, 5 }
  0xef   : > { %5754 = vmatprep.mubr.msk.bf16.mxu1 %vm687_vm3, %v8311_v62  ;;  %v3883_v62 = vshrl.u32 %v5398_v48, 16  ;;  %v3803_v4 = vor.u32 %v3802_v59, %v7546_v61  ;;  %v3851_v23 = vor.u32 %v3850_v51, %v7560_v10  ;;  %v3865_v59 = vor.u32 %v3864_v57, %v3861_v17  ;;  %v7608_v57 = vld [vmem:[%s6461_s27 + $0xa4] sm:$0x1] }
  0xf0   : > { %v3817_v53 = vor.u32 %v3816_v7, %v3813_v60  ;;  %v3827_v48 = vor.u32 %v3826_v6, %v7558_v20  ;;  %v3888_v18 = vrot.slane %v3886_v9, 5  ;;  %v8313_v44 = vcombine.low %v7235_v11, %v7239_v40 }
  0xf1   : > { %v3885_v63 = vrot.slane %v3883_v62, 4  ;;  %v8314_v31 = vrot.slane %v7497_v54, 5  ;;  %v3808_v51 = vrot.slane %v3806_v49, 5  ;;  %v3875_v60 = vor.u32 %v3874_v34, %v7570_v46  ;;  %v7611_v34 = vld [vmem:[%s6461_s27 + $0xac] sm:$0xf] }
  0xf2   : > { %v3878_v9 = vshll.u32 %v7575_v3, 16  ;;  %v8315_v11 = vcombine.low %v7307_v39, %v7311_v55  ;;  %v3794_v40 = vrot.slane %v3793_v26, 4  ;;  %v7604_v54 = vrot.slane %v3892_v50, 5 }
  0xf3   : > { %v3818_v7 = vrot.slane %v3817_v53, 4  ;;  %v3828_v6 = vrot.slane %v3827_v48, 4  ;;  %v3832_v8 = vrot.slane %v3830_v27, 5  ;;  %v3856_v17 = vrot.slane %v3854_v33, 5  ;;  %v7621_v48 = vld [vmem:[%s6461_s27 + $0xb0] sm:$0x1] }
  0xf4   : > { %v3842_v39 = vrot.slane %v3841_v22, 4  ;;  %v3852_v55 = vrot.slane %v3851_v23, 4  ;;  %v3866_v62 = vrot.slane %v3865_v59, 4  ;;  %v3889_v49 = vor.u32 %v3888_v18, %v3885_v63 }
  0xf5   : > { %5909 = vmatmul.mubr.msk.bf16.vlgmr.msra.gmra.mrb[0].mxu0 %vm687_vm3, %v7351_v16  ;;  %v7594_v16 = vsel %vm6713_vm7, %v7519_v28, %v8314_v31  ;;  %v3898_v28 = vrot.slane %v3896_v52, 4  ;;  %v3880_v26 = vrot.slane %v3878_v9, 5  ;;  %v3799_v52 = vsel %vm6487_vm4, %v3794_v40, %v7546_v61 }
  0xf6   : > { %5755 = vmatmul.mubr.msk.bf16.gmra.mrb[16].mxu1 %vm687_vm3, %v8313_v44  ;;  %5941 = vmatpush3.bf16.msra.mxu0 %v7292_v14  ;;  %v3804_v14 = vrot.slane %v3803_v4, 4  ;;  %v5401_v44 = vld [vmem:[%s6461_s27 + $0xa8] sm:$0xf]  ;;  %v3902_v22 = vshll.u32 %v7608_v57, 16  ;;  %v3823_v33 = vsel %vm6487_vm4, %v3818_v7, %v7558_v20  ;;  %v3833_v23 = vsel %vm6487_vm4, %v3828_v6, %v3832_v8 }
  0xf7   : > { %5758 = vmatprep.mubr.msk.bf16.mxu1 %vm687_vm3, %v8315_v11  ;;  %5912 = vmatprep.mubr.msk.bf16.mxu0 %vm687_vm3, %v7362_v29  ;;  %v3876_v29 = vrot.slane %v3875_v60, 4  ;;  %v3907_v4 = vshrl.u32 %v5401_v44, 16  ;;  %v3910_v50 = vshll.u32 %v5401_v44, 16  ;;  %v3899_v53 = vor.u32 %v3898_v28, %v7604_v54  ;;  %v5450_v11 = vld [vmem:[%s6461_s27 + $0x48] sm:$0xe] }
  0xf8   : > { %v3809_v27 = vsel %vm6487_vm4, %v3804_v14, %v3808_v51  ;;  %v3916_v59 = vshll.u32 %v7611_v34, 16  ;;  %v3920_v61 = vshrl.u32 %v7611_v34, 16  ;;  %v3847_v63 = vsel %vm6487_vm4, %v3842_v39, %v7560_v10  ;;  %v7686_v39 = vld [vmem:[%s6461_s27 + $0xb8] sm:$0xf] }
  0xf9   : > { %v3857_v18 = vsel %vm6487_vm4, %v3852_v55, %v3856_v17  ;;  %v3871_v20 = vsel %vm6487_vm4, %v3866_v62, %v7570_v46  ;;  %v3890_v31 = vrot.slane %v3889_v49, 4  ;;  %v8316_v51 = vcombine.low %v7324_v12, %v7339_v35 }
  0xfa   : > { %v3909_v10 = vrot.slane %v3907_v4, 4  ;;  %v3912_v60 = vrot.slane %v3910_v50, 5  ;;  %v3926_v9 = vshll.u32 %v7621_v48, 16  ;;  %v8317_v46 = vcombine.low %v7409_v21, %v7434_v56  ;;  %v5404_v21 = vld [vmem:[%s6461_s27 + $0xb4] sm:$0xf] }
  0xfb   : > { %v5071_v12 = vcombine.low %v7485_v42, %v7492_v47  ;;  %v8318_v35 = vsel %vm6487_vm4, %v7505_v5, %v7494_v41  ;;  %v3900_v14 = vrot.slane %v3899_v53, 4  ;;  %v3904_v28 = vrot.slane %v3902_v22, 5  ;;  %v5452_v4 = vld [vmem:[%s6461_s27 + $0x60] sm:$0xe]  ;;  %v5453_v53 = vld [vmem:[%s6461_s27 + $0x6c] sm:$0xe] }
  0xfc   : > { %v5072_v56 = vcombine.low %v7509_v43, %v7594_v16  ;;  %v7669_v44 = vcombine.low %v3799_v52, %v3809_v27  ;;  %v7671_v42 = vrot.slane %v3916_v59, 5  ;;  %v3922_v47 = vrot.slane %v3920_v61, 4  ;;  %v8327_v16 = vld [vmem:[#allocation4_spill] sm:$0xff] }
  0xfd   : > { %5913 = vmatmul.mubr.msk.bf16.gmra.mrb[4].mxu0 %vm687_vm3, %v7465_v37  ;;  %v3881_v37 = vsel %vm6487_vm4, %v3876_v29, %v3880_v26  ;;  %v7673_v41 = vcombine.low %v3823_v33, %v3833_v23  ;;  %v7675_v5 = vcombine.low %v3847_v63, %v3857_v18  ;;  %v3895_v6 = vsel %vm6487_vm4, %v3890_v31, %v7604_v54  ;;  %v8320_v23 = vld [vmem:[#allocation11_spill] sm:$0xff]  ;;  %v5407_v63 = vld [vmem:[%s6461_s27 + $0xc0] sm:$0xf]  ;;  %v8322_v18 = vld [vmem:[#allocation9_spill] sm:$0xff] }
  0xfe   : > { %5759 = vmatmul.mubr.msk.bf16.gmra.mrb[20].mxu1 %vm687_vm3, %v8316_v51  ;;  %5916 = vmatprep.mubr.msk.bf16.mxu0 %vm687_vm3, %v7479_v58  ;;  %v8319_v58 = vsel %vm6487_vm4, %v7467_v19, %v7422_v1  ;;  %v7677_v7 = vcombine.low %v3871_v20, %v3881_v37  ;;  %v5466_v1 = vrot.slane %v5450_v11, 9  ;;  %v5451_v19 = vld [vmem:[%s6461_s27 + $0x54] sm:$0xe]  ;;  %v3913_v8 = vor.u32 %v3912_v60, %v3909_v10  ;;  %v8323_v31 = vld [vmem:[#allocation10_spill] sm:$0xff] }
  0xff   : > { %5762 = vmatprep.mubr.msk.bf16.mxu1 %vm687_vm3, %v8317_v46  ;;  %v5420_v40 = vcombine.low %v8319_v58, %v8318_v35  ;;  %v7683_v17 = vrot.slane %v3926_v9, 5  ;;  %v3931_v55 = vshrl.u32 %v5404_v21, 16  ;;  %v3905_v62 = vsel %vm6487_vm4, %v3900_v14, %v3904_v28  ;;  %v8324_v9 = vld [vmem:[#allocation12_spill] sm:$0xff]  ;;  %v7735_v35 = vld [vmem:[%s6461_s27 + $0xbc] sm:$0x1] }
 0x100   : > { %v3934_v49 = vshll.u32 %v5404_v21, 16  ;;  %v4390_v29 = vrot.slane %v7317_v0, 5  ;;  %v4393_v26 = vrot.slane %v7371_v38, 5  ;;  %v3923_v50 = vor.u32 %v3922_v47, %v7671_v42  ;;  %v7738_v58 = vld [vmem:[%s6461_s27 + $0xc4] sm:$0xf] }
 0x101   : > { %v5467_v52 = vrot.slane %v5451_v19, 9  ;;  %v4397_v54 = vrot.slane %v7328_v24, 5  ;;  %v4400_v27 = vrot.slane %v7380_v15, 5  ;;  %v3940_v22 = vshll.u32 %v7686_v39, 16  ;;  %v5454_v19 = vld [vmem:[%s6461_s27 + $0x78] sm:$0xe] }
 0x102   : > { %v3944_v33 = vshrl.u32 %v7686_v39, 16  ;;  %v7703_v0 = vsel %vm6713_vm7, %v5466_v1, %v4390_v29  ;;  %v4392_v38 = vrot.slane %v4390_v29, 4  ;;  %v8321_v59 = vcombine.low %v7442_v36, %v8320_v23  ;;  %v8325_v23 = vld [vmem:[#allocation13_spill] sm:$0xff] }
 0x103   : > { %v7710_v24 = vcombine.low %v3895_v6, %v3905_v62  ;;  %v7714_v15 = vsel %vm6713_vm7, %v5467_v52, %v4397_v54  ;;  %v5468_v61 = vrot.slane %v5452_v4, 9  ;;  %v4404_v20 = vrot.slane %v8322_v18, 5  ;;  %v6299_v6 = vld [vmem:[%s6461_s27 + $0xc] sm:$0xff]  }
 0x104   : > { %v7720_v36 = vsel %vm6713_vm7, %v4392_v38, %v4393_v26  ;;  %v4407_v51 = vrot.slane %v8323_v31, 5  ;;  %v5469_v37 = vrot.slane %v5453_v53, 9  ;;  %v4411_v11 = vrot.slane %v8324_v9, 5 }
 0x105   : > { %5917 = vmatmul.mubr.msk.bf16.gmra.mrb[8].mxu0 %vm687_vm3, %v7488_v30  ;;  %v4399_v30 = vrot.slane %v4397_v54, 4  ;;  %v5483_v10 = vcombine.low %v7703_v0, %v7720_v36  ;;  %v4414_v46 = vrot.slane %v7538_v45, 5  ;;  %v7744_v14 = vsel %vm6713_vm7, %v5468_v61, %v4404_v20 }
 0x106   : > { %5763 = vmatmul.mubr.msk.bf16.gmra.mrb[24].mxu1 %vm687_vm3, %v8321_v59  ;;  %5920 = vmatprep.mubr.msk.bf16.mxu0 %vm687_vm3, %v5420_v40  ;;  %v4406_v28 = vrot.slane %v4404_v20, 4  ;;  %v7746_v21 = vrot.slane %v3931_v55, 4  ;;  %v3955_v47 = vshrl.u32 %v5407_v63, 16  ;;  %v7750_v45 = vsel %vm6713_vm7, %v5469_v37, %v4411_v11  ;;  %v5181_v55 = vld [vmem:[%s6461_s27 + $0x78] sm:$0xf]  ;;  %v8326_v59 = vld [vmem:[#allocation16_spill] sm:$0xff] }
 0x107   : > { %5766 = vmatprep.mubr.msk.bf16.mxu1 %vm687_vm3, %v5071_v12  ;;  %v7728_v60 = vsel %vm6713_vm7, %v4399_v30, %v4400_v27  ;;  %v7732_v12 = vrot.slane %v3913_v8, 4  ;;  %v4413_v1 = vrot.slane %v4411_v11, 4  ;;  %v7754_v8 = vrot.slane %v3923_v50, 4 }
 0x108   : > { %v5484_v40 = vcombine.low %v7714_v15, %v7728_v60  ;;  %v7756_v62 = vrot.slane %v3934_v49, 5  ;;  %v3958_v29 = vshll.u32 %v5407_v63, 16  ;;  %v7760_v26 = vsel %vm6713_vm7, %v4406_v28, %v4407_v51  ;;  %v8329_v28 = vld [vmem:[#allocation14_spill] sm:$0xff] }
 0x109   : > { %v7763_v4 = vrot.slane %v3940_v22, 5  ;;  %v7765_v52 = vrot.slane %v3944_v33, 4  ;;  %v5485_v54 = vcombine.low %v7744_v14, %v7760_v26  ;;  %v7771_v27 = vsel %vm6713_vm7, %v4413_v1, %v4414_v46  ;;  %v5455_v33 = vld [vmem:[%s6461_s27 + $0x84] sm:$0xe]  ;;  %v6300_v1 = vld [vmem:[%s6461_s27 + $0x18] sm:$0xff]  }
 0x10a   : > { %v3950_v49 = vshll.u32 %v7735_v35, 16  ;;  %v3964_v50 = vshll.u32 %v7738_v58, 16  ;;  %v5486_v53 = vcombine.low %v7750_v45, %v7771_v27  ;;  %v5470_v22 = vrot.slane %v5454_v19, 9  ;;  %v6362_v60 = vld [vmem:[%s6461_s27 + $0xa0] sm:$0xf] }
 0x10b   : > { %v3957_v38 = vrot.slane %v3955_v47, 4  ;;  %v4421_v30 = vrot.slane %v8326_v59, 5  ;;  %v2277_v61 = vshrl.u32 %v5181_v55, 16  ;;  %v3960_v63 = vrot.slane %v3958_v29, 5  ;;  %v5410_v29 = vld [vmem:[%s6461_s27 + $0xcc] sm:$0xf] }
 0x10c   : > { %v3968_v18 = vshrl.u32 %v7738_v58, 16  ;;  %v2280_v43 = vshll.u32 %v5181_v55, 16  ;;  %v5471_v37 = vrot.slane %v5455_v33, 9  ;;  %v3919_v9 = vsel %vm6487_vm4, %v7732_v12, %v7671_v42  ;;  %v7814_v55 = vld [vmem:[%s6461_s27 + $0xd0] sm:$0xf] }
 0x10d   : > { %5921 = vmatmul.mubr.msk.bf16.gmra.mrb[12].mxu0 %vm687_vm3, %v7669_v44  ;;  %v4418_v44 = vrot.slane %v8325_v23, 5  ;;  %v2279_v51 = vrot.slane %v2277_v61, 4  ;;  %v3937_v11 = vor.u32 %v7756_v62, %v7746_v21  ;;  %v4425_v47 = vrot.slane %v8329_v28, 5  ;;  %v6301_v21 = vld [vmem:[%s6461_s27 + $0x24] sm:$0xff]   ;;  %v6366_v27 = vld [vmem:[%s6461_s27 + $0xac] sm:$0xf] }
 0x10e   : > { %5767 = vmatmul.mubr.msk.bf16.gmra.mrb[28].mxu1 %vm687_vm3, %v5072_v56  ;;  %5924 = vmatprep.mubr.msk.bf16.mxu0 %vm687_vm3, %v7673_v41  ;;  %v8328_v56 = vld [vmem:[#allocation5_spill] sm:$0xff]  ;;  %v2282_v46 = vrot.slane %v2280_v43, 5  ;;  %v3929_v19 = vsel %vm6487_vm4, %v7754_v8, %v7683_v17  ;;  %v4428_v12 = vrot.slane %v7566_v2, 5  ;;  %v7822_v62 = vrot.slane %v3964_v50, 5  ;;  %v5456_v8 = vld [vmem:[%s6461_s27 + $0x90] sm:$0xe] }
 0x10f   : > { %5772 = vmatprep.mubr.msk.bf16.mxu1 %vm687_vm3, %v6299_v6  ;;  %v2299_v41 = vsel %vm6487_vm4, %v8328_v56, %v8327_v16  ;;  %v7796_v20 = vsel %vm6713_vm7, %v5470_v22, %v4418_v44  ;;  %v4420_v31 = vrot.slane %v4418_v44, 4  ;;  %v3947_v6 = vor.u32 %v7765_v52, %v7763_v4  ;;  %v7828_v52 = vld [vmem:[%s6461_s27 + $0xc8] sm:$0x1]  ;;  %v8331_v16 = vld [vmem:[#allocation2_spill] sm:$0xff] }
 0x110   : > { %v3970_v22 = vrot.slane %v3968_v18, 4  ;;  %v2283_v17 = vor.u32 %v2282_v46, %v2279_v51  ;;  %v3952_v23 = vrot.slane %v3950_v49, 5  ;;  %v3961_v44 = vor.u32 %v3960_v63, %v3957_v38  ;;  %v8332_v51 = vld [vmem:[#allocation3_spill] sm:$0xff] }
 0x111   : > { %v7818_v42 = vsel %vm6713_vm7, %v4420_v31, %v4421_v30  ;;  %v7832_v59 = vsel %vm6713_vm7, %v5471_v37, %v4425_v47  ;;  %v4427_v30 = vrot.slane %v4425_v47, 4  ;;  %v3979_v2 = vshrl.u32 %v5410_v29, 16 }
 0x112   : > { %v5487_v33 = vcombine.low %v7796_v20, %v7818_v42  ;;  %v3982_v50 = vshll.u32 %v5410_v29, 16  ;;  %v3988_v61 = vshll.u32 %v7814_v55, 16  ;;  %v2284_v18 = vrot.slane %v2283_v17, 4  ;;  %v6302_v29 = vld [vmem:[%s6461_s27 + $0x30] sm:$0xff]  }
 0x113   : > { %v3992_v49 = vshrl.u32 %v7814_v55, 16  ;;  %v7843_v38 = vsel %vm6713_vm7, %v4427_v30, %v4428_v12  ;;  %v5472_v63 = vrot.slane %v5456_v8, 9  ;;  %v3971_v56 = vor.u32 %v3970_v22, %v7822_v62 }
 0x114   : > { %v3974_v31 = vshll.u32 %v7828_v52, 16  ;;  %v5488_v37 = vcombine.low %v7832_v59, %v7843_v38  ;;  %v5426_v46 = vcombine.low %v3919_v9, %v3929_v19  ;;  %v3938_v28 = vrot.slane %v3937_v11, 4  ;;  %v5457_v11 = vld [vmem:[%s6461_s27 + $0x9c] sm:$0xe] }
 0x115   : > { %5925 = vmatmul.mubr.msk.bf16.gmra.mrb[16].mxu0 %vm687_vm3, %v7675_v5  ;;  %v8330_v5 = vld [vmem:[#allocation15_spill] sm:$0xff]  ;;  %v3948_v47 = vrot.slane %v3947_v6, 4  ;;  %v3962_v12 = vrot.slane %v3961_v44, 4  ;;  %v4435_v8 = vrot.slane %v7575_v3, 5  ;;  %v3981_v30 = vrot.slane %v3979_v2, 4  ;;  %v6303_v19 = vld [vmem:[%s6461_s27 + $0x3c] sm:$0xff]  }
 0x116   : > { %5773 = vmatmul.mubr.msk.bf16.vlgmr.msra.gmra.mrb[0].mxu1 %vm687_vm3, %v6300_v1  ;;  %5928 = vmatprep.mubr.msk.bf16.mxu0 %vm687_vm3, %v7677_v7  ;;  %v4432_v43 = vrot.slane %v8330_v5, 5  ;;  %v2289_v7 = vsel %vm6487_vm4, %v2284_v18, %v8332_v51  ;;  %v3984_v18 = vrot.slane %v3982_v50, 5  ;;  %v7866_v5 = vrot.slane %v3988_v61, 5 }
 0x117   : > { %5975 = vmatpush3.bf16.msra.mxu1 %v8331_v16  ;;  %5776 = vmatprep.mubr.msk.bf16.mxu1 %vm687_vm3, %v6301_v21  ;;  %v7855_v1 = vcombine.low %v2289_v7, %v2299_v41  ;;  %v7859_v21 = vld [vmem:[%s6461_s27 + $0xd4] sm:$0x1]  ;;  %v3994_v9 = vrot.slane %v3992_v49, 4  ;;  %v3972_v41 = vrot.slane %v3971_v56, 4  ;;  %v3976_v6 = vrot.slane %v3974_v31, 5 }
 0x118   : > { %v7863_v22 = vsel %vm6713_vm7, %v5472_v63, %v4432_v43  ;;  %v4434_v17 = vrot.slane %v4432_v43, 4  ;;  %v3943_v63 = vsel %vm6487_vm4, %v3938_v28, %v7763_v4  ;;  %v3953_v2 = vsel %vm6487_vm4, %v3948_v47, %v3952_v23  ;;  %v6353_v16 = vld [vmem:[%s6461_s27 + $0x1c] sm:$0xf]  ;;  %v5458_v28 = vld [vmem:[%s6461_s27 + $0xa8] sm:$0xe] }
 0x119   : > { %v3998_v50 = vshll.u32 %v7859_v21, 16  ;;  %v5473_v61 = vrot.slane %v5457_v11, 9  ;;  %v4439_v49 = vrot.slane %v7563_v25, 5  ;;  %v3967_v4 = vsel %vm6487_vm4, %v3962_v12, %v7822_v62  ;;  %v5446_v62 = vld [vmem:[%s6461_s27 + $0x18] sm:$0xe]  ;;  %v6304_v47 = vld [vmem:[%s6461_s27 + $0x48] sm:$0xff]  }
 0x11a   : > { %v7872_v44 = vsel %vm6713_vm7, %v4434_v17, %v4435_v8  ;;  %v3995_v43 = vor.u32 %v3994_v9, %v7866_v5  ;;  %v4442_v23 = vrot.slane %v7608_v57, 5  ;;  %v3977_v25 = vsel %vm6487_vm4, %v3972_v41, %v3976_v6  ;;  %v6354_v11 = vld [vmem:[%s6461_s27 + $0x20] sm:$0x1] }
 0x11b   : > { %v5489_v3 = vcombine.low %v7863_v22, %v7872_v44  ;;  %v4362_v56 = vrot.slane %v6353_v16, 5  ;;  %v7898_v31 = vsel %vm6713_vm7, %v5473_v61, %v4439_v49  ;;  %v4441_v51 = vrot.slane %v4439_v49, 4  ;;  %v5459_v49 = vld [vmem:[%s6461_s27 + $0xb4] sm:$0xe] }
 0x11c   : > { %v5427_v7 = vcombine.low %v3943_v63, %v3953_v2  ;;  %v3996_v17 = vrot.slane %v3995_v43, 4  ;;  %v5474_v41 = vrot.slane %v5458_v28, 9  ;;  %v4446_v6 = vrot.slane %v7611_v34, 5  ;;  %v5447_v2 = vld [vmem:[%s6461_s27 + $0x24] sm:$0xe] }
 0x11d   : > { %5929 = vmatmul.mubr.msk.bf16.gmra.mrb[20].mxu0 %vm687_vm3, %v7710_v24  ;;  %v3985_v24 = vor.u32 %v3984_v18, %v3981_v30  ;;  %v7903_v57 = vsel %vm6713_vm7, %v4441_v51, %v4442_v23  ;;  %v6305_v30 = vld [vmem:[%s6461_s27 + $0x54] sm:$0xff]   ;;  %v5462_v18 = vrot.slane %v5446_v62, 9  ;;  %v4364_v9 = vrot.slane %v4362_v56, 4  ;;  %v6357_v28 = vld [vmem:[%s6461_s27 + $0x2c] sm:$0x1] }
 0x11e   : > { %5777 = vmatmul.mubr.msk.bf16.gmra.mrb[4].mxu1 %vm687_vm3, %v6302_v29  ;;  %5932 = vmatprep.mubr.msk.bf16.mxu0 %vm687_vm3, %v5426_v46  ;;  %v4000_v46 = vrot.slane %v3998_v50, 5  ;;  %v5428_v29 = vcombine.low %v3967_v4, %v3977_v25  ;;  %v5490_v8 = vcombine.low %v7898_v31, %v7903_v57  ;;  %v4449_v63 = vrot.slane %v7621_v48, 5  ;;  %v6355_v50 = vld [vmem:[%s6461_s27 + $0x28] sm:$0xf]  ;;  %v5448_v25 = vld [vmem:[%s6461_s27 + $0x30] sm:$0xe] }
 0x11f   : > { %5780 = vmatprep.mubr.msk.bf16.mxu1 %vm687_vm3, %v6303_v19  ;;  %v3986_v12 = vrot.slane %v3985_v24, 4  ;;  %v4365_v19 = vrot.slane %v6354_v11, 5  ;;  %v4369_v61 = vrot.slane %v6355_v50, 5  ;;  %v7926_v48 = vsel %vm6713_vm7, %v5474_v41, %v4446_v6  ;;  %v6307_v11 = vld [vmem:[%s6461_s27 + $0x6c] sm:$0xff]   ;;  %v8333_v41 = vld [vmem:[#allocation6_spill] sm:$0xff] }
 0x120   : > { %v4001_v34 = vsel %vm6487_vm4, %v3996_v17, %v4000_v46  ;;  %v4448_v24 = vrot.slane %v4446_v6, 4  ;;  %v4363_v43 = vsel %vm6713_vm7, %v5462_v18, %v4362_v56  ;;  %v5463_v51 = vrot.slane %v5447_v2, 9  ;;  %v5460_v50 = vld [vmem:[%s6461_s27 + $0xc0] sm:$0xe]  ;;  %v6371_v31 = vld [vmem:[%s6461_s27 + $0xc8] sm:$0x1] }
 0x121   : > { %v3991_v4 = vsel %vm6487_vm4, %v3986_v12, %v7866_v5  ;;  %v4366_v23 = vsel %vm6713_vm7, %v4364_v9, %v4365_v19  ;;  %v6356_v5 = vld [vmem:[%s6461_s27 + $0x34] sm:$0xf]  ;;  %v6306_v12 = vld [vmem:[%s6461_s27 + $0x60] sm:$0xff]   ;;  %v5464_v18 = vrot.slane %v5448_v25, 9  ;;  %v4456_v9 = vrot.slane %v7735_v35, 5 }
 0x122   : > { %v4376_v16 = vrot.slane %v6356_v5, 5  ;;  %v7937_v62 = vsel %vm6713_vm7, %v4448_v24, %v4449_v63  ;;  %v5429_v46 = vcombine.low %v3991_v4, %v4001_v34  ;;  %v5479_v17 = vcombine.low %v4363_v43, %v4366_v23  ;;  %v5449_v24 = vld [vmem:[%s6461_s27 + $0x3c] sm:$0xe] }
 0x123   : > { %v5491_v56 = vcombine.low %v7926_v48, %v7937_v62  ;;  %v4379_v6 = vrot.slane %v8333_v41, 5  ;;  %v4370_v35 = vsel %vm6713_vm7, %v5463_v51, %v4369_v61  ;;  %v5476_v5 = vrot.slane %v5460_v50, 9 }
 0x124   : > { %v4378_v19 = vrot.slane %v4376_v16, 4  ;;  %v4377_v23 = vsel %vm6713_vm7, %v5464_v18, %v4376_v16  ;;  %v4463_v51 = vrot.slane %v7828_v52, 5  ;;  %v2440_v57 = vshll.u32 %v6371_v31, 16 }
 0x125   : > { %5933 = vmatmul.mubr.msk.bf16.gmra.mrb[24].mxu0 %vm687_vm3, %v5427_v7  ;;  %v5475_v7 = vrot.slane %v5459_v49, 9 }
 0x126   : > { %5781 = vmatmul.mubr.msk.bf16.gmra.mrb[8].mxu1 %vm687_vm3, %v6304_v47  ;;  %5936 = vmatprep.mubr.msk.bf16.mxu0 %vm687_vm3, %v5428_v29  ;;  %v4372_v47 = vrot.slane %v6357_v28, 5  ;;  %v4453_v29 = vrot.slane %v7686_v39, 5  ;;  %v8334_v39 = vld [vmem:[#allocation7_spill] sm:$0xff]  ;;  %v4380_v25 = vsel %vm6713_vm7, %v4378_v19, %v4379_v6  ;;  %v5465_v28 = vrot.slane %v5449_v24, 9 }
 0x127   : > { %5784 = vmatprep.mubr.msk.bf16.mxu1 %vm687_vm3, %v6305_v30  ;;  %v4371_v30 = vrot.slane %v4369_v61, 4  ;;  %v4383_v49 = vrot.slane %v8334_v39, 5  ;;  %v4460_v61 = vrot.slane %v7738_v58, 5  ;;  %v6358_v39 = vld [vmem:[%s6461_s27 + $0x70] sm:$0xf]  ;;  %v4467_v24 = vrot.slane %v7814_v55, 5 }
 0x128   : > { %v7949_v63 = vsel %vm6713_vm7, %v5475_v7, %v4453_v29  ;;  %v4455_v2 = vrot.slane %v4453_v29, 4  ;;  %v5178_v7 = vld [vmem:[%s6461_s27 + $0x6c] sm:$0xf]  ;;  %v8335_v29 = vld [vmem:[#allocation8_spill] sm:$0xff] }
 0x129   : > { %v4373_v34 = vsel %vm6713_vm7, %v4371_v30, %v4372_v47  ;;  %v4385_v47 = vrot.slane %v4383_v49, 4  ;;  %v6308_v30 = vld [vmem:[%s6461_s27 + $0x78] sm:$0xff]   ;;  %v7980_v16 = vsel %vm6713_vm7, %v5476_v5, %v4460_v61  ;;  %v4462_v18 = vrot.slane %v4460_v61, 4 }
 0x12a   : > { %v7956_v4 = vsel %vm6713_vm7, %v4455_v2, %v4456_v9  ;;  %v5481_v9 = vcombine.low %v4377_v23, %v4380_v25  ;;  %v2253_v19 = vshrl.u32 %v5178_v7, 16  ;;  %v2256_v41 = vshll.u32 %v5178_v7, 16 }
 0x12b   : > { %v5492_v43 = vcombine.low %v7949_v63, %v7956_v4  ;;  %v7985_v58 = vsel %vm6713_vm7, %v4462_v18, %v4463_v51  ;;  %v4384_v6 = vsel %vm6713_vm7, %v5465_v28, %v4383_v49  ;;  %v4470_v49 = vrot.slane %v7859_v21, 5  ;;  %v6310_v51 = vld [vmem:[%s6461_s27 + $0x90] sm:$0xff]   ;;  %v6311_v21 = vld [vmem:[%s6461_s27 + $0x9c] sm:$0xff]  }
 0x12c   : > { %v5493_v50 = vcombine.low %v7980_v16, %v7985_v58  ;;  %v2255_v23 = vrot.slane %v2253_v19, 4  ;;  %v2258_v25 = vrot.slane %v2256_v41, 5  ;;  %v4469_v7 = vrot.slane %v4467_v24, 4 }
 0x12d   : > { %5937 = vmatmul.mubr.msk.bf16.gmra.mrb[28].mxu0 %vm687_vm3, %v5429_v46  ;;  %v5480_v46 = vcombine.low %v4370_v35, %v4373_v34  ;;  %v2262_v35 = vshll.u32 %v6358_v39, 16  ;;  %v2266_v34 = vshrl.u32 %v6358_v39, 16 }
 0x12e   : > { %5785 = vmatmul.mubr.msk.bf16.gmra.mrb[12].mxu1 %vm687_vm3, %v6306_v12  ;;  %5942 = vmatprep.mubr.msk.bf16.mxu0 %vm687_vm3, %v5479_v17  ;;  %v4386_v12 = vrot.slane %v8335_v29, 5  ;;  %v5461_v17 = vld [vmem:[%s6461_s27 + $0xcc] sm:$0xe]  ;;  %v8007_v55 = vsel %vm6713_vm7, %v4469_v7, %v4470_v49 }
 0x12f   : > { %5788 = vmatprep.mubr.msk.bf16.mxu1 %vm687_vm3, %v6307_v11  ;;  %v6309_v11 = vld [vmem:[%s6461_s27 + $0x84] sm:$0xff]   ;;  %v5477_v52 = vrot.slane %v5461_v17, 9  ;;  %v2268_v28 = vrot.slane %v2266_v34, 4  ;;  %v6359_v17 = vld [vmem:[%s6461_s27 + $0x74] sm:$0x1] }
 0x130   : > { %v4387_v2 = vsel %vm6713_vm7, %v4385_v47, %v4386_v12  ;;  %v5184_v47 = vld [vmem:[%s6461_s27 + $0x84] sm:$0xf]  ;;  %v2259_v12 = vor.u32 %v2258_v25, %v2255_v23  ;;  %v6313_v34 = vld [vmem:[%s6461_s27 + $0xb4] sm:$0xff]  }
 0x131   : > { %v8002_v5 = vsel %vm6713_vm7, %v5477_v52, %v4467_v24  ;;  %v5482_v61 = vcombine.low %v4384_v6, %v4387_v2  ;;  %v2304_v18 = vshll.u32 %v5184_v47, 16  ;;  %v5187_v6 = vld [vmem:[%s6461_s27 + $0x90] sm:$0xf]  ;;  %v6312_v2 = vld [vmem:[%s6461_s27 + $0xa8] sm:$0xff]  }
 0x132   : > { %v5494_v29 = vcombine.low %v8002_v5, %v8007_v55  ;;  %v2260_v52 = vrot.slane %v2259_v12, 4  ;;  %v2325_v23 = vshrl.u32 %v5187_v6, 16  ;;  %v2328_v25 = vshll.u32 %v5187_v6, 16 }
 0x133   : > { %v2358_v12 = vshll.u32 %v6362_v60, 16 }
 0x134   : > { %v2330_v14 = vrot.slane %v2328_v25, 5  ;;  %v6365_v25 = vld [vmem:[%s6461_s27 + $0xa4] sm:$0x1] }
 0x135   : > { %5943 = vmatmul.mubr.msk.bf16.vlgmr.msra.gmra.mrb[0].mxu0 %vm687_vm3, %v5480_v46  ;;  %v2264_v46 = vrot.slane %v2262_v35, 5  ;;  %v5190_v35 = vld [vmem:[%s6461_s27 + $0x9c] sm:$0xf]  ;;  %v8049_v6 = vrot.slane %v2358_v12, 5 }
 0x136   : > { %5789 = vmatmul.mubr.msk.bf16.gmra.mrb[16].mxu1 %vm687_vm3, %v6308_v30  ;;  %5946 = vmatprep.mubr.msk.bf16.mxu0 %vm687_vm3, %v5481_v9  ;;  %v2272_v30 = vshll.u32 %v6359_v17, 16  ;;  %v2301_v9 = vshrl.u32 %v5184_v47, 16  ;;  %v2352_v47 = vshll.u32 %v5190_v35, 16  ;;  %v6363_v17 = vld [vmem:[%s6461_s27 + $0x8c] sm:$0x1] }
 0x137   : > { %5792 = vmatprep.mubr.msk.bf16.mxu1 %vm687_vm3, %v6309_v11  ;;  %v2269_v13 = vor.u32 %v2268_v28, %v2264_v46  ;;  %v6360_v11 = vld [vmem:[%s6461_s27 + $0x88] sm:$0xf]  ;;  %v2265_v7 = vsel %vm6487_vm4, %v2260_v52, %v2264_v46 }
 0x138   : > { %v2310_v19 = vshll.u32 %v6360_v11, 16  ;;  %v2314_v41 = vshrl.u32 %v6360_v11, 16  ;;  %v2274_v0 = vrot.slane %v2272_v30, 5  ;;  %v2303_v36 = vrot.slane %v2301_v9, 4 }
 0x139   : > { %v2270_v39 = vrot.slane %v2269_v13, 4  ;;  %v2320_v30 = vshll.u32 %v6363_v17, 16  ;;  %v2327_v9 = vrot.slane %v2325_v23, 4  ;;  %v2354_v11 = vrot.slane %v2352_v47, 5 }
 0x13a   : > { %v8026_v24 = vrot.slane %v2310_v19, 5  ;;  %v2316_v49 = vrot.slane %v2314_v41, 4  ;;  %v6314_v19 = vld [vmem:[%s6461_s27 + $0xc0] sm:$0xff]  }
 0x13b   : > { %v2275_v46 = vsel %vm6487_vm4, %v2270_v39, %v2274_v0  ;;  %v5193_v39 = vld [vmem:[%s6461_s27 + $0xa8] sm:$0xf] }
 0x13c   : > { %v2317_v13 = vor.u32 %v2316_v49, %v8026_v24  ;;  %v5211_v41 = vcombine.low %v2265_v7, %v2275_v46  ;;  %v2368_v7 = vshll.u32 %v6365_v25, 16  ;;  %v2376_v45 = vshll.u32 %v5193_v39, 16 }
 0x13d   : > { %5947 = vmatmul.mubr.msk.bf16.gmra.mrb[4].mxu0 %vm687_vm3, %v5482_v61  ;;  %v6361_v61 = vld [vmem:[%s6461_s27 + $0x94] sm:$0xf] }
 0x13e   : > { %5793 = vmatmul.mubr.msk.bf16.gmra.mrb[20].mxu1 %vm687_vm3, %v6310_v51  ;;  %5950 = vmatprep.mubr.msk.bf16.mxu0 %vm687_vm3, %v5483_v10  ;;  %v2306_v10 = vrot.slane %v2304_v18, 5  ;;  %v2334_v51 = vshll.u32 %v6361_v61, 16  ;;  %v2338_v28 = vshrl.u32 %v6361_v61, 16  ;;  %v2318_v0 = vrot.slane %v2317_v13, 4 }
 0x13f   : > { %5796 = vmatprep.mubr.msk.bf16.mxu1 %vm687_vm3, %v6311_v21  ;;  %v2349_v21 = vshrl.u32 %v5190_v35, 16  ;;  %v6364_v35 = vld [vmem:[%s6461_s27 + $0x98] sm:$0x1]  ;;  %v2373_v61 = vshrl.u32 %v5193_v39, 16  ;;  %v5199_v39 = vld [vmem:[%s6461_s27 + $0xc0] sm:$0xf] }
 0x140   : > { %v2307_v15 = vor.u32 %v2306_v10, %v2303_v36  ;;  %v8046_v26 = vrot.slane %v2334_v51, 5  ;;  %v2322_v36 = vrot.slane %v2320_v30, 5  ;;  %v2331_v10 = vor.u32 %v2330_v14, %v2327_v9  ;;  %v5196_v51 = vld [vmem:[%s6461_s27 + $0xb4] sm:$0xf] }
 0x141   : > { %v2351_v18 = vrot.slane %v2349_v21, 4  ;;  %v2386_v21 = vshrl.u32 %v6366_v27, 16  ;;  %v2397_v20 = vshrl.u32 %v5196_v51, 16  ;;  %v2400_v42 = vshll.u32 %v5196_v51, 16 }
 0x142   : > { %v2308_v52 = vrot.slane %v2307_v15, 4  ;;  %v2323_v46 = vsel %vm6487_vm4, %v2318_v0, %v2322_v36  ;;  %v2332_v15 = vrot.slane %v2331_v10, 4  ;;  %v2370_v30 = vrot.slane %v2368_v7, 5 }
 0x143   : > { %v2355_v23 = vor.u32 %v2354_v11, %v2351_v18  ;;  %v2375_v9 = vrot.slane %v2373_v61, 4  ;;  %v2388_v11 = vrot.slane %v2386_v21, 4  ;;  %v6370_v61 = vld [vmem:[%s6461_s27 + $0xbc] sm:$0x1] }
 0x144   : > { %v2313_v47 = vsel %vm6487_vm4, %v2308_v52, %v8026_v24  ;;  %v2337_v0 = vsel %vm6487_vm4, %v2332_v15, %v8046_v26  ;;  %v2416_v22 = vshll.u32 %v6370_v61, 16 }
 0x145   : > { %5951 = vmatmul.mubr.msk.bf16.gmra.mrb[8].mxu0 %vm687_vm3, %v5484_v40  ;;  %v2362_v40 = vshrl.u32 %v6362_v60, 16  ;;  %v2356_v17 = vrot.slane %v2355_v23, 4  ;;  %v5213_v24 = vcombine.low %v2313_v47, %v2323_v46 }
 0x146   : > { %5797 = vmatmul.mubr.msk.bf16.gmra.mrb[24].mxu1 %vm687_vm3, %v6312_v2  ;;  %5954 = vmatprep.mubr.msk.bf16.mxu0 %vm687_vm3, %v5485_v54  ;;  %v2340_v54 = vrot.slane %v2338_v28, 4 }
 0x147   : > { %5800 = vmatprep.mubr.msk.bf16.mxu1 %vm687_vm3, %v6313_v34  ;;  %v2364_v2 = vrot.slane %v2362_v40, 4  ;;  %v2344_v34 = vshll.u32 %v6364_v35, 16  ;;  %v2361_v10 = vsel %vm6487_vm4, %v2356_v17, %v8049_v6  ;;  %v2442_v17 = vrot.slane %v2440_v57, 5 }
 0x148   : > { %v2341_v49 = vor.u32 %v2340_v54, %v8046_v26  ;;  %v2378_v54 = vrot.slane %v2376_v45, 5  ;;  %v6368_v26 = vld [vmem:[%s6461_s27 + $0xb0] sm:$0x1] }
 0x149   : > { %v2365_v28 = vor.u32 %v2364_v2, %v8049_v6  ;;  %v2346_v60 = vrot.slane %v2344_v34, 5  ;;  %v2392_v35 = vshll.u32 %v6368_v26, 16  ;;  %v2421_v34 = vshrl.u32 %v5199_v39, 16 }
 0x14a   : > { %v2342_v13 = vrot.slane %v2341_v49, 4  ;;  %v2379_v38 = vor.u32 %v2378_v54, %v2375_v9  ;;  %v2424_v6 = vshll.u32 %v5199_v39, 16  ;;  %v6369_v49 = vld [vmem:[%s6461_s27 + $0xc4] sm:$0xf] }
 0x14b   : > { %v2366_v14 = vrot.slane %v2365_v28, 4  ;;  %v2430_v23 = vshll.u32 %v6369_v49, 16  ;;  %v2434_v25 = vshrl.u32 %v6369_v49, 16  ;;  %v2394_v45 = vrot.slane %v2392_v35, 5 }
 0x14c   : > { %v2347_v36 = vsel %vm6487_vm4, %v2342_v13, %v2346_v60  ;;  %v2380_v51 = vrot.slane %v2379_v38, 4  ;;  %v2418_v60 = vrot.slane %v2416_v22, 5 }
 0x14d   : > { %5955 = vmatmul.mubr.msk.bf16.gmra.mrb[12].mxu0 %vm687_vm3, %v5486_v53  ;;  %v2382_v53 = vshll.u32 %v6366_v27, 16  ;;  %v2371_v59 = vsel %vm6487_vm4, %v2366_v14, %v2370_v30  ;;  %v5214_v44 = vcombine.low %v2337_v0, %v2347_v36  ;;  %v2423_v27 = vrot.slane %v2421_v34, 4 }
 0x14e   : > { %5801 = vmatmul.mubr.msk.bf16.gmra.mrb[28].mxu1 %vm687_vm3, %v6314_v19  ;;  %5958 = vmatprep.mubr.msk.bf16.mxu0 %vm687_vm3, %v5487_v33  ;;  %v6367_v33 = vld [vmem:[%s6461_s27 + $0xb8] sm:$0xf]  ;;  %v2399_v19 = vrot.slane %v2397_v20, 4  ;;  %v2432_v21 = vrot.slane %v2430_v23, 5  ;;  %v2436_v47 = vrot.slane %v2434_v25, 4 }
 0x14f   : > { %5822 = vmatprep.mubr.msk.bf16.mxu1 %vm687_vm3, %v5211_v41  ;;  %v2406_v12 = vshll.u32 %v6367_v33, 16  ;;  %v2410_v40 = vshrl.u32 %v6367_v33, 16  ;;  %v2384_v18 = vrot.slane %v2382_v53, 5  ;;  %v2402_v41 = vrot.slane %v2400_v42, 5 }
 0x150   : > { %v2426_v53 = vrot.slane %v2424_v6, 5 }
 0x151   : > { %v2408_v52 = vrot.slane %v2406_v12, 5  ;;  %v2412_v2 = vrot.slane %v2410_v40, 4  ;;  %v2385_v20 = vsel %vm6487_vm4, %v2380_v51, %v2384_v18  ;;  %v2437_v12 = vor.u32 %v2436_v47, %v2432_v21 }
 0x152   : > { %v2427_v33 = vor.u32 %v2426_v53, %v2423_v27 }
 0x153   : > { %v2413_v7 = vor.u32 %v2412_v2, %v2408_v52  ;;  %v2438_v13 = vrot.slane %v2437_v12, 4  ;;  %v8148_v2 = vld [vmem:[%s8267_s2] ss:$0 sm:$0xff] }
 0x154   : > { %v2428_v40 = vrot.slane %v2427_v33, 4 }
 0x155   : > { %5959 = vmatmul.mubr.msk.bf16.gmra.mrb[16].mxu0 %vm687_vm3, %v5488_v37  ;;  %v2389_v37 = vor.u32 %v2388_v11, %v2384_v18  ;;  %v2414_v15 = vrot.slane %v2413_v7, 4  ;;  %v2443_v9 = vsel %vm6487_vm4, %v2438_v13, %v2442_v17 }
 0x156   : > { %5823 = vmatmul.mubr.msk.bf16.vlgmr.msra.gmra.mrb[16].mxu1 %vm687_vm3, %v7855_v1  ;;  %5962 = vmatprep.mubr.msk.bf16.mxu0 %vm687_vm3, %v5489_v3  ;;  %v2403_v1 = vor.u32 %v2402_v41, %v2399_v19  ;;  %v5215_v3 = vcombine.low %v2361_v10, %v2371_v59  ;;  %v2433_v30 = vsel %vm6487_vm4, %v2428_v40, %v2432_v21 }
 0x157   : > { %5826 = vmatprep.mubr.msk.bf16.mxu1 %vm687_vm3, %v5213_v24  ;;  %v2390_v28 = vrot.slane %v2389_v37, 4  ;;  %v2419_v48 = vsel %vm6487_vm4, %v2414_v15, %v2418_v60  ;;  %v5218_v14 = vcombine.low %v2433_v30, %v2443_v9 }
 0x158   : > { %v2404_v46 = vrot.slane %v2403_v1, 4 }
 0x159   : > { %v2395_v42 = vsel %vm6487_vm4, %v2390_v28, %v2394_v45 }
 0x15a   : > { %v5216_v62 = vcombine.low %v2385_v20, %v2395_v42 }
 0x15d   : > { %5963 = vmatmul.mubr.msk.bf16.gmra.mrb[20].mxu0 %vm687_vm3, %v5490_v8  ;;  %v2409_v8 = vsel %vm6487_vm4, %v2404_v46, %v2408_v52 }
 0x15e   : > { %5827 = vmatmul.mubr.msk.bf16.gmra.mrb[20].mxu1 %vm687_vm3, %v5214_v44  ;;  %5966 = vmatprep.mubr.msk.bf16.mxu0 %vm687_vm3, %v5491_v56  ;;  %v5217_v56 = vcombine.low %v2409_v8, %v2419_v48 }
 0x15f   : > { %5830 = vmatprep.mubr.msk.bf16.mxu1 %vm687_vm3, %v5215_v3 }
 0x165   : > { %5967 = vmatmul.mubr.msk.bf16.gmra.mrb[24].mxu0 %vm687_vm3, %v5492_v43 }
 0x166   : > { %5831 = vmatmul.mubr.msk.bf16.gmra.mrb[24].mxu1 %vm687_vm3, %v5216_v62  ;;  %5970 = vmatprep.mubr.msk.bf16.mxu0 %vm687_vm3, %v5493_v50 }
 0x167   : > { %5834 = vmatprep.mubr.msk.bf16.mxu1 %vm687_vm3, %v5217_v56 }
 0x16d   : > { %5971 = vmatmul.mubr.msk.bf16.gmra.mrb[28].mxu0 %vm687_vm3, %v5494_v29 }
 0x16e   : > { %5835 = vmatmul.mubr.msk.bf16.gmra.mrb[28].mxu1 %vm687_vm3, %v5218_v14 }
 0x1e9   : > { %v5774_v63 = vpop.f32.mrb[0].mxu1 }
 0x1ea   : > { %v1853_v4 = vpop.f32.mrb[1].mxu1 }
 0x1eb   : > { %v5775_v43 = vpop.f32.mrb[2].mxu1 }
 0x1ec   : > { %v1856_v16 = vpop.f32.mrb[3].mxu1 }
 0x1f1   : > { %v5778_v58 = vpop.f32.mrb[4].mxu1 }
 0x1f2   : > { %v1869_v50 = vpop.f32.mrb[5].mxu1 }
 0x1f3   : > { %v5779_v54 = vpop.f32.mrb[6].mxu1 }
 0x1f4   : > { %v1872_v18 = vpop.f32.mrb[7].mxu1 }
 0x1f9   : > { %v5782_v11 = vpop.f32.mrb[8].mxu1 }
 0x1fa   : > { %v1885_v32 = vpop.f32.mrb[9].mxu1 }
 0x1fb   : > { %v5783_v24 = vpop.f32.mrb[10].mxu1 }
 0x1fc   : > { %v1888_v19 = vpop.f32.mrb[11].mxu1 }
 0x201   : > { %v8137_v41 = vpop.f32.mrb[12].mxu1 }
 0x202   : > { %v8139_v5 = vpop.f32.mrb[13].mxu1 }
 0x203   : > { %v8141_v55 = vpop.f32.mrb[14].mxu1 }
 0x204   : > { %v8143_v29 = vpop.f32.mrb[15].mxu1 }
 0x208   : > { %v5944_v52 = vpop.f32.mrb[0].mxu0 }
 0x209   : > { %v5976_v39 = vadd.f32 %v5944_v52, %v5774_v63  ;;  %v4607_v0 = vpop.f32.mrb[1].mxu0 }
 0x20a   : > { %v5977_v36 = vadd.f32 %v4607_v0, %v1853_v4  ;;  %v5945_v10 = vpop.f32.mrb[2].mxu0 }
 0x20b   : > { %v4775_v59 = vadd.f32 %v5976_v39, %v8148_v2  ;;  %v5978_v38 = vadd.f32 %v5945_v10, %v5775_v43  ;;  %v4610_v37 = vpop.f32.mrb[3].mxu0 }
 0x20c   : > { %v4773_v26 = vadd.f32 %v5977_v36, %v8148_v2  ;;  %v5979_v35 = vadd.f32 %v4610_v37, %v1856_v16 }
 0x20d   : > { %v4807_v34 = vmax.f32 %v4775_v59, 0.0  ;;  %v4776_v6 = vadd.f32 %v5978_v38, %v8148_v2 }
 0x20e   : > { %v4805_v49 = vmax.f32 %v4773_v26, 0.0  ;;  %v4774_v23 = vadd.f32 %v5979_v35, %v8148_v2 }
 0x20f   : > { %4840 = vst.msk [vmem:[%s8155_s24 + $0x10] sm:$0xff] %vm4837_vm8, %v4807_v34  ;;  %v4808_v25 = vmax.f32 %v4776_v6, 0.0 }
 0x210   : > { %4838 = vst.msk [vmem:[%s8155_s24] sm:$0xff] %vm4837_vm8, %v4805_v49  ;;  %v4806_v1 = vmax.f32 %v4774_v23, 0.0  ;;  %v5948_v7 = vpop.f32.mrb[4].mxu0 }
 0x211   : > { %4841 = vst.msk [vmem:[%s8155_s24 + $0x18] sm:$0xff] %vm4837_vm8, %v4808_v25  ;;  %v5980_v61 = vadd.f32 %v5948_v7, %v5778_v58  ;;  %v4623_v22 = vpop.f32.mrb[5].mxu0 }
 0x212   : > { %4839 = vst.msk [vmem:[%s8155_s24 + $0x8] sm:$0xff] %vm4837_vm8, %v4806_v1  ;;  %v5981_v44 = vadd.f32 %v4623_v22, %v1869_v50  ;;  %v5949_v3 = vpop.f32.mrb[6].mxu0 }
 0x213   : > { %v4779_v51 = vadd.f32 %v5980_v61, %v8148_v2  ;;  %v5982_v28 = vadd.f32 %v5949_v3, %v5779_v54  ;;  %v4626_v45 = vpop.f32.mrb[7].mxu0 }
 0x214   : > { %v4777_v27 = vadd.f32 %v5981_v44, %v8148_v2  ;;  %v5983_v53 = vadd.f32 %v4626_v45, %v1872_v18 }
 0x215   : > { %v4811_v21 = vmax.f32 %v4779_v51, 0.0  ;;  %v4780_v47 = vadd.f32 %v5982_v28, %v8148_v2 }
 0x216   : > { %v4809_v46 = vmax.f32 %v4777_v27, 0.0  ;;  %v4778_v15 = vadd.f32 %v5983_v53, %v8148_v2 }
 0x217   : > { %4844 = vst.msk [vmem:[%s8155_s24 + $0x30] sm:$0xff] %vm4837_vm8, %v4811_v21  ;;  %v4812_v60 = vmax.f32 %v4780_v47, 0.0 }
 0x218   : > { %4842 = vst.msk [vmem:[%s8155_s24 + $0x20] sm:$0xff] %vm4837_vm8, %v4809_v46  ;;  %v4810_v20 = vmax.f32 %v4778_v15, 0.0  ;;  %v5952_v42 = vpop.f32.mrb[8].mxu0 }
 0x219   : > { %4845 = vst.msk [vmem:[%s8155_s24 + $0x38] sm:$0xff] %vm4837_vm8, %v4812_v60  ;;  %v5984_v33 = vadd.f32 %v5952_v42, %v5782_v11  ;;  %v4639_v12 = vpop.f32.mrb[9].mxu0 }
 0x21a   : > { %4843 = vst.msk [vmem:[%s8155_s24 + $0x28] sm:$0xff] %vm4837_vm8, %v4810_v20  ;;  %v5985_v31 = vadd.f32 %v4639_v12, %v1885_v32  ;;  %v5953_v57 = vpop.f32.mrb[10].mxu0 }
 0x21b   : > { %v4783_v8 = vadd.f32 %v5984_v33, %v8148_v2  ;;  %v5986_v48 = vadd.f32 %v5953_v57, %v5783_v24  ;;  %v4642_v62 = vpop.f32.mrb[11].mxu0 }
 0x21c   : > { %v4781_v56 = vadd.f32 %v5985_v31, %v8148_v2  ;;  %v5987_v40 = vadd.f32 %v4642_v62, %v1888_v19 }
 0x21d   : > { %v4815_v13 = vmax.f32 %v4783_v8, 0.0  ;;  %v4784_v17 = vadd.f32 %v5986_v48, %v8148_v2 }
 0x21e   : > { %v4813_v30 = vmax.f32 %v4781_v56, 0.0  ;;  %v4782_v9 = vadd.f32 %v5987_v40, %v8148_v2 }
 0x21f   : > { %4848 = vst.msk [vmem:[%s8155_s24 + $0x50] sm:$0xff] %vm4837_vm8, %v4815_v13  ;;  %v4816_v14 = vmax.f32 %v4784_v17, 0.0 }
 0x220   : > { %4846 = vst.msk [vmem:[%s8155_s24 + $0x40] sm:$0xff] %vm4837_vm8, %v4813_v30  ;;  %v4814_v63 = vmax.f32 %v4782_v9, 0.0  ;;  %v5956_v4 = vpop.f32.mrb[12].mxu0 }
 0x221   : > { %4849 = vst.msk [vmem:[%s8155_s24 + $0x58] sm:$0xff] %vm4837_vm8, %v4816_v14  ;;  %v5988_v43 = vadd.f32 %v5956_v4, %v8137_v41  ;;  %v4655_v16 = vpop.f32.mrb[13].mxu0 }
 0x222   : > { %4847 = vst.msk [vmem:[%s8155_s24 + $0x48] sm:$0xff] %vm4837_vm8, %v4814_v63  ;;  %v5989_v58 = vadd.f32 %v4655_v16, %v8139_v5  ;;  %v5957_v50 = vpop.f32.mrb[14].mxu0 }
 0x223   : > { %v4787_v54 = vadd.f32 %v5988_v43, %v8148_v2  ;;  %v5990_v18 = vadd.f32 %v5957_v50, %v8141_v55  ;;  %v4658_v11 = vpop.f32.mrb[15].mxu0 }
 0x224   : > { %v4785_v32 = vadd.f32 %v5989_v58, %v8148_v2  ;;  %v5991_v24 = vadd.f32 %v4658_v11, %v8143_v29 }
 0x225   : > { %v4819_v19 = vmax.f32 %v4787_v54, 0.0  ;;  %v4788_v41 = vadd.f32 %v5990_v18, %v8148_v2 }
 0x226   : > { %v4817_v52 = vmax.f32 %v4785_v32, 0.0  ;;  %v4786_v39 = vadd.f32 %v5991_v24, %v8148_v2 }
 0x227   : > { %4852 = vst.msk [vmem:[%s8155_s24 + $0x70] sm:$0xff] %vm4837_vm8, %v4819_v19  ;;  %v4820_v5 = vmax.f32 %v4788_v41, 0.0 }
 0x228   : > { %4850 = vst.msk [vmem:[%s8155_s24 + $0x60] sm:$0xff] %vm4837_vm8, %v4817_v52  ;;  %v4818_v0 = vmax.f32 %v4786_v39, 0.0  ;;  %v5960_v36 = vpop.f32.mrb[16].mxu0 }
 0x229   : > { %4853 = vst.msk [vmem:[%s8155_s24 + $0x78] sm:$0xff] %vm4837_vm8, %v4820_v5  ;;  %v5824_v55 = vpop.f32.mrb[16].mxu1  ;;  %v4671_v10 = vpop.f32.mrb[17].mxu0 }
 0x22a   : > { %4851 = vst.msk [vmem:[%s8155_s24 + $0x68] sm:$0xff] %vm4837_vm8, %v4818_v0  ;;  %v5992_v29 = vadd.f32 %v5960_v36, %v5824_v55  ;;  %v2643_v59 = vpop.f32.mrb[17].mxu1  ;;  %v5961_v38 = vpop.f32.mrb[18].mxu0 }
 0x22b   : > { %v5993_v37 = vadd.f32 %v4671_v10, %v2643_v59  ;;  %v5825_v26 = vpop.f32.mrb[18].mxu1  ;;  %v4674_v35 = vpop.f32.mrb[19].mxu0 }
 0x22c   : > { %v4791_v34 = vadd.f32 %v5992_v29, %v8148_v2  ;;  %v5994_v6 = vadd.f32 %v5961_v38, %v5825_v26  ;;  %v2646_v49 = vpop.f32.mrb[19].mxu1 }
 0x22d   : > { %v4789_v23 = vadd.f32 %v5993_v37, %v8148_v2  ;;  %v5995_v25 = vadd.f32 %v4674_v35, %v2646_v49 }
 0x22e   : > { %v4823_v1 = vmax.f32 %v4791_v34, 0.0  ;;  %v4792_v7 = vadd.f32 %v5994_v6, %v8148_v2 }
 0x22f   : > { %v4821_v61 = vmax.f32 %v4789_v23, 0.0  ;;  %v4790_v22 = vadd.f32 %v5995_v25, %v8148_v2 }
 0x230   : > { %4856 = vst.msk [vmem:[%s8155_s24 + $0x90] sm:$0xff] %vm4837_vm8, %v4823_v1  ;;  %v4824_v44 = vmax.f32 %v4792_v7, 0.0  ;;  %v5964_v3 = vpop.f32.mrb[20].mxu0 }
 0x231   : > { %4854 = vst.msk [vmem:[%s8155_s24 + $0x80] sm:$0xff] %vm4837_vm8, %v4821_v61  ;;  %v4822_v51 = vmax.f32 %v4790_v22, 0.0  ;;  %v5828_v28 = vpop.f32.mrb[20].mxu1  ;;  %v4687_v45 = vpop.f32.mrb[21].mxu0 }
 0x232   : > { %4857 = vst.msk [vmem:[%s8155_s24 + $0x98] sm:$0xff] %vm4837_vm8, %v4824_v44  ;;  %v5996_v27 = vadd.f32 %v5964_v3, %v5828_v28  ;;  %v2659_v53 = vpop.f32.mrb[21].mxu1  ;;  %v5965_v21 = vpop.f32.mrb[22].mxu0 }
 0x233   : > { %4855 = vst.msk [vmem:[%s8155_s24 + $0x88] sm:$0xff] %vm4837_vm8, %v4822_v51  ;;  %v5997_v47 = vadd.f32 %v4687_v45, %v2659_v53  ;;  %v5829_v46 = vpop.f32.mrb[22].mxu1  ;;  %v4690_v15 = vpop.f32.mrb[23].mxu0 }
 0x234   : > { %v4795_v60 = vadd.f32 %v5996_v27, %v8148_v2  ;;  %v5998_v20 = vadd.f32 %v5965_v21, %v5829_v46  ;;  %v2662_v42 = vpop.f32.mrb[23].mxu1 }
 0x235   : > { %v4793_v33 = vadd.f32 %v5997_v47, %v8148_v2  ;;  %v5999_v12 = vadd.f32 %v4690_v15, %v2662_v42 }
 0x236   : > { %v4827_v31 = vmax.f32 %v4795_v60, 0.0  ;;  %v4796_v57 = vadd.f32 %v5998_v20, %v8148_v2 }
 0x237   : > { %v4825_v8 = vmax.f32 %v4793_v33, 0.0  ;;  %v4794_v48 = vadd.f32 %v5999_v12, %v8148_v2 }
 0x238   : > { %4860 = vst.msk [vmem:[%s8155_s24 + $0xb0] sm:$0xff] %vm4837_vm8, %v4827_v31  ;;  %v4828_v62 = vmax.f32 %v4796_v57, 0.0  ;;  %v5968_v56 = vpop.f32.mrb[24].mxu0 }
 0x239   : > { %4858 = vst.msk [vmem:[%s8155_s24 + $0xa0] sm:$0xff] %vm4837_vm8, %v4825_v8  ;;  %v4826_v40 = vmax.f32 %v4794_v48, 0.0  ;;  %v5832_v13 = vpop.f32.mrb[24].mxu1  ;;  %v4703_v17 = vpop.f32.mrb[25].mxu0 }
 0x23a   : > { %4861 = vst.msk [vmem:[%s8155_s24 + $0xb8] sm:$0xff] %vm4837_vm8, %v4828_v62  ;;  %v6000_v30 = vadd.f32 %v5968_v56, %v5832_v13  ;;  %v2675_v9 = vpop.f32.mrb[25].mxu1  ;;  %v5969_v14 = vpop.f32.mrb[26].mxu0 }
 0x23b   : > { %4859 = vst.msk [vmem:[%s8155_s24 + $0xa8] sm:$0xff] %vm4837_vm8, %v4826_v40  ;;  %v6001_v63 = vadd.f32 %v4703_v17, %v2675_v9  ;;  %v5833_v4 = vpop.f32.mrb[26].mxu1  ;;  %v4706_v43 = vpop.f32.mrb[27].mxu0 }
 0x23c   : > { %v4799_v16 = vadd.f32 %v6000_v30, %v8148_v2  ;;  %v6002_v58 = vadd.f32 %v5969_v14, %v5833_v4  ;;  %v2678_v50 = vpop.f32.mrb[27].mxu1 }
 0x23d   : > { %v4797_v54 = vadd.f32 %v6001_v63, %v8148_v2  ;;  %v6003_v18 = vadd.f32 %v4706_v43, %v2678_v50 }
 0x23e   : > { %v4831_v11 = vmax.f32 %v4799_v16, 0.0  ;;  %v4800_v32 = vadd.f32 %v6002_v58, %v8148_v2 }
 0x23f   : > { %v4829_v24 = vmax.f32 %v4797_v54, 0.0  ;;  %v4798_v19 = vadd.f32 %v6003_v18, %v8148_v2 }
 0x240   : > { %4864 = vst.msk [vmem:[%s8155_s24 + $0xd0] sm:$0xff] %vm4837_vm8, %v4831_v11  ;;  %v4832_v41 = vmax.f32 %v4800_v32, 0.0  ;;  %v5972_v52 = vpop.f32.mrb[28].mxu0 }
 0x241   : > { %4862 = vst.msk [vmem:[%s8155_s24 + $0xc0] sm:$0xff] %vm4837_vm8, %v4829_v24  ;;  %v4830_v39 = vmax.f32 %v4798_v19, 0.0  ;;  %v5836_v5 = vpop.f32.mrb[28].mxu1  ;;  %v4719_v0 = vpop.f32.mrb[29].mxu0 }
 0x242   : > { %4865 = vst.msk [vmem:[%s8155_s24 + $0xd8] sm:$0xff] %vm4837_vm8, %v4832_v41  ;;  %v6004_v36 = vadd.f32 %v5972_v52, %v5836_v5  ;;  %v2691_v55 = vpop.f32.mrb[29].mxu1  ;;  %v5973_v10 = vpop.f32.mrb[30].mxu0 }
 0x243   : > { %4863 = vst.msk [vmem:[%s8155_s24 + $0xc8] sm:$0xff] %vm4837_vm8, %v4830_v39  ;;  %v6005_v29 = vadd.f32 %v4719_v0, %v2691_v55  ;;  %v5837_v59 = vpop.f32.mrb[30].mxu1  ;;  %v4722_v38 = vpop.f32.mrb[31].mxu0 }
 0x244   : > { %v4803_v37 = vadd.f32 %v6004_v36, %v8148_v2  ;;  %v6006_v26 = vadd.f32 %v5973_v10, %v5837_v59  ;;  %v2694_v35 = vpop.f32.mrb[31].mxu1 }
 0x245   : > { %v4801_v34 = vadd.f32 %v6005_v29, %v8148_v2  ;;  %v6007_v6 = vadd.f32 %v4722_v38, %v2694_v35 }
 0x246   : > { %v4835_v49 = vmax.f32 %v4803_v37, 0.0  ;;  %v4804_v23 = vadd.f32 %v6006_v26, %v8148_v2 }
 0x247   : > { %v4833_v25 = vmax.f32 %v4801_v34, 0.0  ;;  %v4802_v1 = vadd.f32 %v6007_v6, %v8148_v2 }
 0x248   : > { %4868 = vst.msk [vmem:[%s8155_s24 + $0xf0] sm:$0xff] %vm4837_vm8, %v4835_v49  ;;  %v4836_v7 = vmax.f32 %v4804_v23, 0.0 }
 0x249   : > { %4866 = vst.msk [vmem:[%s8155_s24 + $0xe0] sm:$0xff] %vm4837_vm8, %v4833_v25  ;;  %v4834_v61 = vmax.f32 %v4802_v1, 0.0 }
 0x24a   : > { %4869 = vst.msk [vmem:[%s8155_s24 + $0xf8] sm:$0xff] %vm4837_vm8, %v4836_v7 }
 0x24b   : > { %4867 = vst.msk [vmem:[%s8155_s24 + $0xe8] sm:$0xff] %vm4837_vm8, %v4834_v61 }
 0x24c PF: > { %s13_s14 = sadd.s32 1, %s6394_s14   ;;  %s8336_s12 = smov %s6390_s13 }
 0x24d   : > { %p10_p5 = scmp.ge.s32.totalorder %s13_s14, 4   ;;  %s8337_s13 = smov %s8339_s15 }
 0x24f   :  { %12 = sbr.rel (!%p10_p5) target bundleno = 2 (0x2), region = 73 }

</bundles_post_ra>
